<compile_context>
chip_gen: v6e
topology: v6e:2x2x1
jax: 0.10.0
libtpu: 0.0.40
codegen_flags: <defaults>
</compile_context>

<pallas_src>
import numpy as np
import jax
import jax.numpy as jnp
from jax import lax
from jax.experimental import pallas as pl
from jax.experimental.pallas import tpu as pltpu

# Default MS-SSIM level weights (same as pytorch_msssim).
_MS_SSIM_WEIGHTS = (0.0448, 0.2856, 0.3001, 0.2363, 0.1333)

# Use the MXU (banded-matmul) gaussian only when both spatial dims are at
# least this large; tiny deep pyramid levels keep the shifted-slice path.
_MIN_MXU_DIM = 32


def _gauss_1d(win_size: int, sigma: float) -> np.ndarray:
    """1-D gaussian window, identical to pytorch_msssim._fspecial_gauss_1d."""
    coords = np.arange(win_size, dtype=np.float64) - win_size // 2
    g = np.exp(-(coords ** 2) / (2.0 * sigma ** 2))
    return (g / g.sum()).astype(np.float32)


def _band_matrices(h, w, g):
    """Constant banded matrices: 3-tap 'valid' separable conv == Bh @ t @ Bw."""
    g0, g1, g2 = (float(v) for v in g)
    bh = np.zeros((h - 2, h), np.float32)
    r = np.arange(h - 2)
    bh[r, r] = g0
    bh[r, r + 1] = g1
    bh[r, r + 2] = g2
    bw = np.zeros((w, w - 2), np.float32)
    c = np.arange(w - 2)
    bw[c, c] = g0
    bw[c + 1, c] = g1
    bw[c + 2, c] = g2
    return bh, bw


def _pool_matrices(h, w):
    """Constant matrices: F.avg_pool2d(kernel=2, stride=2, padding=(h%2,w%2),
    count_include_pad=True) == PhT @ t @ Pw."""
    ph, pw = h % 2, w % 2
    hp, wp = (h + ph) // 2, (w + pw) // 2
    pht = np.zeros((hp, h), np.float32)
    for j in range(hp):
        for i in (2 * j - ph, 2 * j + 1 - ph):
            if 0 <= i < h:
                pht[j, i] = 0.5
    pwm = np.zeros((w, wp), np.float32)
    for j in range(wp):
        for i in (2 * j - pw, 2 * j + 1 - pw):
            if 0 <= i < w:
                pwm[i, j] = 0.5
    return pht, pwm, hp, wp


def _ms_ssim_per_sample(xf, yf, g, C1, C2, levels):
    """All MS-SSIM levels fused in one pallas_call.

    xf, yf: (N, H, W) f32.
    Returns (levels, N) f32: cs spatial means for levels 0..levels-2 and the
    ssim spatial mean for the last level (pre-ReLU, pre-weighting).
    """
    N, H, W = xf.shape
    g0, g1, g2 = (float(v) for v in g)
    c1, c2 = float(C1), float(C2)

    # Static per-level plan (shapes of the pyramid, which levels use the MXU).
    shapes = [(H, W)]
    for _ in range(levels - 1):
        h, w = shapes[-1]
        shapes.append(((h + h % 2) // 2, (w + w % 2) // 2))
    use_mxu = [min(h, w) >= _MIN_MXU_DIM for (h, w) in shapes]

    img_spec = pl.BlockSpec((None, H, W), lambda n: (n, 0, 0))
    args = [xf, yf]
    in_specs = [img_spec, img_spec]
    for lvl in range(levels):
        h, w = shapes[lvl]
        if use_mxu[lvl]:
            bh, bw = _band_matrices(h, w, g)
            args += [jnp.asarray(bh), jnp.asarray(bw)]
            # Constant block index -> DMA'd once, resident across grid steps.
            in_specs += [pl.BlockSpec((h - 2, h), lambda n: (0, 0)),
                         pl.BlockSpec((w, w - 2), lambda n: (0, 0))]
        if lvl < levels - 1:
            pht, pwm, hp, wp = _pool_matrices(h, w)
            args += [jnp.asarray(pht), jnp.asarray(pwm)]
            in_specs += [pl.BlockSpec((hp, h), lambda n: (0, 0)),
                         pl.BlockSpec((w, wp), lambda n: (0, 0))]

    def kernel(*refs):
        it = iter(refs)
        x_ref = next(it)
        y_ref = next(it)
        band = {}
        pools = {}
        for lvl in range(levels):
            if use_mxu[lvl]:
                band[lvl] = (next(it), next(it))
            if lvl < levels - 1:
                pools[lvl] = (next(it), next(it))
        st_ref = next(it)

        def mxu_filter(bhv, bwv):
            def gf(t):                     # separable 3-tap conv on the MXU
                t = jnp.dot(bhv, t, preferred_element_type=jnp.float32)
                return jnp.dot(t, bwv, preferred_element_type=jnp.float32)
            return gf

        def shift_filter(t):               # shifted-slice path (tiny levels)
            t = g0 * t[:-2, :] + g1 * t[1:-1, :] + g2 * t[2:, :]
            return g0 * t[:, :-2] + g1 * t[:, 1:-1] + g2 * t[:, 2:]

        def spatial_mean(t, inv_cnt):
            # sublane (H) reduce first, then one cross-lane reduce
            return jnp.sum(jnp.sum(t, axis=0, keepdims=True),
                           axis=1, keepdims=True) * inv_cnt      # (1, 1)

        def recip(d):                      # EUP approx + one Newton step
            r = pl.reciprocal(d, approx=True)
            return r * (2.0 - d * r)

        xv = x_ref[...]                    # (H, W) f32, whole pyramid in VMEM
        yv = y_ref[...]
        vals = []                          # per-level (1, 1) spatial means
        for lvl in range(levels):
            h, w = shapes[lvl]
            inv_cnt = 1.0 / float((h - 2) * (w - 2))
            if use_mxu[lvl]:
                gf = mxu_filter(band[lvl][0][...], band[lvl][1][...])
            else:
                gf = shift_filter

            mu1 = gf(xv)
            mu2 = gf(yv)
            mu1_sq = mu1 * mu1
            mu2_sq = mu2 * mu2
            mu12 = mu1 * mu2
            # Fold each filtered second moment into cs as soon as produced to
            # keep the number of live (h-2, w-2) temporaries small.
            num_cs = 2.0 * (gf(xv * yv) - mu12) + c2
            den_cs = (gf(xv * xv) - mu1_sq) + (gf(yv * yv) - mu2_sq) + c2
            cs_map = num_cs * recip(den_cs)

            if lvl < levels - 1:
                vals.append(spatial_mean(cs_map, inv_cnt))
                # fused 2x2 avg-pool on the MXU -> next level never leaves VMEM
                phtv = pools[lvl][0][...]
                pwmv = pools[lvl][1][...]

                def pool2(t, phtv=phtv, pwmv=pwmv):
                    t = jnp.dot(phtv, t, preferred_element_type=jnp.float32)
                    return jnp.dot(t, pwmv, preferred_element_type=jnp.float32)

                xv, yv = pool2(xv), pool2(yv)
            else:
                ssim_map = (2.0 * mu12 + c1) * recip(mu1_sq + mu2_sq + c1) * cs_map
                vals.append(spatial_mean(ssim_map, inv_cnt))

        # Lane-dense (1, 128) stats row: level l at lane l.
        lane = lax.broadcasted_iota(jnp.int32, (1, 128), 1)
        acc = jnp.zeros((1, 128), jnp.float32)
        for lvl, v in enumerate(vals):
            acc = acc + jnp.where(lane == lvl, v, 0.0)
        st_ref[...] = acc

    stats = pl.pallas_call(
        kernel,
        grid=(N,),
        in_specs=in_specs,
        out_specs=pl.BlockSpec((None, 1, 128), lambda n: (n, 0, 0)),
        out_shape=jax.ShapeDtypeStruct((N, 1, 128), jnp.float32),
        compiler_params=pltpu.CompilerParams(
            dimension_semantics=("parallel",),     # megacore sharding on v7x
            vmem_limit_bytes=32 * 1024 * 1024,     # explicit, fits v5e..v7x
        ),
    )(*args)

    return stats[:, 0, :levels].T                  # (levels, N)


def ms_ssim_loss(x, y, data_range=255.0, win_size=3, win_sigma=1.5,
                 K=(0.01, 0.03), weights=_MS_SSIM_WEIGHTS):
    """Forward of MS_SSIMLoss: 1 - MS_SSIM(x, y), size_average=True, win_size=3."""
    assert x.shape == y.shape
    assert win_size == 3, "kernel is specialized for win_size=3"
    B, C, H, W = x.shape
    levels = len(weights)
    # same constraint as pytorch_msssim: smaller side > (win_size-1)*2**(levels-1)
    assert min(H, W) > (win_size - 1) * (2 ** (levels - 1)), "image too small"

    g = _gauss_1d(win_size, win_sigma)
    C1 = (K[0] * data_range) ** 2
    C2 = (K[1] * data_range) ** 2

    xf = x.reshape(B * C, H, W).astype(jnp.float32)
    yf = y.reshape(B * C, H, W).astype(jnp.float32)

    # TODO(synk): for very large H,W also tile H with a 2-row halo inside the
    #             kernel; current per-sample blocks assume one image fits VMEM.
    # TODO(synk): when B*C is large, pack several samples per grid step and
    #             repack the deep (W<128) levels onto the 128-lane axis.
    vals = _ms_ssim_per_sample(xf, yf, g, C1, C2, levels)      # (levels, N)
    vals = jnp.maximum(vals, 0.0)                              # relu(cs / ssim)
    w = jnp.asarray(weights, jnp.float32).reshape(levels, 1)
    ms_ssim_val = jnp.prod(vals ** w, axis=0)                  # (B*C,)
    # size_average=True -> mean over batch and channel; loss = 1 - ms_ssim
    return 1.0 - jnp.mean(ms_ssim_val)


# ----------------------------- pure-JAX reference --------------------------

def _avg_pool2(t):
    """avg_pool2d(kernel=2, stride=2, padding=dim%2, count_include_pad=True)."""
    N, H, W = t.shape
    ph, pw = H % 2, W % 2
    if ph or pw:
        # only the leading pad element of each dim is ever covered by a window
        t = jnp.pad(t, ((0, 0), (ph, 0), (pw, 0)))
        N, H, W = t.shape
    return t.reshape(N, H // 2, 2, W // 2, 2).mean(axis=(2, 4))


def _ms_ssim_loss_ref(x, y, data_range=255.0, win_sigma=1.5, K=(0.01, 0.03),
                      weights=_MS_SSIM_WEIGHTS):
    """Pure-JAX reference of the same math (for self-validation)."""
    g = _gauss_1d(3, win_sigma)
    g0, g1, g2 = (float(v) for v in g)
    C1 = (K[0] * data_range) ** 2
    C2 = (K[1] * data_range) ** 2
    B, C, H, W = x.shape
    xf = x.reshape(B * C, H, W).astype(jnp.float32)
    yf = y.reshape(B * C, H, W).astype(jnp.float32)

    def gf(t):
        t = g0 * t[:, :-2, :] + g1 * t[:, 1:-1, :] + g2 * t[:, 2:, :]
        return g0 * t[:, :, :-2] + g1 * t[:, :, 1:-1] + g2 * t[:, :, 2:]

    vals = []
    levels = len(weights)
    for lvl in range(levels):
        mu1, mu2 = gf(xf), gf(yf)
        s1 = gf(xf * xf) - mu1 * mu1
        s2 = gf(yf * yf) - mu2 * mu2
        s12 = gf(xf * yf) - mu1 * mu2
        cs = (2.0 * s12 + C2) / (s1 + s2 + C2)
        ssim = ((2.0 * mu1 * mu2 + C1) / (mu1 * mu1 + mu2 * mu2 + C1)) * cs
        if lvl < levels - 1:
            vals.append(jnp.maximum(cs.mean(axis=(1, 2)), 0.0))
            xf, yf = _avg_pool2(xf), _avg_pool2(yf)
        else:
            vals.append(jnp.maximum(ssim.mean(axis=(1, 2)), 0.0))
    stacked = jnp.stack(vals, axis=0)
    w = jnp.asarray(weights, jnp.float32).reshape(levels, 1)
    return 1.0 - jnp.mean(jnp.prod(stacked ** w, axis=0))


if __name__ == "__main__":
    key = jax.random.PRNGKey(0)
    kx, ky = jax.random.split(key)
    # channels=1 (module default); spatial side must exceed 32 for 5 MS-SSIM levels.
    B, C, H, W = 2, 1, 64, 64
    x = jax.random.uniform(kx, (B, C, H, W), dtype=jnp.float32)
    y = jax.random.uniform(ky, (B, C, H, W), dtype=jnp.float32)

    loss = jax.jit(ms_ssim_loss)(x, y)
    jax.block_until_ready(loss)
    assert loss.shape == () and bool(jnp.isfinite(loss))

    # sanity check against the pure-JAX reference
    loss_ref = jax.jit(_ms_ssim_loss_ref)(x, y)
    jax.block_until_ready(loss_ref)
    assert abs(float(loss) - float(loss_ref)) < 1e-2, (float(loss), float(loss_ref))

    print("KERNEL_OK")
</pallas_src>

<mosaic_0001>
module attributes {stable_mosaic.version = 11 : i64} {
  func.func @kernel(%arg0: i32, %arg1: memref<1x64x64xf32, #tpu.memory_space<vmem>>, %arg2: memref<1x64x64xf32, #tpu.memory_space<vmem>>, %arg3: memref<62x64xf32, #tpu.memory_space<vmem>>, %arg4: memref<64x62xf32, #tpu.memory_space<vmem>>, %arg5: memref<32x64xf32, #tpu.memory_space<vmem>>, %arg6: memref<64x32xf32, #tpu.memory_space<vmem>>, %arg7: memref<30x32xf32, #tpu.memory_space<vmem>>, %arg8: memref<32x30xf32, #tpu.memory_space<vmem>>, %arg9: memref<16x32xf32, #tpu.memory_space<vmem>>, %arg10: memref<32x16xf32, #tpu.memory_space<vmem>>, %arg11: memref<8x16xf32, #tpu.memory_space<vmem>>, %arg12: memref<16x8xf32, #tpu.memory_space<vmem>>, %arg13: memref<4x8xf32, #tpu.memory_space<vmem>>, %arg14: memref<8x4xf32, #tpu.memory_space<vmem>>, %arg15: memref<1x1x128xf32, #tpu.memory_space<vmem>>) attributes {dimension_semantics = [#tpu.dimension_semantics<parallel>], iteration_bounds = array<i64: 2>, scalar_prefetch = 0 : i64, scratch_operands = 0 : i64, tpu.core_type = #tpu.core_type<tc>, window_params = [{transform_indices = @transform_0, window_bounds = array<i64: 1, 64, 64>}, {transform_indices = @transform_1, window_bounds = array<i64: 1, 64, 64>}, {pipeline_mode = #tpu.pipeline_mode<synchronous>, transform_indices = @transform_2, window_bounds = array<i64: 62, 64>}, {pipeline_mode = #tpu.pipeline_mode<synchronous>, transform_indices = @transform_3, window_bounds = array<i64: 64, 62>}, {pipeline_mode = #tpu.pipeline_mode<synchronous>, transform_indices = @transform_4, window_bounds = array<i64: 32, 64>}, {pipeline_mode = #tpu.pipeline_mode<synchronous>, transform_indices = @transform_5, window_bounds = array<i64: 64, 32>}, {pipeline_mode = #tpu.pipeline_mode<synchronous>, transform_indices = @transform_6, window_bounds = array<i64: 30, 32>}, {pipeline_mode = #tpu.pipeline_mode<synchronous>, transform_indices = @transform_7, window_bounds = array<i64: 32, 30>}, {pipeline_mode = #tpu.pipeline_mode<synchronous>, transform_indices = @transform_8, window_bounds = array<i64: 16, 32>}, {pipeline_mode = #tpu.pipeline_mode<synchronous>, transform_indices = @transform_9, window_bounds = array<i64: 32, 16>}, {pipeline_mode = #tpu.pipeline_mode<synchronous>, transform_indices = @transform_10, window_bounds = array<i64: 8, 16>}, {pipeline_mode = #tpu.pipeline_mode<synchronous>, transform_indices = @transform_11, window_bounds = array<i64: 16, 8>}, {pipeline_mode = #tpu.pipeline_mode<synchronous>, transform_indices = @transform_12, window_bounds = array<i64: 4, 8>}, {pipeline_mode = #tpu.pipeline_mode<synchronous>, transform_indices = @transform_13, window_bounds = array<i64: 8, 4>}, {transform_indices = @transform_14, window_bounds = array<i64: 1, 1, 128>}]} {
    %c0 = arith.constant 0 : index
    %c0_0 = arith.constant 0 : index
    %c0_1 = arith.constant 0 : index
    %0 = vector.load %arg1[%c0, %c0_0, %c0_1] : memref<1x64x64xf32, #tpu.memory_space<vmem>>, vector<1x64x64xf32>
    %1 = vector.shape_cast %0 : vector<1x64x64xf32> to vector<64x64xf32>
    %c0_2 = arith.constant 0 : index
    %c0_3 = arith.constant 0 : index
    %c0_4 = arith.constant 0 : index
    %2 = vector.load %arg2[%c0_2, %c0_3, %c0_4] : memref<1x64x64xf32, #tpu.memory_space<vmem>>, vector<1x64x64xf32>
    %3 = vector.shape_cast %2 : vector<1x64x64xf32> to vector<64x64xf32>
    %c0_5 = arith.constant 0 : index
    %c0_6 = arith.constant 0 : index
    %4 = vector.load %arg3[%c0_5, %c0_6] : memref<62x64xf32, #tpu.memory_space<vmem>>, vector<62x64xf32>
    %c0_7 = arith.constant 0 : index
    %c0_8 = arith.constant 0 : index
    %5 = vector.load %arg4[%c0_7, %c0_8] : memref<64x62xf32, #tpu.memory_space<vmem>>, vector<64x62xf32>
    %cst = arith.constant dense<0.000000e+00> : vector<62x64xf32>
    %6 = tpu.matmul %4, %1, %cst {dimension_numbers = #tpu.dot_dimension_numbers<[1], [0], [0], [1], [0, 0, 1, 1], [], []>} : vector<62x64xf32>, vector<64x64xf32>, vector<62x64xf32> -> vector<62x64xf32>
    %cst_9 = arith.constant dense<0.000000e+00> : vector<62x62xf32>
    %7 = tpu.matmul %6, %5, %cst_9 {dimension_numbers = #tpu.dot_dimension_numbers<[1], [0], [0], [1], [0, 0, 1, 1], [], []>} : vector<62x64xf32>, vector<64x62xf32>, vector<62x62xf32> -> vector<62x62xf32>
    %cst_10 = arith.constant dense<0.000000e+00> : vector<62x64xf32>
    %8 = tpu.matmul %4, %3, %cst_10 {dimension_numbers = #tpu.dot_dimension_numbers<[1], [0], [0], [1], [0, 0, 1, 1], [], []>} : vector<62x64xf32>, vector<64x64xf32>, vector<62x64xf32> -> vector<62x64xf32>
    %cst_11 = arith.constant dense<0.000000e+00> : vector<62x62xf32>
    %9 = tpu.matmul %8, %5, %cst_11 {dimension_numbers = #tpu.dot_dimension_numbers<[1], [0], [0], [1], [0, 0, 1, 1], [], []>} : vector<62x64xf32>, vector<64x62xf32>, vector<62x62xf32> -> vector<62x62xf32>
    %10 = arith.mulf %7, %7 : vector<62x62xf32>
    %11 = arith.mulf %9, %9 : vector<62x62xf32>
    %12 = arith.mulf %7, %9 : vector<62x62xf32>
    %13 = arith.mulf %1, %3 : vector<64x64xf32>
    %cst_12 = arith.constant dense<0.000000e+00> : vector<62x64xf32>
    %14 = tpu.matmul %4, %13, %cst_12 {dimension_numbers = #tpu.dot_dimension_numbers<[1], [0], [0], [1], [0, 0, 1, 1], [], []>} : vector<62x64xf32>, vector<64x64xf32>, vector<62x64xf32> -> vector<62x64xf32>
    %cst_13 = arith.constant dense<0.000000e+00> : vector<62x62xf32>
    %15 = tpu.matmul %14, %5, %cst_13 {dimension_numbers = #tpu.dot_dimension_numbers<[1], [0], [0], [1], [0, 0, 1, 1], [], []>} : vector<62x64xf32>, vector<64x62xf32>, vector<62x62xf32> -> vector<62x62xf32>
    %16 = arith.subf %15, %12 : vector<62x62xf32>
    %cst_14 = arith.constant 2.000000e+00 : f32
    %17 = vector.broadcast %cst_14 : f32 to vector<62x62xf32>
    %18 = arith.mulf %17, %16 : vector<62x62xf32>
    %cst_15 = arith.constant 5.852250e+01 : f32
    %19 = vector.broadcast %cst_15 : f32 to vector<62x62xf32>
    %20 = arith.addf %18, %19 : vector<62x62xf32>
    %21 = arith.mulf %1, %1 : vector<64x64xf32>
    %cst_16 = arith.constant dense<0.000000e+00> : vector<62x64xf32>
    %22 = tpu.matmul %4, %21, %cst_16 {dimension_numbers = #tpu.dot_dimension_numbers<[1], [0], [0], [1], [0, 0, 1, 1], [], []>} : vector<62x64xf32>, vector<64x64xf32>, vector<62x64xf32> -> vector<62x64xf32>
    %cst_17 = arith.constant dense<0.000000e+00> : vector<62x62xf32>
    %23 = tpu.matmul %22, %5, %cst_17 {dimension_numbers = #tpu.dot_dimension_numbers<[1], [0], [0], [1], [0, 0, 1, 1], [], []>} : vector<62x64xf32>, vector<64x62xf32>, vector<62x62xf32> -> vector<62x62xf32>
    %24 = arith.subf %23, %10 : vector<62x62xf32>
    %25 = arith.mulf %3, %3 : vector<64x64xf32>
    %cst_18 = arith.constant dense<0.000000e+00> : vector<62x64xf32>
    %26 = tpu.matmul %4, %25, %cst_18 {dimension_numbers = #tpu.dot_dimension_numbers<[1], [0], [0], [1], [0, 0, 1, 1], [], []>} : vector<62x64xf32>, vector<64x64xf32>, vector<62x64xf32> -> vector<62x64xf32>
    %cst_19 = arith.constant dense<0.000000e+00> : vector<62x62xf32>
    %27 = tpu.matmul %26, %5, %cst_19 {dimension_numbers = #tpu.dot_dimension_numbers<[1], [0], [0], [1], [0, 0, 1, 1], [], []>} : vector<62x64xf32>, vector<64x62xf32>, vector<62x62xf32> -> vector<62x62xf32>
    %28 = arith.subf %27, %11 : vector<62x62xf32>
    %29 = arith.addf %24, %28 : vector<62x62xf32>
    %cst_20 = arith.constant 5.852250e+01 : f32
    %30 = vector.broadcast %cst_20 : f32 to vector<62x62xf32>
    %31 = arith.addf %29, %30 : vector<62x62xf32>
    %32 = tpu.reciprocal %31 {approx = true} : vector<62x62xf32> -> vector<62x62xf32>
    %33 = arith.mulf %31, %32 : vector<62x62xf32>
    %cst_21 = arith.constant 2.000000e+00 : f32
    %34 = vector.broadcast %cst_21 : f32 to vector<62x62xf32>
    %35 = arith.subf %34, %33 : vector<62x62xf32>
    %36 = arith.mulf %32, %35 : vector<62x62xf32>
    %37 = arith.mulf %20, %36 : vector<62x62xf32>
    %cst_22 = arith.constant dense<0.000000e+00> : vector<62xf32>
    %38 = vector.multi_reduction <add>, %37, %cst_22 [0] : vector<62x62xf32> to vector<62xf32>
    %39 = vector.shape_cast %38 : vector<62xf32> to vector<1x62xf32>
    %cst_23 = arith.constant dense<0.000000e+00> : vector<1xf32>
    %40 = vector.multi_reduction <add>, %39, %cst_23 [1] : vector<1x62xf32> to vector<1xf32>
    %41 = vector.shape_cast %40 : vector<1xf32> to vector<1x1xf32>
    %cst_24 = arith.constant 2.60145694E-4 : f32
    %42 = vector.broadcast %cst_24 : f32 to vector<1x1xf32>
    %43 = arith.mulf %41, %42 : vector<1x1xf32>
    %c0_25 = arith.constant 0 : index
    %c0_26 = arith.constant 0 : index
    %44 = vector.load %arg5[%c0_25, %c0_26] : memref<32x64xf32, #tpu.memory_space<vmem>>, vector<32x64xf32>
    %c0_27 = arith.constant 0 : index
    %c0_28 = arith.constant 0 : index
    %45 = vector.load %arg6[%c0_27, %c0_28] : memref<64x32xf32, #tpu.memory_space<vmem>>, vector<64x32xf32>
    %cst_29 = arith.constant dense<0.000000e+00> : vector<32x64xf32>
    %46 = tpu.matmul %44, %1, %cst_29 {dimension_numbers = #tpu.dot_dimension_numbers<[1], [0], [0], [1], [0, 0, 1, 1], [], []>} : vector<32x64xf32>, vector<64x64xf32>, vector<32x64xf32> -> vector<32x64xf32>
    %cst_30 = arith.constant dense<0.000000e+00> : vector<32x32xf32>
    %47 = tpu.matmul %46, %45, %cst_30 {dimension_numbers = #tpu.dot_dimension_numbers<[1], [0], [0], [1], [0, 0, 1, 1], [], []>} : vector<32x64xf32>, vector<64x32xf32>, vector<32x32xf32> -> vector<32x32xf32>
    %cst_31 = arith.constant dense<0.000000e+00> : vector<32x64xf32>
    %48 = tpu.matmul %44, %3, %cst_31 {dimension_numbers = #tpu.dot_dimension_numbers<[1], [0], [0], [1], [0, 0, 1, 1], [], []>} : vector<32x64xf32>, vector<64x64xf32>, vector<32x64xf32> -> vector<32x64xf32>
    %cst_32 = arith.constant dense<0.000000e+00> : vector<32x32xf32>
    %49 = tpu.matmul %48, %45, %cst_32 {dimension_numbers = #tpu.dot_dimension_numbers<[1], [0], [0], [1], [0, 0, 1, 1], [], []>} : vector<32x64xf32>, vector<64x32xf32>, vector<32x32xf32> -> vector<32x32xf32>
    %c0_33 = arith.constant 0 : index
    %c0_34 = arith.constant 0 : index
    %50 = vector.load %arg7[%c0_33, %c0_34] : memref<30x32xf32, #tpu.memory_space<vmem>>, vector<30x32xf32>
    %c0_35 = arith.constant 0 : index
    %c0_36 = arith.constant 0 : index
    %51 = vector.load %arg8[%c0_35, %c0_36] : memref<32x30xf32, #tpu.memory_space<vmem>>, vector<32x30xf32>
    %cst_37 = arith.constant dense<0.000000e+00> : vector<30x32xf32>
    %52 = tpu.matmul %50, %47, %cst_37 {dimension_numbers = #tpu.dot_dimension_numbers<[1], [0], [0], [1], [0, 0, 1, 1], [], []>} : vector<30x32xf32>, vector<32x32xf32>, vector<30x32xf32> -> vector<30x32xf32>
    %cst_38 = arith.constant dense<0.000000e+00> : vector<30x30xf32>
    %53 = tpu.matmul %52, %51, %cst_38 {dimension_numbers = #tpu.dot_dimension_numbers<[1], [0], [0], [1], [0, 0, 1, 1], [], []>} : vector<30x32xf32>, vector<32x30xf32>, vector<30x30xf32> -> vector<30x30xf32>
    %cst_39 = arith.constant dense<0.000000e+00> : vector<30x32xf32>
    %54 = tpu.matmul %50, %49, %cst_39 {dimension_numbers = #tpu.dot_dimension_numbers<[1], [0], [0], [1], [0, 0, 1, 1], [], []>} : vector<30x32xf32>, vector<32x32xf32>, vector<30x32xf32> -> vector<30x32xf32>
    %cst_40 = arith.constant dense<0.000000e+00> : vector<30x30xf32>
    %55 = tpu.matmul %54, %51, %cst_40 {dimension_numbers = #tpu.dot_dimension_numbers<[1], [0], [0], [1], [0, 0, 1, 1], [], []>} : vector<30x32xf32>, vector<32x30xf32>, vector<30x30xf32> -> vector<30x30xf32>
    %56 = arith.mulf %53, %53 : vector<30x30xf32>
    %57 = arith.mulf %55, %55 : vector<30x30xf32>
    %58 = arith.mulf %53, %55 : vector<30x30xf32>
    %59 = arith.mulf %47, %49 : vector<32x32xf32>
    %cst_41 = arith.constant dense<0.000000e+00> : vector<30x32xf32>
    %60 = tpu.matmul %50, %59, %cst_41 {dimension_numbers = #tpu.dot_dimension_numbers<[1], [0], [0], [1], [0, 0, 1, 1], [], []>} : vector<30x32xf32>, vector<32x32xf32>, vector<30x32xf32> -> vector<30x32xf32>
    %cst_42 = arith.constant dense<0.000000e+00> : vector<30x30xf32>
    %61 = tpu.matmul %60, %51, %cst_42 {dimension_numbers = #tpu.dot_dimension_numbers<[1], [0], [0], [1], [0, 0, 1, 1], [], []>} : vector<30x32xf32>, vector<32x30xf32>, vector<30x30xf32> -> vector<30x30xf32>
    %62 = arith.subf %61, %58 : vector<30x30xf32>
    %cst_43 = arith.constant 2.000000e+00 : f32
    %63 = vector.broadcast %cst_43 : f32 to vector<30x30xf32>
    %64 = arith.mulf %63, %62 : vector<30x30xf32>
    %cst_44 = arith.constant 5.852250e+01 : f32
    %65 = vector.broadcast %cst_44 : f32 to vector<30x30xf32>
    %66 = arith.addf %64, %65 : vector<30x30xf32>
    %67 = arith.mulf %47, %47 : vector<32x32xf32>
    %cst_45 = arith.constant dense<0.000000e+00> : vector<30x32xf32>
    %68 = tpu.matmul %50, %67, %cst_45 {dimension_numbers = #tpu.dot_dimension_numbers<[1], [0], [0], [1], [0, 0, 1, 1], [], []>} : vector<30x32xf32>, vector<32x32xf32>, vector<30x32xf32> -> vector<30x32xf32>
    %cst_46 = arith.constant dense<0.000000e+00> : vector<30x30xf32>
    %69 = tpu.matmul %68, %51, %cst_46 {dimension_numbers = #tpu.dot_dimension_numbers<[1], [0], [0], [1], [0, 0, 1, 1], [], []>} : vector<30x32xf32>, vector<32x30xf32>, vector<30x30xf32> -> vector<30x30xf32>
    %70 = arith.subf %69, %56 : vector<30x30xf32>
    %71 = arith.mulf %49, %49 : vector<32x32xf32>
    %cst_47 = arith.constant dense<0.000000e+00> : vector<30x32xf32>
    %72 = tpu.matmul %50, %71, %cst_47 {dimension_numbers = #tpu.dot_dimension_numbers<[1], [0], [0], [1], [0, 0, 1, 1], [], []>} : vector<30x32xf32>, vector<32x32xf32>, vector<30x32xf32> -> vector<30x32xf32>
    %cst_48 = arith.constant dense<0.000000e+00> : vector<30x30xf32>
    %73 = tpu.matmul %72, %51, %cst_48 {dimension_numbers = #tpu.dot_dimension_numbers<[1], [0], [0], [1], [0, 0, 1, 1], [], []>} : vector<30x32xf32>, vector<32x30xf32>, vector<30x30xf32> -> vector<30x30xf32>
    %74 = arith.subf %73, %57 : vector<30x30xf32>
    %75 = arith.addf %70, %74 : vector<30x30xf32>
    %cst_49 = arith.constant 5.852250e+01 : f32
    %76 = vector.broadcast %cst_49 : f32 to vector<30x30xf32>
    %77 = arith.addf %75, %76 : vector<30x30xf32>
    %78 = tpu.reciprocal %77 {approx = true} : vector<30x30xf32> -> vector<30x30xf32>
    %79 = arith.mulf %77, %78 : vector<30x30xf32>
    %cst_50 = arith.constant 2.000000e+00 : f32
    %80 = vector.broadcast %cst_50 : f32 to vector<30x30xf32>
    %81 = arith.subf %80, %79 : vector<30x30xf32>
    %82 = arith.mulf %78, %81 : vector<30x30xf32>
    %83 = arith.mulf %66, %82 : vector<30x30xf32>
    %cst_51 = arith.constant dense<0.000000e+00> : vector<30xf32>
    %84 = vector.multi_reduction <add>, %83, %cst_51 [0] : vector<30x30xf32> to vector<30xf32>
    %85 = vector.shape_cast %84 : vector<30xf32> to vector<1x30xf32>
    %cst_52 = arith.constant dense<0.000000e+00> : vector<1xf32>
    %86 = vector.multi_reduction <add>, %85, %cst_52 [1] : vector<1x30xf32> to vector<1xf32>
    %87 = vector.shape_cast %86 : vector<1xf32> to vector<1x1xf32>
    %cst_53 = arith.constant 0.00111111114 : f32
    %88 = vector.broadcast %cst_53 : f32 to vector<1x1xf32>
    %89 = arith.mulf %87, %88 : vector<1x1xf32>
    %c0_54 = arith.constant 0 : index
    %c0_55 = arith.constant 0 : index
    %90 = vector.load %arg9[%c0_54, %c0_55] : memref<16x32xf32, #tpu.memory_space<vmem>>, vector<16x32xf32>
    %c0_56 = arith.constant 0 : index
    %c0_57 = arith.constant 0 : index
    %91 = vector.load %arg10[%c0_56, %c0_57] : memref<32x16xf32, #tpu.memory_space<vmem>>, vector<32x16xf32>
    %cst_58 = arith.constant dense<0.000000e+00> : vector<16x32xf32>
    %92 = tpu.matmul %90, %47, %cst_58 {dimension_numbers = #tpu.dot_dimension_numbers<[1], [0], [0], [1], [0, 0, 1, 1], [], []>} : vector<16x32xf32>, vector<32x32xf32>, vector<16x32xf32> -> vector<16x32xf32>
    %cst_59 = arith.constant dense<0.000000e+00> : vector<16x16xf32>
    %93 = tpu.matmul %92, %91, %cst_59 {dimension_numbers = #tpu.dot_dimension_numbers<[1], [0], [0], [1], [0, 0, 1, 1], [], []>} : vector<16x32xf32>, vector<32x16xf32>, vector<16x16xf32> -> vector<16x16xf32>
    %cst_60 = arith.constant dense<0.000000e+00> : vector<16x32xf32>
    %94 = tpu.matmul %90, %49, %cst_60 {dimension_numbers = #tpu.dot_dimension_numbers<[1], [0], [0], [1], [0, 0, 1, 1], [], []>} : vector<16x32xf32>, vector<32x32xf32>, vector<16x32xf32> -> vector<16x32xf32>
    %cst_61 = arith.constant dense<0.000000e+00> : vector<16x16xf32>
    %95 = tpu.matmul %94, %91, %cst_61 {dimension_numbers = #tpu.dot_dimension_numbers<[1], [0], [0], [1], [0, 0, 1, 1], [], []>} : vector<16x32xf32>, vector<32x16xf32>, vector<16x16xf32> -> vector<16x16xf32>
    %96 = vector.extract_strided_slice %93 {offsets = [0, 0], sizes = [14, 16], strides = [1, 1]} : vector<16x16xf32> to vector<14x16xf32>
    %cst_62 = arith.constant 0.307801336 : f32
    %97 = vector.broadcast %cst_62 : f32 to vector<14x16xf32>
    %98 = arith.mulf %97, %96 : vector<14x16xf32>
    %99 = vector.extract_strided_slice %93 {offsets = [1, 0], sizes = [14, 16], strides = [1, 1]} : vector<16x16xf32> to vector<14x16xf32>
    %cst_63 = arith.constant 0.384397328 : f32
    %100 = vector.broadcast %cst_63 : f32 to vector<14x16xf32>
    %101 = arith.mulf %100, %99 : vector<14x16xf32>
    %102 = arith.addf %98, %101 : vector<14x16xf32>
    %103 = vector.extract_strided_slice %93 {offsets = [2, 0], sizes = [14, 16], strides = [1, 1]} : vector<16x16xf32> to vector<14x16xf32>
    %cst_64 = arith.constant 0.307801336 : f32
    %104 = vector.broadcast %cst_64 : f32 to vector<14x16xf32>
    %105 = arith.mulf %104, %103 : vector<14x16xf32>
    %106 = arith.addf %102, %105 : vector<14x16xf32>
    %107 = vector.extract_strided_slice %106 {offsets = [0, 0], sizes = [14, 14], strides = [1, 1]} : vector<14x16xf32> to vector<14x14xf32>
    %cst_65 = arith.constant 0.307801336 : f32
    %108 = vector.broadcast %cst_65 : f32 to vector<14x14xf32>
    %109 = arith.mulf %108, %107 : vector<14x14xf32>
    %110 = vector.extract_strided_slice %106 {offsets = [0, 1], sizes = [14, 14], strides = [1, 1]} : vector<14x16xf32> to vector<14x14xf32>
    %cst_66 = arith.constant 0.384397328 : f32
    %111 = vector.broadcast %cst_66 : f32 to vector<14x14xf32>
    %112 = arith.mulf %111, %110 : vector<14x14xf32>
    %113 = arith.addf %109, %112 : vector<14x14xf32>
    %114 = vector.extract_strided_slice %106 {offsets = [0, 2], sizes = [14, 14], strides = [1, 1]} : vector<14x16xf32> to vector<14x14xf32>
    %cst_67 = arith.constant 0.307801336 : f32
    %115 = vector.broadcast %cst_67 : f32 to vector<14x14xf32>
    %116 = arith.mulf %115, %114 : vector<14x14xf32>
    %117 = arith.addf %113, %116 : vector<14x14xf32>
    %118 = vector.extract_strided_slice %95 {offsets = [0, 0], sizes = [14, 16], strides = [1, 1]} : vector<16x16xf32> to vector<14x16xf32>
    %cst_68 = arith.constant 0.307801336 : f32
    %119 = vector.broadcast %cst_68 : f32 to vector<14x16xf32>
    %120 = arith.mulf %119, %118 : vector<14x16xf32>
    %121 = vector.extract_strided_slice %95 {offsets = [1, 0], sizes = [14, 16], strides = [1, 1]} : vector<16x16xf32> to vector<14x16xf32>
    %cst_69 = arith.constant 0.384397328 : f32
    %122 = vector.broadcast %cst_69 : f32 to vector<14x16xf32>
    %123 = arith.mulf %122, %121 : vector<14x16xf32>
    %124 = arith.addf %120, %123 : vector<14x16xf32>
    %125 = vector.extract_strided_slice %95 {offsets = [2, 0], sizes = [14, 16], strides = [1, 1]} : vector<16x16xf32> to vector<14x16xf32>
    %cst_70 = arith.constant 0.307801336 : f32
    %126 = vector.broadcast %cst_70 : f32 to vector<14x16xf32>
    %127 = arith.mulf %126, %125 : vector<14x16xf32>
    %128 = arith.addf %124, %127 : vector<14x16xf32>
    %129 = vector.extract_strided_slice %128 {offsets = [0, 0], sizes = [14, 14], strides = [1, 1]} : vector<14x16xf32> to vector<14x14xf32>
    %cst_71 = arith.constant 0.307801336 : f32
    %130 = vector.broadcast %cst_71 : f32 to vector<14x14xf32>
    %131 = arith.mulf %130, %129 : vector<14x14xf32>
    %132 = vector.extract_strided_slice %128 {offsets = [0, 1], sizes = [14, 14], strides = [1, 1]} : vector<14x16xf32> to vector<14x14xf32>
    %cst_72 = arith.constant 0.384397328 : f32
    %133 = vector.broadcast %cst_72 : f32 to vector<14x14xf32>
    %134 = arith.mulf %133, %132 : vector<14x14xf32>
    %135 = arith.addf %131, %134 : vector<14x14xf32>
    %136 = vector.extract_strided_slice %128 {offsets = [0, 2], sizes = [14, 14], strides = [1, 1]} : vector<14x16xf32> to vector<14x14xf32>
    %cst_73 = arith.constant 0.307801336 : f32
    %137 = vector.broadcast %cst_73 : f32 to vector<14x14xf32>
    %138 = arith.mulf %137, %136 : vector<14x14xf32>
    %139 = arith.addf %135, %138 : vector<14x14xf32>
    %140 = arith.mulf %117, %117 : vector<14x14xf32>
    %141 = arith.mulf %139, %139 : vector<14x14xf32>
    %142 = arith.mulf %117, %139 : vector<14x14xf32>
    %143 = arith.mulf %93, %95 : vector<16x16xf32>
    %144 = vector.extract_strided_slice %143 {offsets = [0, 0], sizes = [14, 16], strides = [1, 1]} : vector<16x16xf32> to vector<14x16xf32>
    %cst_74 = arith.constant 0.307801336 : f32
    %145 = vector.broadcast %cst_74 : f32 to vector<14x16xf32>
    %146 = arith.mulf %145, %144 : vector<14x16xf32>
    %147 = vector.extract_strided_slice %143 {offsets = [1, 0], sizes = [14, 16], strides = [1, 1]} : vector<16x16xf32> to vector<14x16xf32>
    %cst_75 = arith.constant 0.384397328 : f32
    %148 = vector.broadcast %cst_75 : f32 to vector<14x16xf32>
    %149 = arith.mulf %148, %147 : vector<14x16xf32>
    %150 = arith.addf %146, %149 : vector<14x16xf32>
    %151 = vector.extract_strided_slice %143 {offsets = [2, 0], sizes = [14, 16], strides = [1, 1]} : vector<16x16xf32> to vector<14x16xf32>
    %cst_76 = arith.constant 0.307801336 : f32
    %152 = vector.broadcast %cst_76 : f32 to vector<14x16xf32>
    %153 = arith.mulf %152, %151 : vector<14x16xf32>
    %154 = arith.addf %150, %153 : vector<14x16xf32>
    %155 = vector.extract_strided_slice %154 {offsets = [0, 0], sizes = [14, 14], strides = [1, 1]} : vector<14x16xf32> to vector<14x14xf32>
    %cst_77 = arith.constant 0.307801336 : f32
    %156 = vector.broadcast %cst_77 : f32 to vector<14x14xf32>
    %157 = arith.mulf %156, %155 : vector<14x14xf32>
    %158 = vector.extract_strided_slice %154 {offsets = [0, 1], sizes = [14, 14], strides = [1, 1]} : vector<14x16xf32> to vector<14x14xf32>
    %cst_78 = arith.constant 0.384397328 : f32
    %159 = vector.broadcast %cst_78 : f32 to vector<14x14xf32>
    %160 = arith.mulf %159, %158 : vector<14x14xf32>
    %161 = arith.addf %157, %160 : vector<14x14xf32>
    %162 = vector.extract_strided_slice %154 {offsets = [0, 2], sizes = [14, 14], strides = [1, 1]} : vector<14x16xf32> to vector<14x14xf32>
    %cst_79 = arith.constant 0.307801336 : f32
    %163 = vector.broadcast %cst_79 : f32 to vector<14x14xf32>
    %164 = arith.mulf %163, %162 : vector<14x14xf32>
    %165 = arith.addf %161, %164 : vector<14x14xf32>
    %166 = arith.subf %165, %142 : vector<14x14xf32>
    %cst_80 = arith.constant 2.000000e+00 : f32
    %167 = vector.broadcast %cst_80 : f32 to vector<14x14xf32>
    %168 = arith.mulf %167, %166 : vector<14x14xf32>
    %cst_81 = arith.constant 5.852250e+01 : f32
    %169 = vector.broadcast %cst_81 : f32 to vector<14x14xf32>
    %170 = arith.addf %168, %169 : vector<14x14xf32>
    %171 = arith.mulf %93, %93 : vector<16x16xf32>
    %172 = vector.extract_strided_slice %171 {offsets = [0, 0], sizes = [14, 16], strides = [1, 1]} : vector<16x16xf32> to vector<14x16xf32>
    %cst_82 = arith.constant 0.307801336 : f32
    %173 = vector.broadcast %cst_82 : f32 to vector<14x16xf32>
    %174 = arith.mulf %173, %172 : vector<14x16xf32>
    %175 = vector.extract_strided_slice %171 {offsets = [1, 0], sizes = [14, 16], strides = [1, 1]} : vector<16x16xf32> to vector<14x16xf32>
    %cst_83 = arith.constant 0.384397328 : f32
    %176 = vector.broadcast %cst_83 : f32 to vector<14x16xf32>
    %177 = arith.mulf %176, %175 : vector<14x16xf32>
    %178 = arith.addf %174, %177 : vector<14x16xf32>
    %179 = vector.extract_strided_slice %171 {offsets = [2, 0], sizes = [14, 16], strides = [1, 1]} : vector<16x16xf32> to vector<14x16xf32>
    %cst_84 = arith.constant 0.307801336 : f32
    %180 = vector.broadcast %cst_84 : f32 to vector<14x16xf32>
    %181 = arith.mulf %180, %179 : vector<14x16xf32>
    %182 = arith.addf %178, %181 : vector<14x16xf32>
    %183 = vector.extract_strided_slice %182 {offsets = [0, 0], sizes = [14, 14], strides = [1, 1]} : vector<14x16xf32> to vector<14x14xf32>
    %cst_85 = arith.constant 0.307801336 : f32
    %184 = vector.broadcast %cst_85 : f32 to vector<14x14xf32>
    %185 = arith.mulf %184, %183 : vector<14x14xf32>
    %186 = vector.extract_strided_slice %182 {offsets = [0, 1], sizes = [14, 14], strides = [1, 1]} : vector<14x16xf32> to vector<14x14xf32>
    %cst_86 = arith.constant 0.384397328 : f32
    %187 = vector.broadcast %cst_86 : f32 to vector<14x14xf32>
    %188 = arith.mulf %187, %186 : vector<14x14xf32>
    %189 = arith.addf %185, %188 : vector<14x14xf32>
    %190 = vector.extract_strided_slice %182 {offsets = [0, 2], sizes = [14, 14], strides = [1, 1]} : vector<14x16xf32> to vector<14x14xf32>
    %cst_87 = arith.constant 0.307801336 : f32
    %191 = vector.broadcast %cst_87 : f32 to vector<14x14xf32>
    %192 = arith.mulf %191, %190 : vector<14x14xf32>
    %193 = arith.addf %189, %192 : vector<14x14xf32>
    %194 = arith.subf %193, %140 : vector<14x14xf32>
    %195 = arith.mulf %95, %95 : vector<16x16xf32>
    %196 = vector.extract_strided_slice %195 {offsets = [0, 0], sizes = [14, 16], strides = [1, 1]} : vector<16x16xf32> to vector<14x16xf32>
    %cst_88 = arith.constant 0.307801336 : f32
    %197 = vector.broadcast %cst_88 : f32 to vector<14x16xf32>
    %198 = arith.mulf %197, %196 : vector<14x16xf32>
    %199 = vector.extract_strided_slice %195 {offsets = [1, 0], sizes = [14, 16], strides = [1, 1]} : vector<16x16xf32> to vector<14x16xf32>
    %cst_89 = arith.constant 0.384397328 : f32
    %200 = vector.broadcast %cst_89 : f32 to vector<14x16xf32>
    %201 = arith.mulf %200, %199 : vector<14x16xf32>
    %202 = arith.addf %198, %201 : vector<14x16xf32>
    %203 = vector.extract_strided_slice %195 {offsets = [2, 0], sizes = [14, 16], strides = [1, 1]} : vector<16x16xf32> to vector<14x16xf32>
    %cst_90 = arith.constant 0.307801336 : f32
    %204 = vector.broadcast %cst_90 : f32 to vector<14x16xf32>
    %205 = arith.mulf %204, %203 : vector<14x16xf32>
    %206 = arith.addf %202, %205 : vector<14x16xf32>
    %207 = vector.extract_strided_slice %206 {offsets = [0, 0], sizes = [14, 14], strides = [1, 1]} : vector<14x16xf32> to vector<14x14xf32>
    %cst_91 = arith.constant 0.307801336 : f32
    %208 = vector.broadcast %cst_91 : f32 to vector<14x14xf32>
    %209 = arith.mulf %208, %207 : vector<14x14xf32>
    %210 = vector.extract_strided_slice %206 {offsets = [0, 1], sizes = [14, 14], strides = [1, 1]} : vector<14x16xf32> to vector<14x14xf32>
    %cst_92 = arith.constant 0.384397328 : f32
    %211 = vector.broadcast %cst_92 : f32 to vector<14x14xf32>
    %212 = arith.mulf %211, %210 : vector<14x14xf32>
    %213 = arith.addf %209, %212 : vector<14x14xf32>
    %214 = vector.extract_strided_slice %206 {offsets = [0, 2], sizes = [14, 14], strides = [1, 1]} : vector<14x16xf32> to vector<14x14xf32>
    %cst_93 = arith.constant 0.307801336 : f32
    %215 = vector.broadcast %cst_93 : f32 to vector<14x14xf32>
    %216 = arith.mulf %215, %214 : vector<14x14xf32>
    %217 = arith.addf %213, %216 : vector<14x14xf32>
    %218 = arith.subf %217, %141 : vector<14x14xf32>
    %219 = arith.addf %194, %218 : vector<14x14xf32>
    %cst_94 = arith.constant 5.852250e+01 : f32
    %220 = vector.broadcast %cst_94 : f32 to vector<14x14xf32>
    %221 = arith.addf %219, %220 : vector<14x14xf32>
    %222 = tpu.reciprocal %221 {approx = true} : vector<14x14xf32> -> vector<14x14xf32>
    %223 = arith.mulf %221, %222 : vector<14x14xf32>
    %cst_95 = arith.constant 2.000000e+00 : f32
    %224 = vector.broadcast %cst_95 : f32 to vector<14x14xf32>
    %225 = arith.subf %224, %223 : vector<14x14xf32>
    %226 = arith.mulf %222, %225 : vector<14x14xf32>
    %227 = arith.mulf %170, %226 : vector<14x14xf32>
    %cst_96 = arith.constant dense<0.000000e+00> : vector<14xf32>
    %228 = vector.multi_reduction <add>, %227, %cst_96 [0] : vector<14x14xf32> to vector<14xf32>
    %229 = vector.shape_cast %228 : vector<14xf32> to vector<1x14xf32>
    %cst_97 = arith.constant dense<0.000000e+00> : vector<1xf32>
    %230 = vector.multi_reduction <add>, %229, %cst_97 [1] : vector<1x14xf32> to vector<1xf32>
    %231 = vector.shape_cast %230 : vector<1xf32> to vector<1x1xf32>
    %cst_98 = arith.constant 0.00510204071 : f32
    %232 = vector.broadcast %cst_98 : f32 to vector<1x1xf32>
    %233 = arith.mulf %231, %232 : vector<1x1xf32>
    %c0_99 = arith.constant 0 : index
    %c0_100 = arith.constant 0 : index
    %234 = vector.load %arg11[%c0_99, %c0_100] : memref<8x16xf32, #tpu.memory_space<vmem>>, vector<8x16xf32>
    %c0_101 = arith.constant 0 : index
    %c0_102 = arith.constant 0 : index
    %235 = vector.load %arg12[%c0_101, %c0_102] : memref<16x8xf32, #tpu.memory_space<vmem>>, vector<16x8xf32>
    %cst_103 = arith.constant dense<0.000000e+00> : vector<8x16xf32>
    %236 = tpu.matmul %234, %93, %cst_103 {dimension_numbers = #tpu.dot_dimension_numbers<[1], [0], [0], [1], [0, 0, 1, 1], [], []>} : vector<8x16xf32>, vector<16x16xf32>, vector<8x16xf32> -> vector<8x16xf32>
    %cst_104 = arith.constant dense<0.000000e+00> : vector<8x8xf32>
    %237 = tpu.matmul %236, %235, %cst_104 {dimension_numbers = #tpu.dot_dimension_numbers<[1], [0], [0], [1], [0, 0, 1, 1], [], []>} : vector<8x16xf32>, vector<16x8xf32>, vector<8x8xf32> -> vector<8x8xf32>
    %cst_105 = arith.constant dense<0.000000e+00> : vector<8x16xf32>
    %238 = tpu.matmul %234, %95, %cst_105 {dimension_numbers = #tpu.dot_dimension_numbers<[1], [0], [0], [1], [0, 0, 1, 1], [], []>} : vector<8x16xf32>, vector<16x16xf32>, vector<8x16xf32> -> vector<8x16xf32>
    %cst_106 = arith.constant dense<0.000000e+00> : vector<8x8xf32>
    %239 = tpu.matmul %238, %235, %cst_106 {dimension_numbers = #tpu.dot_dimension_numbers<[1], [0], [0], [1], [0, 0, 1, 1], [], []>} : vector<8x16xf32>, vector<16x8xf32>, vector<8x8xf32> -> vector<8x8xf32>
    %240 = vector.extract_strided_slice %237 {offsets = [0, 0], sizes = [6, 8], strides = [1, 1]} : vector<8x8xf32> to vector<6x8xf32>
    %cst_107 = arith.constant 0.307801336 : f32
    %241 = vector.broadcast %cst_107 : f32 to vector<6x8xf32>
    %242 = arith.mulf %241, %240 : vector<6x8xf32>
    %243 = vector.extract_strided_slice %237 {offsets = [1, 0], sizes = [6, 8], strides = [1, 1]} : vector<8x8xf32> to vector<6x8xf32>
    %cst_108 = arith.constant 0.384397328 : f32
    %244 = vector.broadcast %cst_108 : f32 to vector<6x8xf32>
    %245 = arith.mulf %244, %243 : vector<6x8xf32>
    %246 = arith.addf %242, %245 : vector<6x8xf32>
    %247 = vector.extract_strided_slice %237 {offsets = [2, 0], sizes = [6, 8], strides = [1, 1]} : vector<8x8xf32> to vector<6x8xf32>
    %cst_109 = arith.constant 0.307801336 : f32
    %248 = vector.broadcast %cst_109 : f32 to vector<6x8xf32>
    %249 = arith.mulf %248, %247 : vector<6x8xf32>
    %250 = arith.addf %246, %249 : vector<6x8xf32>
    %251 = vector.extract_strided_slice %250 {offsets = [0, 0], sizes = [6, 6], strides = [1, 1]} : vector<6x8xf32> to vector<6x6xf32>
    %cst_110 = arith.constant 0.307801336 : f32
    %252 = vector.broadcast %cst_110 : f32 to vector<6x6xf32>
    %253 = arith.mulf %252, %251 : vector<6x6xf32>
    %254 = vector.extract_strided_slice %250 {offsets = [0, 1], sizes = [6, 6], strides = [1, 1]} : vector<6x8xf32> to vector<6x6xf32>
    %cst_111 = arith.constant 0.384397328 : f32
    %255 = vector.broadcast %cst_111 : f32 to vector<6x6xf32>
    %256 = arith.mulf %255, %254 : vector<6x6xf32>
    %257 = arith.addf %253, %256 : vector<6x6xf32>
    %258 = vector.extract_strided_slice %250 {offsets = [0, 2], sizes = [6, 6], strides = [1, 1]} : vector<6x8xf32> to vector<6x6xf32>
    %cst_112 = arith.constant 0.307801336 : f32
    %259 = vector.broadcast %cst_112 : f32 to vector<6x6xf32>
    %260 = arith.mulf %259, %258 : vector<6x6xf32>
    %261 = arith.addf %257, %260 : vector<6x6xf32>
    %262 = vector.extract_strided_slice %239 {offsets = [0, 0], sizes = [6, 8], strides = [1, 1]} : vector<8x8xf32> to vector<6x8xf32>
    %cst_113 = arith.constant 0.307801336 : f32
    %263 = vector.broadcast %cst_113 : f32 to vector<6x8xf32>
    %264 = arith.mulf %263, %262 : vector<6x8xf32>
    %265 = vector.extract_strided_slice %239 {offsets = [1, 0], sizes = [6, 8], strides = [1, 1]} : vector<8x8xf32> to vector<6x8xf32>
    %cst_114 = arith.constant 0.384397328 : f32
    %266 = vector.broadcast %cst_114 : f32 to vector<6x8xf32>
    %267 = arith.mulf %266, %265 : vector<6x8xf32>
    %268 = arith.addf %264, %267 : vector<6x8xf32>
    %269 = vector.extract_strided_slice %239 {offsets = [2, 0], sizes = [6, 8], strides = [1, 1]} : vector<8x8xf32> to vector<6x8xf32>
    %cst_115 = arith.constant 0.307801336 : f32
    %270 = vector.broadcast %cst_115 : f32 to vector<6x8xf32>
    %271 = arith.mulf %270, %269 : vector<6x8xf32>
    %272 = arith.addf %268, %271 : vector<6x8xf32>
    %273 = vector.extract_strided_slice %272 {offsets = [0, 0], sizes = [6, 6], strides = [1, 1]} : vector<6x8xf32> to vector<6x6xf32>
    %cst_116 = arith.constant 0.307801336 : f32
    %274 = vector.broadcast %cst_116 : f32 to vector<6x6xf32>
    %275 = arith.mulf %274, %273 : vector<6x6xf32>
    %276 = vector.extract_strided_slice %272 {offsets = [0, 1], sizes = [6, 6], strides = [1, 1]} : vector<6x8xf32> to vector<6x6xf32>
    %cst_117 = arith.constant 0.384397328 : f32
    %277 = vector.broadcast %cst_117 : f32 to vector<6x6xf32>
    %278 = arith.mulf %277, %276 : vector<6x6xf32>
    %279 = arith.addf %275, %278 : vector<6x6xf32>
    %280 = vector.extract_strided_slice %272 {offsets = [0, 2], sizes = [6, 6], strides = [1, 1]} : vector<6x8xf32> to vector<6x6xf32>
    %cst_118 = arith.constant 0.307801336 : f32
    %281 = vector.broadcast %cst_118 : f32 to vector<6x6xf32>
    %282 = arith.mulf %281, %280 : vector<6x6xf32>
    %283 = arith.addf %279, %282 : vector<6x6xf32>
    %284 = arith.mulf %261, %261 : vector<6x6xf32>
    %285 = arith.mulf %283, %283 : vector<6x6xf32>
    %286 = arith.mulf %261, %283 : vector<6x6xf32>
    %287 = arith.mulf %237, %239 : vector<8x8xf32>
    %288 = vector.extract_strided_slice %287 {offsets = [0, 0], sizes = [6, 8], strides = [1, 1]} : vector<8x8xf32> to vector<6x8xf32>
    %cst_119 = arith.constant 0.307801336 : f32
    %289 = vector.broadcast %cst_119 : f32 to vector<6x8xf32>
    %290 = arith.mulf %289, %288 : vector<6x8xf32>
    %291 = vector.extract_strided_slice %287 {offsets = [1, 0], sizes = [6, 8], strides = [1, 1]} : vector<8x8xf32> to vector<6x8xf32>
    %cst_120 = arith.constant 0.384397328 : f32
    %292 = vector.broadcast %cst_120 : f32 to vector<6x8xf32>
    %293 = arith.mulf %292, %291 : vector<6x8xf32>
    %294 = arith.addf %290, %293 : vector<6x8xf32>
    %295 = vector.extract_strided_slice %287 {offsets = [2, 0], sizes = [6, 8], strides = [1, 1]} : vector<8x8xf32> to vector<6x8xf32>
    %cst_121 = arith.constant 0.307801336 : f32
    %296 = vector.broadcast %cst_121 : f32 to vector<6x8xf32>
    %297 = arith.mulf %296, %295 : vector<6x8xf32>
    %298 = arith.addf %294, %297 : vector<6x8xf32>
    %299 = vector.extract_strided_slice %298 {offsets = [0, 0], sizes = [6, 6], strides = [1, 1]} : vector<6x8xf32> to vector<6x6xf32>
    %cst_122 = arith.constant 0.307801336 : f32
    %300 = vector.broadcast %cst_122 : f32 to vector<6x6xf32>
    %301 = arith.mulf %300, %299 : vector<6x6xf32>
    %302 = vector.extract_strided_slice %298 {offsets = [0, 1], sizes = [6, 6], strides = [1, 1]} : vector<6x8xf32> to vector<6x6xf32>
    %cst_123 = arith.constant 0.384397328 : f32
    %303 = vector.broadcast %cst_123 : f32 to vector<6x6xf32>
    %304 = arith.mulf %303, %302 : vector<6x6xf32>
    %305 = arith.addf %301, %304 : vector<6x6xf32>
    %306 = vector.extract_strided_slice %298 {offsets = [0, 2], sizes = [6, 6], strides = [1, 1]} : vector<6x8xf32> to vector<6x6xf32>
    %cst_124 = arith.constant 0.307801336 : f32
    %307 = vector.broadcast %cst_124 : f32 to vector<6x6xf32>
    %308 = arith.mulf %307, %306 : vector<6x6xf32>
    %309 = arith.addf %305, %308 : vector<6x6xf32>
    %310 = arith.subf %309, %286 : vector<6x6xf32>
    %cst_125 = arith.constant 2.000000e+00 : f32
    %311 = vector.broadcast %cst_125 : f32 to vector<6x6xf32>
    %312 = arith.mulf %311, %310 : vector<6x6xf32>
    %cst_126 = arith.constant 5.852250e+01 : f32
    %313 = vector.broadcast %cst_126 : f32 to vector<6x6xf32>
    %314 = arith.addf %312, %313 : vector<6x6xf32>
    %315 = arith.mulf %237, %237 : vector<8x8xf32>
    %316 = vector.extract_strided_slice %315 {offsets = [0, 0], sizes = [6, 8], strides = [1, 1]} : vector<8x8xf32> to vector<6x8xf32>
    %cst_127 = arith.constant 0.307801336 : f32
    %317 = vector.broadcast %cst_127 : f32 to vector<6x8xf32>
    %318 = arith.mulf %317, %316 : vector<6x8xf32>
    %319 = vector.extract_strided_slice %315 {offsets = [1, 0], sizes = [6, 8], strides = [1, 1]} : vector<8x8xf32> to vector<6x8xf32>
    %cst_128 = arith.constant 0.384397328 : f32
    %320 = vector.broadcast %cst_128 : f32 to vector<6x8xf32>
    %321 = arith.mulf %320, %319 : vector<6x8xf32>
    %322 = arith.addf %318, %321 : vector<6x8xf32>
    %323 = vector.extract_strided_slice %315 {offsets = [2, 0], sizes = [6, 8], strides = [1, 1]} : vector<8x8xf32> to vector<6x8xf32>
    %cst_129 = arith.constant 0.307801336 : f32
    %324 = vector.broadcast %cst_129 : f32 to vector<6x8xf32>
    %325 = arith.mulf %324, %323 : vector<6x8xf32>
    %326 = arith.addf %322, %325 : vector<6x8xf32>
    %327 = vector.extract_strided_slice %326 {offsets = [0, 0], sizes = [6, 6], strides = [1, 1]} : vector<6x8xf32> to vector<6x6xf32>
    %cst_130 = arith.constant 0.307801336 : f32
    %328 = vector.broadcast %cst_130 : f32 to vector<6x6xf32>
    %329 = arith.mulf %328, %327 : vector<6x6xf32>
    %330 = vector.extract_strided_slice %326 {offsets = [0, 1], sizes = [6, 6], strides = [1, 1]} : vector<6x8xf32> to vector<6x6xf32>
    %cst_131 = arith.constant 0.384397328 : f32
    %331 = vector.broadcast %cst_131 : f32 to vector<6x6xf32>
    %332 = arith.mulf %331, %330 : vector<6x6xf32>
    %333 = arith.addf %329, %332 : vector<6x6xf32>
    %334 = vector.extract_strided_slice %326 {offsets = [0, 2], sizes = [6, 6], strides = [1, 1]} : vector<6x8xf32> to vector<6x6xf32>
    %cst_132 = arith.constant 0.307801336 : f32
    %335 = vector.broadcast %cst_132 : f32 to vector<6x6xf32>
    %336 = arith.mulf %335, %334 : vector<6x6xf32>
    %337 = arith.addf %333, %336 : vector<6x6xf32>
    %338 = arith.subf %337, %284 : vector<6x6xf32>
    %339 = arith.mulf %239, %239 : vector<8x8xf32>
    %340 = vector.extract_strided_slice %339 {offsets = [0, 0], sizes = [6, 8], strides = [1, 1]} : vector<8x8xf32> to vector<6x8xf32>
    %cst_133 = arith.constant 0.307801336 : f32
    %341 = vector.broadcast %cst_133 : f32 to vector<6x8xf32>
    %342 = arith.mulf %341, %340 : vector<6x8xf32>
    %343 = vector.extract_strided_slice %339 {offsets = [1, 0], sizes = [6, 8], strides = [1, 1]} : vector<8x8xf32> to vector<6x8xf32>
    %cst_134 = arith.constant 0.384397328 : f32
    %344 = vector.broadcast %cst_134 : f32 to vector<6x8xf32>
    %345 = arith.mulf %344, %343 : vector<6x8xf32>
    %346 = arith.addf %342, %345 : vector<6x8xf32>
    %347 = vector.extract_strided_slice %339 {offsets = [2, 0], sizes = [6, 8], strides = [1, 1]} : vector<8x8xf32> to vector<6x8xf32>
    %cst_135 = arith.constant 0.307801336 : f32
    %348 = vector.broadcast %cst_135 : f32 to vector<6x8xf32>
    %349 = arith.mulf %348, %347 : vector<6x8xf32>
    %350 = arith.addf %346, %349 : vector<6x8xf32>
    %351 = vector.extract_strided_slice %350 {offsets = [0, 0], sizes = [6, 6], strides = [1, 1]} : vector<6x8xf32> to vector<6x6xf32>
    %cst_136 = arith.constant 0.307801336 : f32
    %352 = vector.broadcast %cst_136 : f32 to vector<6x6xf32>
    %353 = arith.mulf %352, %351 : vector<6x6xf32>
    %354 = vector.extract_strided_slice %350 {offsets = [0, 1], sizes = [6, 6], strides = [1, 1]} : vector<6x8xf32> to vector<6x6xf32>
    %cst_137 = arith.constant 0.384397328 : f32
    %355 = vector.broadcast %cst_137 : f32 to vector<6x6xf32>
    %356 = arith.mulf %355, %354 : vector<6x6xf32>
    %357 = arith.addf %353, %356 : vector<6x6xf32>
    %358 = vector.extract_strided_slice %350 {offsets = [0, 2], sizes = [6, 6], strides = [1, 1]} : vector<6x8xf32> to vector<6x6xf32>
    %cst_138 = arith.constant 0.307801336 : f32
    %359 = vector.broadcast %cst_138 : f32 to vector<6x6xf32>
    %360 = arith.mulf %359, %358 : vector<6x6xf32>
    %361 = arith.addf %357, %360 : vector<6x6xf32>
    %362 = arith.subf %361, %285 : vector<6x6xf32>
    %363 = arith.addf %338, %362 : vector<6x6xf32>
    %cst_139 = arith.constant 5.852250e+01 : f32
    %364 = vector.broadcast %cst_139 : f32 to vector<6x6xf32>
    %365 = arith.addf %363, %364 : vector<6x6xf32>
    %366 = tpu.reciprocal %365 {approx = true} : vector<6x6xf32> -> vector<6x6xf32>
    %367 = arith.mulf %365, %366 : vector<6x6xf32>
    %cst_140 = arith.constant 2.000000e+00 : f32
    %368 = vector.broadcast %cst_140 : f32 to vector<6x6xf32>
    %369 = arith.subf %368, %367 : vector<6x6xf32>
    %370 = arith.mulf %366, %369 : vector<6x6xf32>
    %371 = arith.mulf %314, %370 : vector<6x6xf32>
    %cst_141 = arith.constant dense<0.000000e+00> : vector<6xf32>
    %372 = vector.multi_reduction <add>, %371, %cst_141 [0] : vector<6x6xf32> to vector<6xf32>
    %373 = vector.shape_cast %372 : vector<6xf32> to vector<1x6xf32>
    %cst_142 = arith.constant dense<0.000000e+00> : vector<1xf32>
    %374 = vector.multi_reduction <add>, %373, %cst_142 [1] : vector<1x6xf32> to vector<1xf32>
    %375 = vector.shape_cast %374 : vector<1xf32> to vector<1x1xf32>
    %cst_143 = arith.constant 0.027777778 : f32
    %376 = vector.broadcast %cst_143 : f32 to vector<1x1xf32>
    %377 = arith.mulf %375, %376 : vector<1x1xf32>
    %c0_144 = arith.constant 0 : index
    %c0_145 = arith.constant 0 : index
    %378 = vector.load %arg13[%c0_144, %c0_145] : memref<4x8xf32, #tpu.memory_space<vmem>>, vector<4x8xf32>
    %c0_146 = arith.constant 0 : index
    %c0_147 = arith.constant 0 : index
    %379 = vector.load %arg14[%c0_146, %c0_147] : memref<8x4xf32, #tpu.memory_space<vmem>>, vector<8x4xf32>
    %cst_148 = arith.constant dense<0.000000e+00> : vector<4x8xf32>
    %380 = tpu.matmul %378, %237, %cst_148 {dimension_numbers = #tpu.dot_dimension_numbers<[1], [0], [0], [1], [0, 0, 1, 1], [], []>} : vector<4x8xf32>, vector<8x8xf32>, vector<4x8xf32> -> vector<4x8xf32>
    %cst_149 = arith.constant dense<0.000000e+00> : vector<4x4xf32>
    %381 = tpu.matmul %380, %379, %cst_149 {dimension_numbers = #tpu.dot_dimension_numbers<[1], [0], [0], [1], [0, 0, 1, 1], [], []>} : vector<4x8xf32>, vector<8x4xf32>, vector<4x4xf32> -> vector<4x4xf32>
    %cst_150 = arith.constant dense<0.000000e+00> : vector<4x8xf32>
    %382 = tpu.matmul %378, %239, %cst_150 {dimension_numbers = #tpu.dot_dimension_numbers<[1], [0], [0], [1], [0, 0, 1, 1], [], []>} : vector<4x8xf32>, vector<8x8xf32>, vector<4x8xf32> -> vector<4x8xf32>
    %cst_151 = arith.constant dense<0.000000e+00> : vector<4x4xf32>
    %383 = tpu.matmul %382, %379, %cst_151 {dimension_numbers = #tpu.dot_dimension_numbers<[1], [0], [0], [1], [0, 0, 1, 1], [], []>} : vector<4x8xf32>, vector<8x4xf32>, vector<4x4xf32> -> vector<4x4xf32>
    %384 = vector.extract_strided_slice %381 {offsets = [0, 0], sizes = [2, 4], strides = [1, 1]} : vector<4x4xf32> to vector<2x4xf32>
    %cst_152 = arith.constant 0.307801336 : f32
    %385 = vector.broadcast %cst_152 : f32 to vector<2x4xf32>
    %386 = arith.mulf %385, %384 : vector<2x4xf32>
    %387 = vector.extract_strided_slice %381 {offsets = [1, 0], sizes = [2, 4], strides = [1, 1]} : vector<4x4xf32> to vector<2x4xf32>
    %cst_153 = arith.constant 0.384397328 : f32
    %388 = vector.broadcast %cst_153 : f32 to vector<2x4xf32>
    %389 = arith.mulf %388, %387 : vector<2x4xf32>
    %390 = arith.addf %386, %389 : vector<2x4xf32>
    %391 = vector.extract_strided_slice %381 {offsets = [2, 0], sizes = [2, 4], strides = [1, 1]} : vector<4x4xf32> to vector<2x4xf32>
    %cst_154 = arith.constant 0.307801336 : f32
    %392 = vector.broadcast %cst_154 : f32 to vector<2x4xf32>
    %393 = arith.mulf %392, %391 : vector<2x4xf32>
    %394 = arith.addf %390, %393 : vector<2x4xf32>
    %395 = vector.extract_strided_slice %394 {offsets = [0, 0], sizes = [2, 2], strides = [1, 1]} : vector<2x4xf32> to vector<2x2xf32>
    %cst_155 = arith.constant 0.307801336 : f32
    %396 = vector.broadcast %cst_155 : f32 to vector<2x2xf32>
    %397 = arith.mulf %396, %395 : vector<2x2xf32>
    %398 = vector.extract_strided_slice %394 {offsets = [0, 1], sizes = [2, 2], strides = [1, 1]} : vector<2x4xf32> to vector<2x2xf32>
    %cst_156 = arith.constant 0.384397328 : f32
    %399 = vector.broadcast %cst_156 : f32 to vector<2x2xf32>
    %400 = arith.mulf %399, %398 : vector<2x2xf32>
    %401 = arith.addf %397, %400 : vector<2x2xf32>
    %402 = vector.extract_strided_slice %394 {offsets = [0, 2], sizes = [2, 2], strides = [1, 1]} : vector<2x4xf32> to vector<2x2xf32>
    %cst_157 = arith.constant 0.307801336 : f32
    %403 = vector.broadcast %cst_157 : f32 to vector<2x2xf32>
    %404 = arith.mulf %403, %402 : vector<2x2xf32>
    %405 = arith.addf %401, %404 : vector<2x2xf32>
    %406 = vector.extract_strided_slice %383 {offsets = [0, 0], sizes = [2, 4], strides = [1, 1]} : vector<4x4xf32> to vector<2x4xf32>
    %cst_158 = arith.constant 0.307801336 : f32
    %407 = vector.broadcast %cst_158 : f32 to vector<2x4xf32>
    %408 = arith.mulf %407, %406 : vector<2x4xf32>
    %409 = vector.extract_strided_slice %383 {offsets = [1, 0], sizes = [2, 4], strides = [1, 1]} : vector<4x4xf32> to vector<2x4xf32>
    %cst_159 = arith.constant 0.384397328 : f32
    %410 = vector.broadcast %cst_159 : f32 to vector<2x4xf32>
    %411 = arith.mulf %410, %409 : vector<2x4xf32>
    %412 = arith.addf %408, %411 : vector<2x4xf32>
    %413 = vector.extract_strided_slice %383 {offsets = [2, 0], sizes = [2, 4], strides = [1, 1]} : vector<4x4xf32> to vector<2x4xf32>
    %cst_160 = arith.constant 0.307801336 : f32
    %414 = vector.broadcast %cst_160 : f32 to vector<2x4xf32>
    %415 = arith.mulf %414, %413 : vector<2x4xf32>
    %416 = arith.addf %412, %415 : vector<2x4xf32>
    %417 = vector.extract_strided_slice %416 {offsets = [0, 0], sizes = [2, 2], strides = [1, 1]} : vector<2x4xf32> to vector<2x2xf32>
    %cst_161 = arith.constant 0.307801336 : f32
    %418 = vector.broadcast %cst_161 : f32 to vector<2x2xf32>
    %419 = arith.mulf %418, %417 : vector<2x2xf32>
    %420 = vector.extract_strided_slice %416 {offsets = [0, 1], sizes = [2, 2], strides = [1, 1]} : vector<2x4xf32> to vector<2x2xf32>
    %cst_162 = arith.constant 0.384397328 : f32
    %421 = vector.broadcast %cst_162 : f32 to vector<2x2xf32>
    %422 = arith.mulf %421, %420 : vector<2x2xf32>
    %423 = arith.addf %419, %422 : vector<2x2xf32>
    %424 = vector.extract_strided_slice %416 {offsets = [0, 2], sizes = [2, 2], strides = [1, 1]} : vector<2x4xf32> to vector<2x2xf32>
    %cst_163 = arith.constant 0.307801336 : f32
    %425 = vector.broadcast %cst_163 : f32 to vector<2x2xf32>
    %426 = arith.mulf %425, %424 : vector<2x2xf32>
    %427 = arith.addf %423, %426 : vector<2x2xf32>
    %428 = arith.mulf %405, %405 : vector<2x2xf32>
    %429 = arith.mulf %427, %427 : vector<2x2xf32>
    %430 = arith.mulf %405, %427 : vector<2x2xf32>
    %431 = arith.mulf %381, %383 : vector<4x4xf32>
    %432 = vector.extract_strided_slice %431 {offsets = [0, 0], sizes = [2, 4], strides = [1, 1]} : vector<4x4xf32> to vector<2x4xf32>
    %cst_164 = arith.constant 0.307801336 : f32
    %433 = vector.broadcast %cst_164 : f32 to vector<2x4xf32>
    %434 = arith.mulf %433, %432 : vector<2x4xf32>
    %435 = vector.extract_strided_slice %431 {offsets = [1, 0], sizes = [2, 4], strides = [1, 1]} : vector<4x4xf32> to vector<2x4xf32>
    %cst_165 = arith.constant 0.384397328 : f32
    %436 = vector.broadcast %cst_165 : f32 to vector<2x4xf32>
    %437 = arith.mulf %436, %435 : vector<2x4xf32>
    %438 = arith.addf %434, %437 : vector<2x4xf32>
    %439 = vector.extract_strided_slice %431 {offsets = [2, 0], sizes = [2, 4], strides = [1, 1]} : vector<4x4xf32> to vector<2x4xf32>
    %cst_166 = arith.constant 0.307801336 : f32
    %440 = vector.broadcast %cst_166 : f32 to vector<2x4xf32>
    %441 = arith.mulf %440, %439 : vector<2x4xf32>
    %442 = arith.addf %438, %441 : vector<2x4xf32>
    %443 = vector.extract_strided_slice %442 {offsets = [0, 0], sizes = [2, 2], strides = [1, 1]} : vector<2x4xf32> to vector<2x2xf32>
    %cst_167 = arith.constant 0.307801336 : f32
    %444 = vector.broadcast %cst_167 : f32 to vector<2x2xf32>
    %445 = arith.mulf %444, %443 : vector<2x2xf32>
    %446 = vector.extract_strided_slice %442 {offsets = [0, 1], sizes = [2, 2], strides = [1, 1]} : vector<2x4xf32> to vector<2x2xf32>
    %cst_168 = arith.constant 0.384397328 : f32
    %447 = vector.broadcast %cst_168 : f32 to vector<2x2xf32>
    %448 = arith.mulf %447, %446 : vector<2x2xf32>
    %449 = arith.addf %445, %448 : vector<2x2xf32>
    %450 = vector.extract_strided_slice %442 {offsets = [0, 2], sizes = [2, 2], strides = [1, 1]} : vector<2x4xf32> to vector<2x2xf32>
    %cst_169 = arith.constant 0.307801336 : f32
    %451 = vector.broadcast %cst_169 : f32 to vector<2x2xf32>
    %452 = arith.mulf %451, %450 : vector<2x2xf32>
    %453 = arith.addf %449, %452 : vector<2x2xf32>
    %454 = arith.subf %453, %430 : vector<2x2xf32>
    %cst_170 = arith.constant 2.000000e+00 : f32
    %455 = vector.broadcast %cst_170 : f32 to vector<2x2xf32>
    %456 = arith.mulf %455, %454 : vector<2x2xf32>
    %cst_171 = arith.constant 5.852250e+01 : f32
    %457 = vector.broadcast %cst_171 : f32 to vector<2x2xf32>
    %458 = arith.addf %456, %457 : vector<2x2xf32>
    %459 = arith.mulf %381, %381 : vector<4x4xf32>
    %460 = vector.extract_strided_slice %459 {offsets = [0, 0], sizes = [2, 4], strides = [1, 1]} : vector<4x4xf32> to vector<2x4xf32>
    %cst_172 = arith.constant 0.307801336 : f32
    %461 = vector.broadcast %cst_172 : f32 to vector<2x4xf32>
    %462 = arith.mulf %461, %460 : vector<2x4xf32>
    %463 = vector.extract_strided_slice %459 {offsets = [1, 0], sizes = [2, 4], strides = [1, 1]} : vector<4x4xf32> to vector<2x4xf32>
    %cst_173 = arith.constant 0.384397328 : f32
    %464 = vector.broadcast %cst_173 : f32 to vector<2x4xf32>
    %465 = arith.mulf %464, %463 : vector<2x4xf32>
    %466 = arith.addf %462, %465 : vector<2x4xf32>
    %467 = vector.extract_strided_slice %459 {offsets = [2, 0], sizes = [2, 4], strides = [1, 1]} : vector<4x4xf32> to vector<2x4xf32>
    %cst_174 = arith.constant 0.307801336 : f32
    %468 = vector.broadcast %cst_174 : f32 to vector<2x4xf32>
    %469 = arith.mulf %468, %467 : vector<2x4xf32>
    %470 = arith.addf %466, %469 : vector<2x4xf32>
    %471 = vector.extract_strided_slice %470 {offsets = [0, 0], sizes = [2, 2], strides = [1, 1]} : vector<2x4xf32> to vector<2x2xf32>
    %cst_175 = arith.constant 0.307801336 : f32
    %472 = vector.broadcast %cst_175 : f32 to vector<2x2xf32>
    %473 = arith.mulf %472, %471 : vector<2x2xf32>
    %474 = vector.extract_strided_slice %470 {offsets = [0, 1], sizes = [2, 2], strides = [1, 1]} : vector<2x4xf32> to vector<2x2xf32>
    %cst_176 = arith.constant 0.384397328 : f32
    %475 = vector.broadcast %cst_176 : f32 to vector<2x2xf32>
    %476 = arith.mulf %475, %474 : vector<2x2xf32>
    %477 = arith.addf %473, %476 : vector<2x2xf32>
    %478 = vector.extract_strided_slice %470 {offsets = [0, 2], sizes = [2, 2], strides = [1, 1]} : vector<2x4xf32> to vector<2x2xf32>
    %cst_177 = arith.constant 0.307801336 : f32
    %479 = vector.broadcast %cst_177 : f32 to vector<2x2xf32>
    %480 = arith.mulf %479, %478 : vector<2x2xf32>
    %481 = arith.addf %477, %480 : vector<2x2xf32>
    %482 = arith.subf %481, %428 : vector<2x2xf32>
    %483 = arith.mulf %383, %383 : vector<4x4xf32>
    %484 = vector.extract_strided_slice %483 {offsets = [0, 0], sizes = [2, 4], strides = [1, 1]} : vector<4x4xf32> to vector<2x4xf32>
    %cst_178 = arith.constant 0.307801336 : f32
    %485 = vector.broadcast %cst_178 : f32 to vector<2x4xf32>
    %486 = arith.mulf %485, %484 : vector<2x4xf32>
    %487 = vector.extract_strided_slice %483 {offsets = [1, 0], sizes = [2, 4], strides = [1, 1]} : vector<4x4xf32> to vector<2x4xf32>
    %cst_179 = arith.constant 0.384397328 : f32
    %488 = vector.broadcast %cst_179 : f32 to vector<2x4xf32>
    %489 = arith.mulf %488, %487 : vector<2x4xf32>
    %490 = arith.addf %486, %489 : vector<2x4xf32>
    %491 = vector.extract_strided_slice %483 {offsets = [2, 0], sizes = [2, 4], strides = [1, 1]} : vector<4x4xf32> to vector<2x4xf32>
    %cst_180 = arith.constant 0.307801336 : f32
    %492 = vector.broadcast %cst_180 : f32 to vector<2x4xf32>
    %493 = arith.mulf %492, %491 : vector<2x4xf32>
    %494 = arith.addf %490, %493 : vector<2x4xf32>
    %495 = vector.extract_strided_slice %494 {offsets = [0, 0], sizes = [2, 2], strides = [1, 1]} : vector<2x4xf32> to vector<2x2xf32>
    %cst_181 = arith.constant 0.307801336 : f32
    %496 = vector.broadcast %cst_181 : f32 to vector<2x2xf32>
    %497 = arith.mulf %496, %495 : vector<2x2xf32>
    %498 = vector.extract_strided_slice %494 {offsets = [0, 1], sizes = [2, 2], strides = [1, 1]} : vector<2x4xf32> to vector<2x2xf32>
    %cst_182 = arith.constant 0.384397328 : f32
    %499 = vector.broadcast %cst_182 : f32 to vector<2x2xf32>
    %500 = arith.mulf %499, %498 : vector<2x2xf32>
    %501 = arith.addf %497, %500 : vector<2x2xf32>
    %502 = vector.extract_strided_slice %494 {offsets = [0, 2], sizes = [2, 2], strides = [1, 1]} : vector<2x4xf32> to vector<2x2xf32>
    %cst_183 = arith.constant 0.307801336 : f32
    %503 = vector.broadcast %cst_183 : f32 to vector<2x2xf32>
    %504 = arith.mulf %503, %502 : vector<2x2xf32>
    %505 = arith.addf %501, %504 : vector<2x2xf32>
    %506 = arith.subf %505, %429 : vector<2x2xf32>
    %507 = arith.addf %482, %506 : vector<2x2xf32>
    %cst_184 = arith.constant 5.852250e+01 : f32
    %508 = vector.broadcast %cst_184 : f32 to vector<2x2xf32>
    %509 = arith.addf %507, %508 : vector<2x2xf32>
    %510 = tpu.reciprocal %509 {approx = true} : vector<2x2xf32> -> vector<2x2xf32>
    %511 = arith.mulf %509, %510 : vector<2x2xf32>
    %cst_185 = arith.constant 2.000000e+00 : f32
    %512 = vector.broadcast %cst_185 : f32 to vector<2x2xf32>
    %513 = arith.subf %512, %511 : vector<2x2xf32>
    %514 = arith.mulf %510, %513 : vector<2x2xf32>
    %515 = arith.mulf %458, %514 : vector<2x2xf32>
    %cst_186 = arith.constant 2.000000e+00 : f32
    %516 = vector.broadcast %cst_186 : f32 to vector<2x2xf32>
    %517 = arith.mulf %516, %430 : vector<2x2xf32>
    %cst_187 = arith.constant 6.502500e+00 : f32
    %518 = vector.broadcast %cst_187 : f32 to vector<2x2xf32>
    %519 = arith.addf %517, %518 : vector<2x2xf32>
    %520 = arith.addf %428, %429 : vector<2x2xf32>
    %cst_188 = arith.constant 6.502500e+00 : f32
    %521 = vector.broadcast %cst_188 : f32 to vector<2x2xf32>
    %522 = arith.addf %520, %521 : vector<2x2xf32>
    %523 = tpu.reciprocal %522 {approx = true} : vector<2x2xf32> -> vector<2x2xf32>
    %524 = arith.mulf %522, %523 : vector<2x2xf32>
    %cst_189 = arith.constant 2.000000e+00 : f32
    %525 = vector.broadcast %cst_189 : f32 to vector<2x2xf32>
    %526 = arith.subf %525, %524 : vector<2x2xf32>
    %527 = arith.mulf %523, %526 : vector<2x2xf32>
    %528 = arith.mulf %519, %527 : vector<2x2xf32>
    %529 = arith.mulf %528, %515 : vector<2x2xf32>
    %cst_190 = arith.constant dense<0.000000e+00> : vector<2xf32>
    %530 = vector.multi_reduction <add>, %529, %cst_190 [0] : vector<2x2xf32> to vector<2xf32>
    %531 = vector.shape_cast %530 : vector<2xf32> to vector<1x2xf32>
    %cst_191 = arith.constant dense<0.000000e+00> : vector<1xf32>
    %532 = vector.multi_reduction <add>, %531, %cst_191 [1] : vector<1x2xf32> to vector<1xf32>
    %533 = vector.shape_cast %532 : vector<1xf32> to vector<1x1xf32>
    %cst_192 = arith.constant 2.500000e-01 : f32
    %534 = vector.broadcast %cst_192 : f32 to vector<1x1xf32>
    %535 = arith.mulf %533, %534 : vector<1x1xf32>
    %536 = tpu.iota {dimensions = array<i32: 1>} : vector<1x128xi32>
    %cst_193 = arith.constant 0.000000e+00 : f32
    %537 = vector.broadcast %cst_193 : f32 to vector<1x128xf32>
    %c0_i32 = arith.constant 0 : i32
    %538 = vector.broadcast %c0_i32 : i32 to vector<1x128xi32>
    %539 = arith.cmpi eq, %536, %538 : vector<1x128xi32>
    %cst_194 = arith.constant 0.000000e+00 : f32
    %540 = vector.shape_cast %43 : vector<1x1xf32> to vector<1x1xf32>
    %541 = vector.broadcast %540 : vector<1x1xf32> to vector<1x128xf32>
    %542 = vector.broadcast %cst_194 : f32 to vector<1x128xf32>
    %543 = arith.select %539, %541, %542 : vector<1x128xi1>, vector<1x128xf32>
    %544 = arith.addf %537, %543 : vector<1x128xf32>
    %c1_i32 = arith.constant 1 : i32
    %545 = vector.broadcast %c1_i32 : i32 to vector<1x128xi32>
    %546 = arith.cmpi eq, %536, %545 : vector<1x128xi32>
    %cst_195 = arith.constant 0.000000e+00 : f32
    %547 = vector.shape_cast %89 : vector<1x1xf32> to vector<1x1xf32>
    %548 = vector.broadcast %547 : vector<1x1xf32> to vector<1x128xf32>
    %549 = vector.broadcast %cst_195 : f32 to vector<1x128xf32>
    %550 = arith.select %546, %548, %549 : vector<1x128xi1>, vector<1x128xf32>
    %551 = arith.addf %544, %550 : vector<1x128xf32>
    %c2_i32 = arith.constant 2 : i32
    %552 = vector.broadcast %c2_i32 : i32 to vector<1x128xi32>
    %553 = arith.cmpi eq, %536, %552 : vector<1x128xi32>
    %cst_196 = arith.constant 0.000000e+00 : f32
    %554 = vector.shape_cast %233 : vector<1x1xf32> to vector<1x1xf32>
    %555 = vector.broadcast %554 : vector<1x1xf32> to vector<1x128xf32>
    %556 = vector.broadcast %cst_196 : f32 to vector<1x128xf32>
    %557 = arith.select %553, %555, %556 : vector<1x128xi1>, vector<1x128xf32>
    %558 = arith.addf %551, %557 : vector<1x128xf32>
    %c3_i32 = arith.constant 3 : i32
    %559 = vector.broadcast %c3_i32 : i32 to vector<1x128xi32>
    %560 = arith.cmpi eq, %536, %559 : vector<1x128xi32>
    %cst_197 = arith.constant 0.000000e+00 : f32
    %561 = vector.shape_cast %377 : vector<1x1xf32> to vector<1x1xf32>
    %562 = vector.broadcast %561 : vector<1x1xf32> to vector<1x128xf32>
    %563 = vector.broadcast %cst_197 : f32 to vector<1x128xf32>
    %564 = arith.select %560, %562, %563 : vector<1x128xi1>, vector<1x128xf32>
    %565 = arith.addf %558, %564 : vector<1x128xf32>
    %c4_i32 = arith.constant 4 : i32
    %566 = vector.broadcast %c4_i32 : i32 to vector<1x128xi32>
    %567 = arith.cmpi eq, %536, %566 : vector<1x128xi32>
    %cst_198 = arith.constant 0.000000e+00 : f32
    %568 = vector.shape_cast %535 : vector<1x1xf32> to vector<1x1xf32>
    %569 = vector.broadcast %568 : vector<1x1xf32> to vector<1x128xf32>
    %570 = vector.broadcast %cst_198 : f32 to vector<1x128xf32>
    %571 = arith.select %567, %569, %570 : vector<1x128xi1>, vector<1x128xf32>
    %572 = arith.addf %565, %571 : vector<1x128xf32>
    %c0_199 = arith.constant 0 : index
    %c0_200 = arith.constant 0 : index
    %c0_201 = arith.constant 0 : index
    %573 = vector.load %arg15[%c0_199, %c0_200, %c0_201] : memref<1x1x128xf32, #tpu.memory_space<vmem>>, vector<1x1x128xf32>
    %574 = vector.shape_cast %573 : vector<1x1x128xf32> to vector<1x128xf32>
    %575 = vector.shape_cast %572 : vector<1x128xf32> to vector<1x1x128xf32>
    tpu.vector_store %arg15[%c0_199, %c0_200, %c0_201], %575 {strides = array<i32>} : memref<1x1x128xf32, #tpu.memory_space<vmem>>, vector<1x1x128xf32>,
    return
  }
  func.func @transform_0(%arg0: i32) -> (i32, i32, i32) {
    %c0_i32 = arith.constant 0 : i32
    %c0_i32_0 = arith.constant 0 : i32
    %c0_i32_1 = arith.constant 0 : i32
    return %arg0, %c0_i32, %c0_i32_0 : i32, i32, i32
  }
  func.func @transform_1(%arg0: i32) -> (i32, i32, i32) {
    %c0_i32 = arith.constant 0 : i32
    %c0_i32_0 = arith.constant 0 : i32
    %c0_i32_1 = arith.constant 0 : i32
    return %arg0, %c0_i32, %c0_i32_0 : i32, i32, i32
  }
  func.func @transform_2(%arg0: i32) -> (i32, i32) {
    %c0_i32 = arith.constant 0 : i32
    %c0_i32_0 = arith.constant 0 : i32
    %c0_i32_1 = arith.constant 0 : i32
    return %c0_i32, %c0_i32_0 : i32, i32
  }
  func.func @transform_3(%arg0: i32) -> (i32, i32) {
    %c0_i32 = arith.constant 0 : i32
    %c0_i32_0 = arith.constant 0 : i32
    %c0_i32_1 = arith.constant 0 : i32
    return %c0_i32, %c0_i32_0 : i32, i32
  }
  func.func @transform_4(%arg0: i32) -> (i32, i32) {
    %c0_i32 = arith.constant 0 : i32
    %c0_i32_0 = arith.constant 0 : i32
    %c0_i32_1 = arith.constant 0 : i32
    return %c0_i32, %c0_i32_0 : i32, i32
  }
  func.func @transform_5(%arg0: i32) -> (i32, i32) {
    %c0_i32 = arith.constant 0 : i32
    %c0_i32_0 = arith.constant 0 : i32
    %c0_i32_1 = arith.constant 0 : i32
    return %c0_i32, %c0_i32_0 : i32, i32
  }
  func.func @transform_6(%arg0: i32) -> (i32, i32) {
    %c0_i32 = arith.constant 0 : i32
    %c0_i32_0 = arith.constant 0 : i32
    %c0_i32_1 = arith.constant 0 : i32
    return %c0_i32, %c0_i32_0 : i32, i32
  }
  func.func @transform_7(%arg0: i32) -> (i32, i32) {
    %c0_i32 = arith.constant 0 : i32
    %c0_i32_0 = arith.constant 0 : i32
    %c0_i32_1 = arith.constant 0 : i32
    return %c0_i32, %c0_i32_0 : i32, i32
  }
  func.func @transform_8(%arg0: i32) -> (i32, i32) {
    %c0_i32 = arith.constant 0 : i32
    %c0_i32_0 = arith.constant 0 : i32
    %c0_i32_1 = arith.constant 0 : i32
    return %c0_i32, %c0_i32_0 : i32, i32
  }
  func.func @transform_9(%arg0: i32) -> (i32, i32) {
    %c0_i32 = arith.constant 0 : i32
    %c0_i32_0 = arith.constant 0 : i32
    %c0_i32_1 = arith.constant 0 : i32
    return %c0_i32, %c0_i32_0 : i32, i32
  }
  func.func @transform_10(%arg0: i32) -> (i32, i32) {
    %c0_i32 = arith.constant 0 : i32
    %c0_i32_0 = arith.constant 0 : i32
    %c0_i32_1 = arith.constant 0 : i32
    return %c0_i32, %c0_i32_0 : i32, i32
  }
  func.func @transform_11(%arg0: i32) -> (i32, i32) {
    %c0_i32 = arith.constant 0 : i32
    %c0_i32_0 = arith.constant 0 : i32
    %c0_i32_1 = arith.constant 0 : i32
    return %c0_i32, %c0_i32_0 : i32, i32
  }
  func.func @transform_12(%arg0: i32) -> (i32, i32) {
    %c0_i32 = arith.constant 0 : i32
    %c0_i32_0 = arith.constant 0 : i32
    %c0_i32_1 = arith.constant 0 : i32
    return %c0_i32, %c0_i32_0 : i32, i32
  }
  func.func @transform_13(%arg0: i32) -> (i32, i32) {
    %c0_i32 = arith.constant 0 : i32
    %c0_i32_0 = arith.constant 0 : i32
    %c0_i32_1 = arith.constant 0 : i32
    return %c0_i32, %c0_i32_0 : i32, i32
  }
  func.func @transform_14(%arg0: i32) -> (i32, i32, i32) {
    %c0_i32 = arith.constant 0 : i32
    %c0_i32_0 = arith.constant 0 : i32
    %c0_i32_1 = arith.constant 0 : i32
    return %arg0, %c0_i32, %c0_i32_0 : i32, i32, i32
  }
}

</mosaic_0001>

<bundles_post_ra>
// kernel: ms_ssim_loss.1
= control target key start
LH: loop header
LB: loop body
LE: loop exit
PB: predicated region body
PF: predicated region fallthrough
CT: control target
= control target key end

     0   :  { %s8178_s0 = inlined_call_operand.hbm [shape: f32[2,64,64], index: 0, kind: input, shape index: {}]   ;;  %s8179_s1 = inlined_call_operand.hbm [shape: f32[2,64,64], index: 1, kind: input, shape index: {}]   ;;  %s8180_s2 = inlined_call_operand.hbm [shape: f32[62,64], index: 2, kind: input, shape index: {}]   ;;  %s8181_s3 = inlined_call_operand.hbm [shape: f32[64,62], index: 3, kind: input, shape index: {}]   ;;  %s8182_s4 = inlined_call_operand.hbm [shape: f32[32,64], index: 4, kind: input, shape index: {}]   ;;  %s8183_s5 = inlined_call_operand.hbm [shape: f32[64,32], index: 5, kind: input, shape index: {}]   ;;  %s8184_s6 = inlined_call_operand.hbm [shape: f32[30,32], index: 6, kind: input, shape index: {}]   ;;  %s8185_s7 = inlined_call_operand.hbm [shape: f32[32,30], index: 7, kind: input, shape index: {}]   ;;  %s8186_s8 = inlined_call_operand.hbm [shape: f32[16,32], index: 8, kind: input, shape index: {}]   ;;  %s8187_s9 = inlined_call_operand.hbm [shape: f32[32,16], index: 9, kind: input, shape index: {}]   ;;  %s8188_s10 = inlined_call_operand.hbm [shape: f32[8,16], index: 10, kind: input, shape index: {}]   ;;  %s8189_s11 = inlined_call_operand.vmem [shape: f32[16,8], index: 11, kind: input, shape index: {}]   ;;  %s8190_s12 = inlined_call_operand.vmem [shape: f32[4,8], index: 12, kind: input, shape index: {}]   ;;  %s8191_s13 = inlined_call_operand.vmem [shape: f32[8,4], index: 13, kind: input, shape index: {}]   ;;  %s8192_s14 = inlined_call_operand.vmem [shape: f32[2,1,128], index: 14, kind: output, shape index: {}]  }
   0x1   :  { %8199 = sst [smem:[#allocation26_spill]] %s8178_s0 }
   0x2   :  { %8200 = sst [smem:[#allocation27_spill]] %s8180_s2 }
   0x3   :  { %8201 = sst [smem:[#allocation28_spill]] %s8181_s3 }
   0x4   :  { %8202 = sst [smem:[#allocation29_spill]] %s8182_s4 }
   0x5   :  { %8203 = sst [smem:[#allocation30_spill]] %s8183_s5 }
   0x6   :  { %8204 = sst [smem:[#allocation31_spill]] %s8184_s6 }
   0x7   :  { %8205 = sst [smem:[#allocation32_spill]] %s8185_s7 }
   0x8   :  { %8206 = sst [smem:[#allocation33_spill]] %s8192_s14 }
   0x9   :  { %19 = vsyncpa [#allocation3], 0 }
   0xa   :  { %21 = vsyncpa [#allocation3 + $0x1], 0 }
   0xb   :  { %22 = vsyncpa [#allocation5], 0 }
   0xc   :  { %24 = vsyncpa [#allocation5 + $0x1], 0 }
   0xd   :  { %25 = vsyncpa [#allocation8], 0 }
   0xe   :  { %26 = vsyncpa [#allocation11], 0 }
   0xf   :  { %27 = vsyncpa [#allocation14], 0 }
  0x10   :  { %28 = vsyncpa [#allocation17], 0  ;;  %s6864_s29 = smov 0   ;;  %s6866_s30 = smov 0  }
  0x11   :  { %s6868_s15 = smov 0   ;;  %s6870_s16 = smov 0  }
  0x12 LB: > { %s6772_s17 = smov [#allocation6]   ;;  %s6885_s19 = sadd.s32 4294967295, %s6770_s16   ;;  %s6770_s16 = sphi %s6870_s16, %s8236_s16   ;;  %s6766_s15 = sphi %s6868_s15, %s8235_s15   ;;  %s6762_s30 = sphi %s6866_s30, %s8234_s30   ;;  %s6758_s29 = sphi %s6864_s29, %s8233_s29  }
  0x13   : > { %s381_s18 = sshll.u32 %s6772_s17, 4  ;;  %p5130_p0 = scmp.ge.s32.totalorder %s6770_s16, 1  ;;  %s382_s18 = int_to_ptr.vmem [resolvable:$true] %s381_s18 }
  0x14   : > { %p8197_p1 = scmp.eq.s32.totalorder %s6885_s19, 0  ;;  %p369_p2 = scmp.lt.s32.totalorder %s6770_s16, 3 }
  0x15   : > { %s6773_s21 = smov [#allocation7]   ;;  %s6774_s24 = smov [#allocation10]  }
  0x16   : > { %p6890_p3 = pnand %p5130_p0, %p369_p2  ;;  %s394_s22 = sshll.u32 %s6773_s21, 4  ;;  %s6902_s22 = int_to_ptr.vmem [resolvable:$true] %s394_s22 }
  0x17   : > { %s420_s25 = sshll.u32 %s6774_s24, 4  ;;  %s6433_s27 = scalar_lea.vmem %s382_s18, 1024  ;;  %s6904_s25 = int_to_ptr.vmem [resolvable:$true] %s420_s25 }
  0x18   : > { %p6287_p4 = pneg %p6890_p3  ;;  %p6434_p7 = scmp.ne.s32.totalorder %s382_s18, %s6433_s27 }
  0x19   : > { %p6441_p10 = scmp.lt.s32.totalorder %s382_s18, %s382_s18  ;;  %p6442_p11 = scmp.lt.s32.totalorder %s6433_s27, %s6433_s27 }
  0x1a   : > { %p6898_p5 = pnand %p6287_p4, %p8197_p1 }
  0x1b   : > { %p6443_p12 = por %p6442_p11, %p6441_p10 }
  0x1c   : > { %p6908_p6 = pneg %p6898_p5 }
  0x1e   : > { %p6436_p8 = pnand %p6434_p7, %p6908_p6 }
  0x20   : > { %p6437_p9 = pneg %p6436_p8 }
  0x22   : > { %p6444_p13 = pnand %p6443_p12, %p6437_p9 }
  0x24   : > { %6447 = shalt.err (!%p6444_p13)
}
  0x25   : > { %s8193_s28 = smov 128   ;;  %s8195_s17 = smov 8  }
  0x26   : > { %s8210_s2 = sld [smem:[#allocation27_spill]]  ;;  %s6459_s14 = scalar_lea.vmem %s6902_s22, 1024 }
  0x27   : > { %p6460_p0 = scmp.ne.s32.totalorder %s6902_s22, %s6459_s14  ;;  %p6467_p7 = scmp.lt.s32.totalorder %s6902_s22, %s6902_s22 }
  0x28   : > { %p6468_p8 = scmp.lt.s32.totalorder %s6459_s14, %s6459_s14 }
  0x29   : > { %p6462_p2 = pnand %p6460_p0, %p6908_p6 }
  0x2a   : > { %p6469_p9 = por %p6468_p8, %p6467_p7 }
  0x2b   : > { %p6463_p4 = pneg %p6462_p2 }
  0x2c   : > { %6290 = dma.hbm_to_vmem [thread:$0]  (!%p6898_p5), %s8210_s2, 1024, %s382_s18, [#allocation5], %s8193_s28, %s8193_s28, %s8195_s17  }
  0x2d   : > { %p6470_p10 = pnand %p6469_p9, %p6463_p4 }
  0x2f   : > { %6473 = shalt.err (!%p6470_p10)
}
  0x30   : > { %s8211_s3 = sld [smem:[#allocation28_spill]]  ;;  %s6485_s18 = scalar_lea.vmem %s6904_s25, 1024 }
  0x31   : > { %p6486_p11 = scmp.ne.s32.totalorder %s6904_s25, %s6485_s18  ;;  %p6493_p0 = scmp.lt.s32.totalorder %s6904_s25, %s6904_s25 }
  0x32   : > { %p6494_p2 = scmp.lt.s32.totalorder %s6485_s18, %s6485_s18 }
  0x33   : > { %p6488_p12 = pnand %p6486_p11, %p6908_p6 }
  0x34   : > { %p6495_p4 = por %p6494_p2, %p6493_p0 }
  0x35   : > { %p6489_p13 = pneg %p6488_p12 }
  0x36   : > { %6293 = dma.hbm_to_vmem [thread:$0]  (!%p6898_p5), %s8211_s3, 1024, %s6902_s22, [#allocation8], %s8193_s28, %s8193_s28, %s8195_s17  }
  0x37   : > { %p6496_p7 = pnand %p6495_p4, %p6489_p13 }
  0x39   : > { %6499 = shalt.err (!%p6496_p7)
}
  0x3a   : > { %s8212_s5 = sld [smem:[#allocation30_spill]]  ;;  %s6777_s22 = smov [#allocation13]  }
  0x3b   : > { %s446_s27 = sshll.u32 %s6777_s22, 4  ;;  %s6778_s21 = smov [#allocation16]   ;;  %s447_s27 = int_to_ptr.vmem [resolvable:$true] %s446_s27 }
  0x3c   : > { %s472_s2 = sshll.u32 %s6778_s21, 4  ;;  %s6511_s18 = scalar_lea.vmem %s447_s27, 512  ;;  %s473_s2 = int_to_ptr.vmem [resolvable:$true] %s472_s2 }
  0x3d   : > { %p6512_p8 = scmp.ne.s32.totalorder %s447_s27, %s6511_s18  ;;  %p6519_p11 = scmp.lt.s32.totalorder %s447_s27, %s447_s27 }
  0x3e   : > { %p6520_p12 = scmp.lt.s32.totalorder %s6511_s18, %s6511_s18 }
  0x3f   : > { %p6514_p9 = pnand %p6512_p8, %p6908_p6 }
  0x40   : > { %6299 = dma.hbm_to_vmem [thread:$0]  (!%p6898_p5), %s8212_s5, 1024, %s6904_s25, [#allocation11], %s8193_s28, %s8193_s28, %s8195_s17  }
  0x41   : > { %p6515_p10 = pneg %p6514_p9  ;;  %p6521_p13 = por %p6520_p12, %p6519_p11 }
  0x43   : > { %p6522_p0 = pnand %p6521_p13, %p6515_p10 }
  0x45   : > { %6525 = shalt.err (!%p6522_p0)
}
  0x46   : > { %s8213_s7 = sld [smem:[#allocation32_spill]]  ;;  %s6537_s24 = scalar_lea.vmem %s473_s2, 512 }
  0x47   : > { %p6538_p2 = scmp.ne.s32.totalorder %s473_s2, %s6537_s24  ;;  %p6545_p8 = scmp.lt.s32.totalorder %s473_s2, %s473_s2 }
  0x48   : > { %p6546_p9 = scmp.lt.s32.totalorder %s6537_s24, %s6537_s24 }
  0x49   : > { %p6540_p4 = pnand %p6538_p2, %p6908_p6 }
  0x4a   : > { %p6547_p10 = por %p6546_p9, %p6545_p8 }
  0x4b   : > { %p6541_p7 = pneg %p6540_p4 }
  0x4c   : > { %6305 = dma.hbm_to_vmem [thread:$0]  (!%p6898_p5), %s8213_s7, 512, %s447_s27, [#allocation14], %s8193_s28, %s8193_s28, %s8195_s17  }
  0x4d   : > { %p6548_p11 = pnand %p6547_p10, %p6541_p7 }
  0x4f   : > { %6551 = shalt.err (!%p6548_p11)
}
  0x50   : > { %6311 = dma.hbm_to_vmem [thread:$0]  (!%p6898_p5), %s8187_s9, 512, %s473_s2, [#allocation17], %s8193_s28, %s8193_s28, %s8195_s17  }
  0x51   : > { %s6779_s27 = smov [#allocation9]   ;;  %s6780_s25 = smov [#allocation12]  }
  0x52   : > { %s407_s18 = sshll.u32 %s6779_s27, 4  ;;  %s433_s14 = sshll.u32 %s6780_s25, 4  ;;  %s408_s18 = int_to_ptr.vmem [resolvable:$true] %s407_s18  ;;  %s434_s14 = int_to_ptr.vmem [resolvable:$true] %s433_s14 }
  0x53   : > { %s6563_s3 = scalar_lea.vmem %s408_s18, 512  ;;  %p6571_p2 = scmp.lt.s32.totalorder %s408_s18, %s408_s18 }
  0x54   : > { %p6564_p12 = scmp.ne.s32.totalorder %s408_s18, %s6563_s3  ;;  %p6572_p4 = scmp.lt.s32.totalorder %s6563_s3, %s6563_s3 }
  0x56   : > { %p6566_p13 = pnand %p6564_p12, %p6908_p6  ;;  %p6573_p7 = por %p6572_p4, %p6571_p2 }
  0x58   : > { %p6567_p0 = pneg %p6566_p13 }
  0x5a   : > { %p6574_p8 = pnand %p6573_p7, %p6567_p0 }
  0x5c   : > { %6577 = shalt.err (!%p6574_p8)
}
  0x5d   : > { %s8214_s4 = sld [smem:[#allocation29_spill]]  ;;  %s6589_s22 = scalar_lea.vmem %s434_s14, 512 }
  0x5e   : > { %p6590_p9 = scmp.ne.s32.totalorder %s434_s14, %s6589_s22  ;;  %p6597_p12 = scmp.lt.s32.totalorder %s434_s14, %s434_s14 }
  0x5f   : > { %p6598_p13 = scmp.lt.s32.totalorder %s6589_s22, %s6589_s22 }
  0x60   : > { %p6592_p10 = pnand %p6590_p9, %p6908_p6 }
  0x61   : > { %p6599_p0 = por %p6598_p13, %p6597_p12 }
  0x62   : > { %p6593_p11 = pneg %p6592_p10 }
  0x63   : > { %6296 = dma.hbm_to_vmem [thread:$0]  (!%p6898_p5), %s8214_s4, 512, %s408_s18, [#allocation8], %s8193_s28, %s8193_s28, %s8195_s17  }
  0x64   : > { %p6600_p2 = pnand %p6599_p0, %p6593_p11 }
  0x66   : > { %6603 = shalt.err (!%p6600_p2)
}
  0x67   : > { %s8215_s6 = sld [smem:[#allocation31_spill]]  ;;  %s6781_s27 = smov [#allocation15]  }
  0x68   : > { %s459_s18 = sshll.u32 %s6781_s27, 4  ;;  %s6782_s25 = smov [#allocation18]   ;;  %s460_s18 = int_to_ptr.vmem [resolvable:$true] %s459_s18 }
  0x69   : > { %s486_s2 = sshll.u32 %s6782_s25, 4  ;;  %s6615_s24 = scalar_lea.vmem %s460_s18, 256  ;;  %s487_s2 = int_to_ptr.vmem [resolvable:$true] %s486_s2 }
  0x6a   : > { %p6616_p4 = scmp.ne.s32.totalorder %s460_s18, %s6615_s24  ;;  %p6623_p9 = scmp.lt.s32.totalorder %s460_s18, %s460_s18 }
  0x6b   : > { %p6624_p10 = scmp.lt.s32.totalorder %s6615_s24, %s6615_s24 }
  0x6c   : > { %p6618_p7 = pnand %p6616_p4, %p6908_p6 }
  0x6d   : > { %6302 = dma.hbm_to_vmem [thread:$0]  (!%p6898_p5), %s8215_s6, 512, %s434_s14, [#allocation11], %s8193_s28, %s8193_s28, %s8195_s17  }
  0x6e   : > { %p6619_p8 = pneg %p6618_p7  ;;  %p6625_p11 = por %p6624_p10, %p6623_p9 }
  0x70   : > { %p6626_p12 = pnand %p6625_p11, %p6619_p8 }
  0x72   : > { %6629 = shalt.err (!%p6626_p12)
}
  0x73   : > { %6308 = dma.hbm_to_vmem [thread:$0]  (!%p6898_p5), %s8186_s8, 256, %s460_s18, [#allocation14], %s8193_s28, %s8193_s28, %s8195_s17  }
  0x74   : > { %s6641_s3 = scalar_lea.vmem %s487_s2, 128  ;;  %p6649_p4 = scmp.lt.s32.totalorder %s487_s2, %s487_s2 }
  0x75   : > { %p6642_p13 = scmp.ne.s32.totalorder %s487_s2, %s6641_s3  ;;  %p6650_p7 = scmp.lt.s32.totalorder %s6641_s3, %s6641_s3 }
  0x77   : > { %p6644_p0 = pnand %p6642_p13, %p6908_p6  ;;  %p6651_p8 = por %p6650_p7, %p6649_p4 }
  0x79   : > { %p6645_p2 = pneg %p6644_p0 }
  0x7b   : > { %p6652_p9 = pnand %p6651_p8, %p6645_p2 }
  0x7d   : > { %6655 = shalt.err (!%p6652_p9)
}
  0x7e   : > { %6314 = dma.hbm_to_vmem [thread:$0]  (!%p6898_p5), %s8188_s10, 128, %s487_s2, [#allocation17]  }
  0x7f   : > { %s7010_s26 = sadd.s32 1, %s6770_s16   ;;  %s41_s18 = sadd.s32 1, %s6766_s15 }
  0x80   : > { %s38_s23 = ssub.s32 %s6770_s16, %s7010_s26  ;;  %p48_p10 = scmp.ne.s32.totalorder %s6766_s15, %s6762_s30 }
  0x81   : > { %p39_p6 = scmp.eq.s32.totalorder %s38_s23, 0  ;;  %p49_p11 = scmp.eq.s32.totalorder %s6770_s16, 0 }
  0x82   : > { %p54_p12 = scmp.ne.s32.totalorder %s6762_s30, %s6758_s29  ;;  %p6331_p2 = scmp.lt.s32.totalorder %s6770_s16, 2 }
  0x83   : > { %s7021_s25 = scalar_select %p39_p6, %s6766_s15, %s41_s18  }
  0x84   : > { %p50_p13 = por %p49_p11, %p48_p10  ;;  %p7025_p0 = por %p8197_p1, %p54_p12 }
  0x85   : > { %s506_s14 = sand.u32 1, %s6766_s15   ;;  %s5313_s22 = sshll.u32 %s6770_s16, 10 }
  0x86   : > { %s8216_s24 = scalar_select %p7025_p0, 1, 0 }
  0x87   : > { %s5141_s2 = sshll.u32 %s506_s14, 6  ;;  %s8217_s0 = sld [smem:[#allocation26_spill]] }
  0x88   : > { %s510_s29 = scalar_lea.vmem [#allocation2], %s5141_s2  ;;  %p7039_p5 = pnand %p6331_p2, %p50_p13 }
  0x89   : > { %s517_s23 = sshll.u32 %s510_s29, 4  ;;  %s7046_s4 = scalar_lea.hbm %s8179_s1, %s5313_s22  ;;  %s7037_s23 = int_to_ptr.vmem [resolvable:$true] %s517_s23 }
  0x8a   : > { %s531_s3 = scalar_lea.vmem [#allocation4], %s5141_s2  ;;  %s7050_s5 = scalar_lea.sflag [#allocation3], %s506_s14 }
  0x8b   : > { %s7048_s21 = sshll.u32 %s531_s3, 4  ;;  %p6658_p7 = pneg %p7039_p5  ;;  %s7081_s21 = int_to_ptr.vmem [resolvable:$true] %s7048_s21 }
  0x8d   : > { %s7035_s27 = scalar_lea.hbm %s8217_s0, %s5313_s22  ;;  %s6661_s28 = scalar_lea.hbm %s8217_s0, 2048 }
  0x8e   : > { %s6656_s6 = scalar_lea.hbm %s7035_s27, 1024  ;;  %p6662_p6 = scmp.lt.s32.totalorder %s7035_s27, %s8217_s0 }
  0x8f   : > { %p6657_p4 = scmp.ne.s32.totalorder %s7035_s27, %s6656_s6  ;;  %p6663_p10 = scmp.lt.s32.totalorder %s6661_s28, %s6656_s6 }
  0x91   : > { %p6659_p8 = pnand %p6658_p7, %p6657_p4  ;;  %p6664_p11 = por %p6663_p10, %p6662_p6 }
  0x93   : > { %p6660_p9 = pneg %p6659_p8 }
  0x95   : > { %p6665_p12 = pnand %p6664_p11, %p6660_p9 }
  0x97   : > { %6668 = shalt.err (!%p6665_p12)
}
  0x98   : > { %s6669_s14 = scalar_lea.vmem %s7037_s23, 1024  ;;  %s6783_s7 = smov [#allocation2]  }
  0x99   : > { %p6670_p13 = scmp.ne.s32.totalorder %s7037_s23, %s6669_s14  ;;  %s6674_s2 = sshll.u32 %s6783_s7, 4  ;;  %s6675_s2 = int_to_ptr.vmem [resolvable:$false] %s6674_s2 }
  0x9a   : > { %s6676_s3 = scalar_lea.vmem %s6675_s2, 2048  ;;  %p6677_p8 = scmp.lt.s32.totalorder %s7037_s23, %s6675_s2 }
  0x9b   : > { %p6672_p2 = pnand %p6670_p13, %p6658_p7  ;;  %p6678_p1 = scmp.lt.s32.totalorder %s6676_s3, %s6669_s14 }
  0x9d   : > { %p6673_p4 = pneg %p6672_p2  ;;  %p6679_p0 = por %p6678_p1, %p6677_p8 }
  0x9f   : > { %p6680_p6 = pnand %p6679_p0, %p6673_p4 }
  0xa1   : > { %6683 = shalt.err (!%p6680_p6)
}
  0xa2   : > { %s8219_s6 = smov 8   ;;  %s8220_s29 = smov 128  }
  0xa3   : > { %6318 = dma.hbm_to_vmem [thread:$0]  (!%p7039_p5), %s7035_s27, 1024, %s7037_s23, %s7050_s5, %s8220_s29, %s8220_s29, %s8219_s6  }
  0xa4   : > { %s527_s28 = sand.u32 1, %s6770_s16   ;;  %s6684_s22 = scalar_lea.hbm %s7046_s4, 1024 }
  0xa5   : > { %s528_s17 = scalar_lea.sflag [#allocation5], %s527_s28  ;;  %p6685_p1 = scmp.ne.s32.totalorder %s7046_s4, %s6684_s22 }
  0xa6   : > { %s6689_s2 = scalar_lea.hbm %s8179_s1, 2048  ;;  %p6690_p10 = scmp.lt.s32.totalorder %s7046_s4, %s8179_s1 }
  0xa7   : > { %p6687_p0 = pnand %p6685_p1, %p6658_p7  ;;  %p6691_p11 = scmp.lt.s32.totalorder %s6689_s2, %s6684_s22 }
  0xa9   : > { %p6688_p9 = pneg %p6687_p0  ;;  %p6692_p12 = por %p6691_p11, %p6690_p10 }
  0xab   : > { %p6693_p13 = pnand %p6692_p12, %p6688_p9 }
  0xad   : > { %6696 = shalt.err (!%p6693_p13)
}
  0xae   : > { %s6697_s5 = scalar_lea.vmem %s7081_s21, 1024  ;;  %s6784_s16 = smov [#allocation4]  }
  0xaf   : > { %p6698_p2 = scmp.ne.s32.totalorder %s7081_s21, %s6697_s5  ;;  %s6702_s27 = sshll.u32 %s6784_s16, 4  ;;  %s6703_s27 = int_to_ptr.vmem [resolvable:$false] %s6702_s27 }
  0xb0   : > { %s6704_s23 = scalar_lea.vmem %s6703_s27, 2048  ;;  %p6705_p6 = scmp.lt.s32.totalorder %s7081_s21, %s6703_s27 }
  0xb1   : > { %p6700_p4 = pnand %p6698_p2, %p6658_p7  ;;  %p6706_p1 = scmp.lt.s32.totalorder %s6704_s23, %s6697_s5 }
  0xb3   : > { %p6701_p8 = pneg %p6700_p4  ;;  %p6707_p0 = por %p6706_p1, %p6705_p6 }
  0xb5   : > { %p6708_p10 = pnand %p6707_p0, %p6701_p8 }
  0xb7   : > { %6711 = shalt.err (!%p6708_p10)
}
  0xb8   : > { %6321 = dma.hbm_to_vmem [thread:$0]  (!%p7039_p5), %s7046_s4, 1024, %s7081_s21, %s528_s17, %s8220_s29, %s8220_s29, %s8219_s6  }
  0xb9   : > { %550 = sbr.rel (%p6890_p3) target bundleno = 2256 (0x8d0), region = 76  ;;  %s552_s0 = sand.u32 (!%p6890_p3), 1, %s6762_s30  }
  0xba   : > { %s5148_s28 = sshll.u32 (!%p6890_p3), %s552_s0, 6  ;;  %s553_s22 = scalar_lea.sflag (!%p6890_p3), [#allocation3], %s552_s0 }
  0xbb   : > { %s7112_s14 = scalar_lea.vmem (!%p6890_p3), [#allocation2], %s5148_s28  ;;  %p8221_p7 = scmp.ne.s32.totalorder (!%p6890_p3), %s8216_s24, 0 }
  0xbe   : > { %6729 = dma.done.wait (%p8221_p7), %s553_s22, 1024  }
  0xbf   : > { %6731 = vsyncadd (%p8221_p7), %s553_s22, 4294966272  ;;  %s561_s18 = sand.u32 1, %s6885_s19   ;;  %s7119_s4 = scalar_lea.vmem [#allocation4], %s5148_s28 }
  0xc0   : > { %s562_s7 = scalar_lea.sflag [#allocation5], %s561_s18 }
  0xc1   : > { %6733 = dma.done.wait (%p8221_p7), %s562_s7, 1024  }
  0xc2   : > { %6735 = vsyncadd (%p8221_p7), %s562_s7, 4294966272  ;;  %p8222_p3 = scmp.eq.s32.totalorder %s6885_s19, 0 }
  0xc4   : > { %6737 = dma.done.wait (%p8222_p3), [#allocation5], 1024   ;;  %p8223_p5 = pmov %p8222_p3 }
  0xc5   : > { %p8224_p9 = pmov %p8222_p3 }
  0xc6   : > { %6739 = vsyncadd (%p8223_p5), [#allocation5], 4294966272 }
  0xc7   : > { %6741 = dma.done.wait (%p8224_p9), [#allocation8], 1536   ;;  %p8225_p11 = pmov %p8222_p3 }
  0xc8   : > { %p8226_p12 = pmov %p8222_p3 }
  0xc9   : > { %6743 = vsyncadd (%p8225_p11), [#allocation8], 4294965760 }
  0xca   : > { %6745 = dma.done.wait (%p8226_p12), [#allocation11], 1536   ;;  %p8227_p13 = pmov %p8222_p3 }
  0xcb   : > { %p8228_p2 = pmov %p8222_p3 }
  0xcc   : > { %6747 = vsyncadd (%p8227_p13), [#allocation11], 4294965760 }
  0xcd   : > { %6749 = dma.done.wait (%p8228_p2), [#allocation14], 768   ;;  %p8229_p4 = pmov %p8228_p2 }
  0xce   : > { %p8230_p8 = pmov %p8228_p2 }
  0xcf   : > { %6751 = vsyncadd (%p8229_p4), [#allocation14], 4294966528 }
  0xd0   : > { %6753 = dma.done.wait (%p8230_p8), [#allocation17], 640   ;;  %p8231_p6 = pmov %p8228_p2 }
  0xd1   : > { %v7146_v0 = vld [vmem:[%s7112_s14 + $0x38] sm:$0xff]  ;;  %v7149_v1 = vld [vmem:[%s7112_s14 + $0x30] sm:$0xff]  ;;  %vm684_vm0 = vcmask 523264   ;;  %v7154_v2 = vld [vmem:[%s7112_s14 + $0x28] sm:$0xff]  ;;  %vm2446_vm1 = vcmask 261120   ;;  %vm2023_vm2 = vcmask 506880  }
  0xd2   : > { %6755 = vsyncadd (%p8231_p6), [#allocation17], 4294966656  ;;  %5647 = vmatprep.subr.mxu0 %v7146_v0  ;;  %v7156_v3 = vld [vmem:[#allocation6] sm:$0xff]  ;;  %v7168_v5 = vld [vmem:[%s7112_s14 + $0x18] sm:$0xff]  ;;  %v1474_v38 = vmul.f32 %v7146_v0, %v7146_v0  ;;  %v1473_v39 = vmul.f32 %v7149_v1, %v7149_v1  ;;  %v1472_v40 = vmul.f32 %v7154_v2, %v7154_v2  ;;  %vm2037_vm3 = vcmask 504832   ;;  %s6787_s20 = smov 127  }
  0xd3   : > { %5648 = vmatpush3.msra.mxu0 %v7146_v0  ;;  %5663 = vmatprep.mubr.msk.f32.mxu0 %vm684_vm0, %v7156_v3  ;;  %v7163_v4 = vld [vmem:[%s7112_s14 + $0x20] sm:$0xff]  ;;  %v7173_v6 = vld [vmem:[%s7112_s14 + $0x10] sm:$0xff]  ;;  %v7176_v7 = vld [vmem:[#allocation7 + $0x38] sm:$0xff]  ;;  %v1470_v42 = vmul.f32 %v7168_v5, %v7168_v5  ;;  %vm6786_vm4 = vmmov 0   ;;  %vm4070_vm5 = vcmask 130048   ;;  %vm3790_vm6 = vcmask 1046528  }
  0xd4   : > { %5649 = vmatprep.subr.mxu0 %v7149_v1  ;;  %v7178_v8 = vld [vmem:[#allocation7 + $0x30] sm:$0xff]  ;;  %v7182_v9 = vld [vmem:[%s7112_s14 + $0x8] sm:$0xff]  ;;  %5675 = vmatprep.subr.mxu1 %v7176_v7  ;;  %v7191_v11 = vld [vmem:[%s7112_s14] sm:$0xff]  ;;  %v1471_v41 = vmul.f32 %v7163_v4, %v7163_v4  ;;  %v1469_v43 = vmul.f32 %v7173_v6, %v7173_v6  ;;  %vm3800_vm7 = vcmask 1045504   ;;  %s6788_s24 = smov 126   ;;  %vm3441_vm8 = vcmask 244736  }
  0xd5   : > { %5650 = vmatpush3.msra.mxu0 %v7149_v1  ;;  %5676 = vmatpush3.msra.mxu1 %v7176_v7  ;;  %v7187_v10 = vld [vmem:[#allocation7 + $0x28] sm:$0xff]  ;;  %v7196_v12 = vld [vmem:[#allocation7 + $0x20] sm:$0xff]  ;;  %v7202_v14 = vld [vmem:[%s7119_s4 + $0x38] sm:$0xff]  ;;  %v1468_v44 = vmul.f32 %v7182_v9, %v7182_v9  ;;  %v1467_v45 = vmul.f32 %v7191_v11, %v7191_v11  ;;  %vm3447_vm9 = vcmask 242688   ;;  %vm4503_vm10 = vcmask 64512   ;;  %p649_p1 = scmp.lt.s32.totalorder %s6885_s19, 1 }
  0xd6   : > { %5651 = vmatprep.subr.mxu0 %v7154_v2  ;;  %5677 = vmatprep.subr.mxu1 %v7178_v8  ;;  %v7199_v13 = vld [vmem:[#allocation6 + $0x8] sm:$0xff]  ;;  %v7206_v15 = vld [vmem:[#allocation6 + $0x10] sm:$0xff]  ;;  %v7217_v17 = vld [vmem:[#allocation7 + $0x18] sm:$0xff]  ;;  %v1208_v30 = vmul.f32 %v7202_v14, %v7146_v0  ;;  %v1724_v46 = vmul.f32 %v7202_v14, %v7202_v14  ;;  %vm4488_vm11 = vcmask 46080   ;;  %vm4052_vm12 = vcmask 113664   ;;  %s8232_s0 = sld [smem:[#allocation33_spill]] }
  0xd7   : > { %5652 = vmatpush3.msra.mxu0 %v7154_v2  ;;  %5678 = vmatpush3.msra.mxu1 %v7178_v8  ;;  %v7211_v16 = vld [vmem:[%s7119_s4 + $0x30] sm:$0xff]  ;;  %v7222_v18 = vld [vmem:[#allocation6 + $0x18] sm:$0xff]  ;;  %v7225_v19 = vld [vmem:[%s7119_s4 + $0x28] sm:$0xff]  ;;  %vm4054_vm13 = vcmask 111616   ;;  %vm4931_vm14 = vcmask 9216   ;;  %vm4496_vm15 = vcmask 48128  }
  0xd8   : > { %5653 = vmatprep.subr.mxu0 %v7163_v4  ;;  %5679 = vmatprep.subr.mxu1 %v7187_v10  ;;  %v7228_v20 = vld [vmem:[#allocation6 + $0x20] sm:$0xff]  ;;  %v7239_v22 = vld [vmem:[#allocation7 + $0x10] sm:$0xff]  ;;  %v7244_v23 = vld [vmem:[#allocation6 + $0x28] sm:$0xff]  ;;  %v1207_v31 = vmul.f32 %v7211_v16, %v7149_v1  ;;  %v1206_v32 = vmul.f32 %v7225_v19, %v7154_v2  ;;  %v1723_v47 = vmul.f32 %v7211_v16, %v7211_v16  ;;  %s8238_s19 = smov (!%p649_p1, %s6885_s19), 1 }
  0xd9   : > { %5654 = vmatpush3.msra.mxu0 %v7163_v4  ;;  %5680 = vmatpush3.msra.mxu1 %v7187_v10  ;;  %v7233_v21 = vld [vmem:[%s7119_s4 + $0x20] sm:$0xff]  ;;  %v7247_v24 = vld [vmem:[%s7119_s4 + $0x18] sm:$0xff]  ;;  %v7250_v25 = vld [vmem:[#allocation6 + $0x30] sm:$0xff]  ;;  %v1722_v48 = vmul.f32 %v7225_v19, %v7225_v19 }
  0xda   : > { %5655 = vmatprep.subr.mxu0 %v7168_v5  ;;  %5681 = vmatprep.subr.mxu1 %v7196_v12  ;;  %v7255_v26 = vld [vmem:[%s7119_s4 + $0x10] sm:$0xff]  ;;  %v7264_v27 = vld [vmem:[#allocation6 + $0x38] sm:$0x3f]  ;;  %v7267_v28 = vld [vmem:[%s7119_s4 + $0x8] sm:$0xff]  ;;  %v1205_v33 = vmul.f32 %v7233_v21, %v7163_v4  ;;  %v1204_v34 = vmul.f32 %v7247_v24, %v7168_v5  ;;  %v1721_v49 = vmul.f32 %v7233_v21, %v7233_v21 }
  0xdb   : > { %5656 = vmatpush3.msra.mxu0 %v7168_v5  ;;  %5682 = vmatpush3.msra.mxu1 %v7196_v12  ;;  %v7273_v29 = vld [vmem:[%s7119_s4] sm:$0xff]  ;;  %v1203_v35 = vmul.f32 %v7255_v26, %v7173_v6  ;;  %v1202_v36 = vmul.f32 %v7267_v28, %v7182_v9  ;;  %v1720_v50 = vmul.f32 %v7247_v24, %v7247_v24  ;;  %v7379_v54 = vld [vmem:[#allocation7 + $0x8] sm:$0xff]  ;;  %v2052_v58 = vld [vmem:[#allocation9 + $0x10] sm:$0xff] }
  0xdc   : > { %5657 = vmatprep.subr.mxu0 %v7173_v6  ;;  %5683 = vmatprep.subr.mxu1 %v7217_v17  ;;  %v1201_v37 = vmul.f32 %v7273_v29, %v7191_v11  ;;  %v1719_v51 = vmul.f32 %v7255_v26, %v7255_v26  ;;  %v1718_v52 = vmul.f32 %v7267_v28, %v7267_v28  ;;  %v7391_v55 = vld [vmem:[#allocation7] sm:$0xff]  ;;  %v2051_v57 = vld [vmem:[#allocation9 + $0x8] sm:$0xff]  ;;  %v2053_v59 = vld [vmem:[#allocation9 + $0x18] sm:$0xff]  ;;  %s651_s28 = scalar_lea.vmem %s8232_s0, %s8238_s19 }
  0xdd   : > { %5658 = vmatpush3.msra.mxu0 %v7173_v6  ;;  %5684 = vmatpush3.msra.mxu1 %v7217_v17  ;;  %v1717_v53 = vmul.f32 %v7273_v29, %v7273_v29  ;;  %v2050_v56 = vld [vmem:[#allocation9] sm:$0xff] }
  0xde   : > { %5659 = vmatprep.subr.mxu0 %v7182_v9  ;;  %5685 = vmatprep.subr.mxu1 %v7239_v22 }
  0xdf   : > { %5660 = vmatpush3.msra.mxu0 %v7182_v9  ;;  %5686 = vmatpush3.msra.mxu1 %v7239_v22 }
  0xe0   : > { %5661 = vmatprep.subr.mxu0 %v7191_v11  ;;  %5687 = vmatprep.subr.mxu1 %v7379_v54 }
  0xe1   : > { %5662 = vmatpush3.msra.mxu0 %v7191_v11  ;;  %5688 = vmatpush3.msra.mxu1 %v7379_v54 }
  0xe2   : > { %5664 = vmatmul.mubr.msk.f32.vlgmr.msra.gmra.mxu0 %vm684_vm0, %v7199_v13  ;;  %5703 = vmatprep.subr.mxu0 %v7202_v14 }
  0xe3   : > { %5704 = vmatpush3.msra.mxu0 %v7202_v14  ;;  %5666 = vmatprep.mubr.msk.f32.mxu0 %vm684_vm0, %v7206_v15 }
  0xe4   : > { %5705 = vmatprep.subr.mxu0 %v7211_v16  ;;  %5689 = vmatprep.subr.mxu1 %v7391_v55 }
  0xe5   : > { %5706 = vmatpush3.msra.mxu0 %v7211_v16  ;;  %5690 = vmatpush3.msra.mxu1 %v7391_v55 }
  0xe6   : > { %5667 = vmatmul.mubr.msk.f32.gmra.mxu0 %vm684_vm0, %v7222_v18  ;;  %5707 = vmatprep.subr.mxu0 %v7225_v19 }
  0xe7   : > { %5708 = vmatpush3.msra.mxu0 %v7225_v19  ;;  %5669 = vmatprep.mubr.msk.f32.mxu0 %vm684_vm0, %v7228_v20 }
  0xe8   : > { %5709 = vmatprep.subr.mxu0 %v7233_v21  ;;  %5731 = vmatprep.subr.mxu1 %v7176_v7 }
  0xe9   : > { %5710 = vmatpush3.msra.mxu0 %v7233_v21 }
  0xea   : > { %5670 = vmatmul.mubr.msk.f32.gmra.mxu0 %vm684_vm0, %v7244_v23  ;;  %5711 = vmatprep.subr.mxu0 %v7247_v24 }
  0xeb   : > { %5712 = vmatpush3.msra.mxu0 %v7247_v24  ;;  %5672 = vmatprep.mubr.msk.f32.mxu0 %vm684_vm0, %v7250_v25 }
  0xec   : > { %5713 = vmatprep.subr.mxu0 %v7255_v26 }
  0xed   : > { %5714 = vmatpush3.msra.mxu0 %v7255_v26 }
  0xee   : > { %5673 = vmatmul.mubr.msk.f32.gmra.mxu0 %vm684_vm0, %v7264_v27  ;;  %5715 = vmatprep.subr.mxu0 %v7267_v28 }
  0xef   : > { %5716 = vmatpush3.msra.mxu0 %v7267_v28  ;;  %5719 = vmatprep.mubr.msk.f32.mxu0 %vm684_vm0, %v7156_v3 }
  0xf0   : > { %5717 = vmatprep.subr.mxu0 %v7273_v29 }
  0xf1   : > { %5718 = vmatpush3.msra.mxu0 %v7273_v29 }
  0xf2   : > { %5720 = vmatmul.mubr.msk.f32.vlgmr.msra.gmra.mxu0 %vm684_vm0, %v7199_v13  ;;  %5759 = vmatprep.subr.mxu0 %v1208_v30 }
  0xf3   : > { %5760 = vmatpush3.msra.mxu0 %v1208_v30  ;;  %5722 = vmatprep.mubr.msk.f32.mxu0 %vm684_vm0, %v7206_v15 }
  0xf4   : > { %5761 = vmatprep.subr.mxu0 %v1207_v31 }
  0xf5   : > { %5762 = vmatpush3.msra.mxu0 %v1207_v31 }
  0xf6   : > { %5723 = vmatmul.mubr.msk.f32.gmra.mxu0 %vm684_vm0, %v7222_v18  ;;  %5763 = vmatprep.subr.mxu0 %v1206_v32 }
  0xf7   : > { %5764 = vmatpush3.msra.mxu0 %v1206_v32  ;;  %5725 = vmatprep.mubr.msk.f32.mxu0 %vm684_vm0, %v7228_v20 }
  0xf8   : > { %5765 = vmatprep.subr.mxu0 %v1205_v33 }
  0xf9   : > { %5766 = vmatpush3.msra.mxu0 %v1205_v33 }
  0xfa   : > { %5726 = vmatmul.mubr.msk.f32.gmra.mxu0 %vm684_vm0, %v7244_v23  ;;  %5767 = vmatprep.subr.mxu0 %v1204_v34 }
  0xfb   : > { %5768 = vmatpush3.msra.mxu0 %v1204_v34  ;;  %5728 = vmatprep.mubr.msk.f32.mxu0 %vm684_vm0, %v7250_v25 }
  0xfc   : > { %5769 = vmatprep.subr.mxu0 %v1203_v35 }
  0xfd   : > { %5770 = vmatpush3.msra.mxu0 %v1203_v35  ;;  %v2058_v35 = vld [vmem:[#allocation10 + $0x20] sm:$0xff] }
  0xfe   : > { %5729 = vmatmul.mubr.msk.f32.gmra.mxu0 %vm684_vm0, %v7264_v27  ;;  %5771 = vmatprep.subr.mxu0 %v1202_v36 }
  0xff   : > { %5772 = vmatpush3.msra.mxu0 %v1202_v36  ;;  %5775 = vmatprep.mubr.msk.f32.mxu0 %vm684_vm0, %v7156_v3 }
 0x100   : > { %5773 = vmatprep.subr.mxu0 %v1201_v37 }
 0x101   : > { %5774 = vmatpush3.msra.mxu0 %v1201_v37  ;;  %v2057_v37 = vld [vmem:[#allocation10 + $0x18] sm:$0xff] }
 0x102   : > { %5776 = vmatmul.mubr.msk.f32.vlgmr.msra.gmra.mxu0 %vm684_vm0, %v7199_v13  ;;  %5815 = vmatprep.subr.mxu0 %v1474_v38 }
 0x103   : > { %5816 = vmatpush3.msra.mxu0 %v1474_v38  ;;  %5778 = vmatprep.mubr.msk.f32.mxu0 %vm684_vm0, %v7206_v15 }
 0x104   : > { %5817 = vmatprep.subr.mxu0 %v1473_v39 }
 0x105   : > { %5818 = vmatpush3.msra.mxu0 %v1473_v39  ;;  %v2056_v39 = vld [vmem:[#allocation10 + $0x10] sm:$0xff] }
 0x106   : > { %5779 = vmatmul.mubr.msk.f32.gmra.mxu0 %vm684_vm0, %v7222_v18  ;;  %5819 = vmatprep.subr.mxu0 %v1472_v40 }
 0x107   : > { %5820 = vmatpush3.msra.mxu0 %v1472_v40  ;;  %5781 = vmatprep.mubr.msk.f32.mxu0 %vm684_vm0, %v7228_v20 }
 0x108   : > { %5821 = vmatprep.subr.mxu0 %v1471_v41 }
 0x109   : > { %5822 = vmatpush3.msra.mxu0 %v1471_v41  ;;  %v2055_v41 = vld [vmem:[#allocation10 + $0x8] sm:$0xff] }
 0x10a   : > { %5782 = vmatmul.mubr.msk.f32.gmra.mxu0 %vm684_vm0, %v7244_v23  ;;  %5823 = vmatprep.subr.mxu0 %v1470_v42 }
 0x10b   : > { %5824 = vmatpush3.msra.mxu0 %v1470_v42  ;;  %5784 = vmatprep.mubr.msk.f32.mxu0 %vm684_vm0, %v7250_v25 }
 0x10c   : > { %5825 = vmatprep.subr.mxu0 %v1469_v43 }
 0x10d   : > { %5826 = vmatpush3.msra.mxu0 %v1469_v43  ;;  %v2054_v43 = vld [vmem:[#allocation10] sm:$0xff] }
 0x10e   : > { %5785 = vmatmul.mubr.msk.f32.gmra.mxu0 %vm684_vm0, %v7264_v27  ;;  %5827 = vmatprep.subr.mxu0 %v1468_v44 }
 0x10f   : > { %5828 = vmatpush3.msra.mxu0 %v1468_v44  ;;  %5831 = vmatprep.mubr.msk.f32.mxu0 %vm684_vm0, %v7156_v3 }
 0x110   : > { %5829 = vmatprep.subr.mxu0 %v1467_v45 }
 0x111   : > { %5830 = vmatpush3.msra.mxu0 %v1467_v45 }
 0x112   : > { %5832 = vmatmul.mubr.msk.f32.vlgmr.msra.gmra.mxu0 %vm684_vm0, %v7199_v13  ;;  %5871 = vmatprep.subr.mxu0 %v1724_v46 }
 0x113   : > { %5872 = vmatpush3.msra.mxu0 %v1724_v46  ;;  %5834 = vmatprep.mubr.msk.f32.mxu0 %vm684_vm0, %v7206_v15 }
 0x114   : > { %5873 = vmatprep.subr.mxu0 %v1723_v47 }
 0x115   : > { %5874 = vmatpush3.msra.mxu0 %v1723_v47 }
 0x116   : > { %5835 = vmatmul.mubr.msk.f32.gmra.mxu0 %vm684_vm0, %v7222_v18  ;;  %5875 = vmatprep.subr.mxu0 %v1722_v48 }
 0x117   : > { %5876 = vmatpush3.msra.mxu0 %v1722_v48  ;;  %5837 = vmatprep.mubr.msk.f32.mxu0 %vm684_vm0, %v7228_v20 }
 0x118   : > { %5877 = vmatprep.subr.mxu0 %v1721_v49 }
 0x119   : > { %5878 = vmatpush3.msra.mxu0 %v1721_v49 }
 0x11a   : > { %5838 = vmatmul.mubr.msk.f32.gmra.mxu0 %vm684_vm0, %v7244_v23  ;;  %5879 = vmatprep.subr.mxu0 %v1720_v50 }
 0x11b   : > { %5880 = vmatpush3.msra.mxu0 %v1720_v50  ;;  %5840 = vmatprep.mubr.msk.f32.mxu0 %vm684_vm0, %v7250_v25 }
 0x11c   : > { %5881 = vmatprep.subr.mxu0 %v1719_v51 }
 0x11d   : > { %5882 = vmatpush3.msra.mxu0 %v1719_v51 }
 0x11e   : > { %5841 = vmatmul.mubr.msk.f32.gmra.mxu0 %vm684_vm0, %v7264_v27  ;;  %5883 = vmatprep.subr.mxu0 %v1718_v52 }
 0x11f   : > { %5884 = vmatpush3.msra.mxu0 %v1718_v52  ;;  %5887 = vmatprep.mubr.msk.f32.mxu0 %vm684_vm0, %v7156_v3  ;;  %v7553_v52 = vld [vmem:[#allocation12] sm:$0xff] }
 0x120   : > { %5885 = vmatprep.subr.mxu0 %v1717_v53 }
 0x121   : > { %5886 = vmatpush3.msra.mxu0 %v1717_v53 }
 0x122   : > { %5888 = vmatmul.mubr.msk.f32.vlgmr.msra.gmra.mxu0 %vm684_vm0, %v7199_v13  ;;  %5927 = vmatprep.subr.mxu0 %v7146_v0 }
 0x123   : > { %5928 = vmatpush3.msra.mxu0 %v7146_v0  ;;  %5890 = vmatprep.mubr.msk.f32.mxu0 %vm684_vm0, %v7206_v15 }
 0x124   : > { %5929 = vmatprep.subr.mxu0 %v7149_v1 }
 0x125   : > { %5930 = vmatpush3.msra.mxu0 %v7149_v1 }
 0x126   : > { %5891 = vmatmul.mubr.msk.f32.gmra.mxu0 %vm684_vm0, %v7222_v18  ;;  %5931 = vmatprep.subr.mxu0 %v7154_v2 }
 0x127   : > { %5932 = vmatpush3.msra.mxu0 %v7154_v2  ;;  %5893 = vmatprep.mubr.msk.f32.mxu0 %vm684_vm0, %v7228_v20 }
 0x128   : > { %5933 = vmatprep.subr.mxu0 %v7163_v4 }
 0x129   : > { %5934 = vmatpush3.msra.mxu0 %v7163_v4 }
 0x12a   : > { %5894 = vmatmul.mubr.msk.f32.gmra.mxu0 %vm684_vm0, %v7244_v23  ;;  %5935 = vmatprep.subr.mxu0 %v7168_v5 }
 0x12b   : > { %5936 = vmatpush3.msra.mxu0 %v7168_v5  ;;  %5896 = vmatprep.mubr.msk.f32.mxu0 %vm684_vm0, %v7250_v25 }
 0x12c   : > { %5937 = vmatprep.subr.mxu0 %v7173_v6 }
 0x12d   : > { %5938 = vmatpush3.msra.mxu0 %v7173_v6 }
 0x12e   : > { %5897 = vmatmul.mubr.msk.f32.gmra.mxu0 %vm684_vm0, %v7264_v27  ;;  %5939 = vmatprep.subr.mxu0 %v7182_v9 }
 0x12f   : > { %5940 = vmatpush3.msra.mxu0 %v7182_v9  ;;  %5943 = vmatprep.mubr.msk.f32.mxu0 %vm684_vm0, %v2050_v56 }
 0x130   : > { %5941 = vmatprep.subr.mxu0 %v7191_v11 }
 0x131   : > { %5942 = vmatpush3.msra.mxu0 %v7191_v11 }
 0x132   : > { %5944 = vmatmul.mubr.msk.f32.vlgmr.msra.gmra.mxu0 %vm684_vm0, %v2051_v57  ;;  %5971 = vmatprep.subr.mxu0 %v7202_v14 }
 0x133   : > { %5972 = vmatpush3.msra.mxu0 %v7202_v14  ;;  %5946 = vmatprep.mubr.msk.f32.mxu0 %vm684_vm0, %v2052_v58 }
 0x134   : > { %5973 = vmatprep.subr.mxu0 %v7211_v16 }
 0x135   : > { %5974 = vmatpush3.msra.mxu0 %v7211_v16 }
 0x136   : > { %5947 = vmatmul.mubr.msk.f32.gmra.mxu0 %vm684_vm0, %v2053_v59  ;;  %5975 = vmatprep.subr.mxu0 %v7225_v19 }
 0x137   : > { %5976 = vmatpush3.msra.mxu0 %v7225_v19  ;;  %5987 = vmatprep.mubr.msk.f32.mxu0 %vm684_vm0, %v2050_v56 }
 0x138   : > { %5977 = vmatprep.subr.mxu0 %v7233_v21 }
 0x139   : > { %5978 = vmatpush3.msra.mxu0 %v7233_v21 }
 0x13a   : > { %5979 = vmatprep.subr.mxu0 %v7247_v24 }
 0x13b   : > { %5980 = vmatpush3.msra.mxu0 %v7247_v24 }
 0x13c   : > { %5981 = vmatprep.subr.mxu0 %v7255_v26 }
 0x13d   : > { %5982 = vmatpush3.msra.mxu0 %v7255_v26 }
 0x13e   : > { %5983 = vmatprep.subr.mxu0 %v7267_v28 }
 0x13f   : > { %5984 = vmatpush3.msra.mxu0 %v7267_v28 }
 0x140   : > { %5985 = vmatprep.subr.mxu0 %v7273_v29 }
 0x141   : > { %5986 = vmatpush3.msra.mxu0 %v7273_v29 }
 0x142   : > { %5988 = vmatmul.mubr.msk.f32.vlgmr.msra.gmra.mxu0 %vm684_vm0, %v2051_v57 }
 0x143   : > { %5990 = vmatprep.mubr.msk.f32.mxu0 %vm684_vm0, %v2052_v58 }
 0x146   : > { %5991 = vmatmul.mubr.msk.f32.gmra.mxu0 %vm684_vm0, %v2053_v59 }
 0x147   : > { %6023 = vmatprep.mubr.msk.f32.mxu0 %vm2446_vm1, %v7553_v52 }
 0x1a2   : > { %v5665_v60 = vpop.f32.mrf.mxu0 }
 0x1a4   : > { %v775_v61 = vpop.f32.mrf.mxu0 }
 0x1a5   : > { %5691 = vmatprep.mubr.msk.f32.mxu1 %vm684_vm0, %v775_v61 }
 0x1a6   : > { %v5668_v62 = vpop.f32.mrf.mxu0  ;;  %5692 = vmatmul.mubr.msk.f32.vlgmr.msra.gmra.mxu1 %vm684_vm0, %v5665_v60 }
 0x1a7   : > { %5732 = vmatpush3.msra.mxu1 %v7176_v7 }
 0x1a8   : > { %v785_v63 = vpop.f32.mrf.mxu0  ;;  %5733 = vmatprep.subr.mxu1 %v7178_v8 }
 0x1a9   : > { %5694 = vmatprep.mubr.msk.f32.mxu1 %vm684_vm0, %v785_v63  ;;  %5734 = vmatpush3.msra.mxu1 %v7178_v8 }
 0x1aa   : > { %v5671_v0 = vpop.f32.mrf.mxu0  ;;  %5695 = vmatmul.mubr.msk.f32.gmra.mxu1 %vm684_vm0, %v5668_v62  ;;  %5735 = vmatprep.subr.mxu1 %v7187_v10 }
 0x1ab   : > { %5736 = vmatpush3.msra.mxu1 %v7187_v10 }
 0x1ac   : > { %v795_v1 = vpop.f32.mrf.mxu0  ;;  %5737 = vmatprep.subr.mxu1 %v7196_v12 }
 0x1ad   : > { %5697 = vmatprep.mubr.msk.f32.mxu1 %vm684_vm0, %v795_v1  ;;  %5738 = vmatpush3.msra.mxu1 %v7196_v12 }
 0x1ae   : > { %v5674_v2 = vpop.f32.mrf.mxu0  ;;  %5698 = vmatmul.mubr.msk.f32.gmra.mxu1 %vm684_vm0, %v5671_v0  ;;  %5739 = vmatprep.subr.mxu1 %v7217_v17 }
 0x1af   : > { %5740 = vmatpush3.msra.mxu1 %v7217_v17 }
 0x1b0   : > { %v805_v3 = vpop.f32.mrf.mxu0  ;;  %5741 = vmatprep.subr.mxu1 %v7239_v22 }
 0x1b1   : > { %5700 = vmatprep.mubr.msk.f32.mxu1 %vm684_vm0, %v805_v3  ;;  %5742 = vmatpush3.msra.mxu1 %v7239_v22  ;;  %v7563_v3 = vld [vmem:[#allocation13 + $0x18] sm:$0xff] }
 0x1b2   : > { %5701 = vmatmul.mubr.msk.f32.gmra.mxu1 %vm684_vm0, %v5674_v2  ;;  %v5721_v4 = vpop.f32.mrf.mxu0  ;;  %5743 = vmatprep.subr.mxu1 %v7379_v54 }
 0x1b3   : > { %5744 = vmatpush3.msra.mxu1 %v7379_v54 }
 0x1b4   : > { %v1009_v5 = vpop.f32.mrf.mxu0  ;;  %5745 = vmatprep.subr.mxu1 %v7391_v55 }
 0x1b5   : > { %5746 = vmatpush3.msra.mxu1 %v7391_v55  ;;  %5747 = vmatprep.mubr.msk.f32.mxu1 %vm684_vm0, %v1009_v5 }
 0x1b6   : > { %v5724_v6 = vpop.f32.mrf.mxu0  ;;  %5748 = vmatmul.mubr.msk.f32.vlgmr.msra.gmra.mxu1 %vm684_vm0, %v5721_v4  ;;  %5787 = vmatprep.subr.mxu1 %v7176_v7  ;;  %v7565_v4 = vld [vmem:[#allocation13 + $0x10] sm:$0xff] }
 0x1b7   : > { %5788 = vmatpush3.msra.mxu1 %v7176_v7 }
 0x1b8   : > { %v1019_v9 = vpop.f32.mrf.mxu0  ;;  %5789 = vmatprep.subr.mxu1 %v7178_v8 }
 0x1b9   : > { %5750 = vmatprep.mubr.msk.f32.mxu1 %vm684_vm0, %v1019_v9  ;;  %5790 = vmatpush3.msra.mxu1 %v7178_v8 }
 0x1ba   : > { %v5727_v11 = vpop.f32.mrf.mxu0  ;;  %5751 = vmatmul.mubr.msk.f32.gmra.mxu1 %vm684_vm0, %v5724_v6  ;;  %5791 = vmatprep.subr.mxu1 %v7187_v10 }
 0x1bb   : > { %5792 = vmatpush3.msra.mxu1 %v7187_v10 }
 0x1bc   : > { %v1029_v13 = vpop.f32.mrf.mxu0  ;;  %5793 = vmatprep.subr.mxu1 %v7196_v12 }
 0x1bd   : > { %5753 = vmatprep.mubr.msk.f32.mxu1 %vm684_vm0, %v1029_v13  ;;  %5794 = vmatpush3.msra.mxu1 %v7196_v12 }
 0x1be   : > { %v5730_v14 = vpop.f32.mrf.mxu0  ;;  %5754 = vmatmul.mubr.msk.f32.gmra.mxu1 %vm684_vm0, %v5727_v11  ;;  %5795 = vmatprep.subr.mxu1 %v7217_v17 }
 0x1bf   : > { %5796 = vmatpush3.msra.mxu1 %v7217_v17 }
 0x1c0   : > { %v1039_v15 = vpop.f32.mrf.mxu0  ;;  %5797 = vmatprep.subr.mxu1 %v7239_v22 }
 0x1c1   : > { %5756 = vmatprep.mubr.msk.f32.mxu1 %vm684_vm0, %v1039_v15  ;;  %5798 = vmatpush3.msra.mxu1 %v7239_v22 }
 0x1c2   : > { %5757 = vmatmul.mubr.msk.f32.gmra.mxu1 %vm684_vm0, %v5730_v14  ;;  %v5777_v16 = vpop.f32.mrf.mxu0  ;;  %5799 = vmatprep.subr.mxu1 %v7379_v54 }
 0x1c3   : > { %5800 = vmatpush3.msra.mxu1 %v7379_v54 }
 0x1c4   : > { %v1275_v18 = vpop.f32.mrf.mxu0  ;;  %5801 = vmatprep.subr.mxu1 %v7391_v55 }
 0x1c5   : > { %5802 = vmatpush3.msra.mxu1 %v7391_v55  ;;  %5803 = vmatprep.mubr.msk.f32.mxu1 %vm684_vm0, %v1275_v18 }
 0x1c6   : > { %v5780_v19 = vpop.f32.mrf.mxu0  ;;  %5804 = vmatmul.mubr.msk.f32.vlgmr.msra.gmra.mxu1 %vm684_vm0, %v5777_v16  ;;  %5843 = vmatprep.subr.mxu1 %v7176_v7 }
 0x1c7   : > { %5844 = vmatpush3.msra.mxu1 %v7176_v7 }
 0x1c8   : > { %v1285_v20 = vpop.f32.mrf.mxu0  ;;  %5845 = vmatprep.subr.mxu1 %v7178_v8 }
 0x1c9   : > { %5806 = vmatprep.mubr.msk.f32.mxu1 %vm684_vm0, %v1285_v20  ;;  %5846 = vmatpush3.msra.mxu1 %v7178_v8 }
 0x1ca   : > { %v5783_v21 = vpop.f32.mrf.mxu0  ;;  %5807 = vmatmul.mubr.msk.f32.gmra.mxu1 %vm684_vm0, %v5780_v19  ;;  %5847 = vmatprep.subr.mxu1 %v7187_v10 }
 0x1cb   : > { %5848 = vmatpush3.msra.mxu1 %v7187_v10 }
 0x1cc   : > { %v1295_v23 = vpop.f32.mrf.mxu0  ;;  %5849 = vmatprep.subr.mxu1 %v7196_v12 }
 0x1cd   : > { %5809 = vmatprep.mubr.msk.f32.mxu1 %vm684_vm0, %v1295_v23  ;;  %5850 = vmatpush3.msra.mxu1 %v7196_v12 }
 0x1ce   : > { %v5786_v24 = vpop.f32.mrf.mxu0  ;;  %5810 = vmatmul.mubr.msk.f32.gmra.mxu1 %vm684_vm0, %v5783_v21  ;;  %5851 = vmatprep.subr.mxu1 %v7217_v17 }
 0x1cf   : > { %5852 = vmatpush3.msra.mxu1 %v7217_v17 }
 0x1d0   : > { %v1305_v25 = vpop.f32.mrf.mxu0  ;;  %5853 = vmatprep.subr.mxu1 %v7239_v22 }
 0x1d1   : > { %5812 = vmatprep.mubr.msk.f32.mxu1 %vm684_vm0, %v1305_v25  ;;  %5854 = vmatpush3.msra.mxu1 %v7239_v22 }
 0x1d2   : > { %5813 = vmatmul.mubr.msk.f32.gmra.mxu1 %vm684_vm0, %v5786_v24  ;;  %v5833_v26 = vpop.f32.mrf.mxu0  ;;  %5855 = vmatprep.subr.mxu1 %v7379_v54 }
 0x1d3   : > { %5856 = vmatpush3.msra.mxu1 %v7379_v54 }
 0x1d4   : > { %v1541_v27 = vpop.f32.mrf.mxu0  ;;  %5857 = vmatprep.subr.mxu1 %v7391_v55 }
 0x1d5   : > { %5858 = vmatpush3.msra.mxu1 %v7391_v55  ;;  %5859 = vmatprep.mubr.msk.f32.mxu1 %vm684_vm0, %v1541_v27 }
 0x1d6   : > { %v5836_v28 = vpop.f32.mrf.mxu0  ;;  %5860 = vmatmul.mubr.msk.f32.vlgmr.msra.gmra.mxu1 %vm684_vm0, %v5833_v26  ;;  %5899 = vmatprep.subr.mxu1 %v7176_v7 }
 0x1d7   : > { %5900 = vmatpush3.msra.mxu1 %v7176_v7 }
 0x1d8   : > { %v1551_v29 = vpop.f32.mrf.mxu0  ;;  %5901 = vmatprep.subr.mxu1 %v7178_v8 }
 0x1d9   : > { %5862 = vmatprep.mubr.msk.f32.mxu1 %vm684_vm0, %v1551_v29  ;;  %5902 = vmatpush3.msra.mxu1 %v7178_v8 }
 0x1da   : > { %v5839_v30 = vpop.f32.mrf.mxu0  ;;  %5863 = vmatmul.mubr.msk.f32.gmra.mxu1 %vm684_vm0, %v5836_v28  ;;  %5903 = vmatprep.subr.mxu1 %v7187_v10 }
 0x1db   : > { %5904 = vmatpush3.msra.mxu1 %v7187_v10 }
 0x1dc   : > { %v1561_v31 = vpop.f32.mrf.mxu0  ;;  %5905 = vmatprep.subr.mxu1 %v7196_v12 }
 0x1dd   : > { %5865 = vmatprep.mubr.msk.f32.mxu1 %vm684_vm0, %v1561_v31  ;;  %5906 = vmatpush3.msra.mxu1 %v7196_v12  ;;  %v2061_v12 = vld [vmem:[#allocation10 + $0x38] sm:$0xff] }
 0x1de   : > { %v5842_v7 = vpop.f32.mrf.mxu0  ;;  %5866 = vmatmul.mubr.msk.f32.gmra.mxu1 %vm684_vm0, %v5839_v30  ;;  %5907 = vmatprep.subr.mxu1 %v7217_v17 }
 0x1df   : > { %5908 = vmatpush3.msra.mxu1 %v7217_v17  ;;  %v2060_v17 = vld [vmem:[#allocation10 + $0x30] sm:$0xff] }
 0x1e0   : > { %v1571_v8 = vpop.f32.mrf.mxu0  ;;  %5909 = vmatprep.subr.mxu1 %v7239_v22 }
 0x1e1   : > { %5868 = vmatprep.mubr.msk.f32.mxu1 %vm684_vm0, %v1571_v8  ;;  %5910 = vmatpush3.msra.mxu1 %v7239_v22  ;;  %v2059_v22 = vld [vmem:[#allocation10 + $0x28] sm:$0xff] }
 0x1e2   : > { %5869 = vmatmul.mubr.msk.f32.gmra.mxu1 %vm684_vm0, %v5842_v7  ;;  %v5889_v10 = vpop.f32.mrf.mxu0  ;;  %5911 = vmatprep.subr.mxu1 %v7379_v54 }
 0x1e3   : > { %5912 = vmatpush3.msra.mxu1 %v7379_v54 }
 0x1e4   : > { %v1791_v32 = vpop.f32.mrf.mxu0  ;;  %5913 = vmatprep.subr.mxu1 %v7391_v55 }
 0x1e5   : > { %5914 = vmatpush3.msra.mxu1 %v7391_v55  ;;  %5915 = vmatprep.mubr.msk.f32.mxu1 %vm684_vm0, %v1791_v32 }
 0x1e6   : > { %v5892_v33 = vpop.f32.mrf.mxu0  ;;  %5916 = vmatmul.mubr.msk.f32.vlgmr.msra.gmra.mxu1 %vm684_vm0, %v5889_v10  ;;  %5949 = vmatprep.subr.mxu1 %v2061_v12 }
 0x1e7   : > { %5950 = vmatpush3.msra.mxu1 %v2061_v12 }
 0x1e8   : > { %v1801_v34 = vpop.f32.mrf.mxu0  ;;  %5951 = vmatprep.subr.mxu1 %v2060_v17 }
 0x1e9   : > { %5918 = vmatprep.mubr.msk.f32.mxu1 %vm684_vm0, %v1801_v34  ;;  %5952 = vmatpush3.msra.mxu1 %v2060_v17 }
 0x1ea   : > { %v5895_v36 = vpop.f32.mrf.mxu0  ;;  %5919 = vmatmul.mubr.msk.f32.gmra.mxu1 %vm684_vm0, %v5892_v33  ;;  %5953 = vmatprep.subr.mxu1 %v2059_v22 }
 0x1eb   : > { %5954 = vmatpush3.msra.mxu1 %v2059_v22 }
 0x1ec   : > { %v1811_v38 = vpop.f32.mrf.mxu0  ;;  %5955 = vmatprep.subr.mxu1 %v2058_v35 }
 0x1ed   : > { %5921 = vmatprep.mubr.msk.f32.mxu1 %vm684_vm0, %v1811_v38  ;;  %5956 = vmatpush3.msra.mxu1 %v2058_v35 }
 0x1ee   : > { %v5898_v40 = vpop.f32.mrf.mxu0  ;;  %5922 = vmatmul.mubr.msk.f32.gmra.mxu1 %vm684_vm0, %v5895_v36  ;;  %5957 = vmatprep.subr.mxu1 %v2057_v37 }
 0x1ef   : > { %5958 = vmatpush3.msra.mxu1 %v2057_v37 }
 0x1f0   : > { %v1821_v42 = vpop.f32.mrf.mxu0  ;;  %5959 = vmatprep.subr.mxu1 %v2056_v39 }
 0x1f1   : > { %5924 = vmatprep.mubr.msk.f32.mxu1 %vm684_vm0, %v1821_v42  ;;  %5960 = vmatpush3.msra.mxu1 %v2056_v39 }
 0x1f2   : > { %5925 = vmatmul.mubr.msk.f32.gmra.mxu1 %vm684_vm0, %v5898_v40  ;;  %v5945_v44 = vpop.f32.mrf.mxu0  ;;  %5961 = vmatprep.subr.mxu1 %v2055_v41 }
 0x1f3   : > { %5962 = vmatpush3.msra.mxu1 %v2055_v41 }
 0x1f4   : > { %v2140_v45 = vpop.f32.mrf.mxu0  ;;  %5963 = vmatprep.subr.mxu1 %v2054_v43 }
 0x1f5   : > { %5964 = vmatpush3.msra.mxu1 %v2054_v43  ;;  %5965 = vmatprep.mubr.msk.f32.mxu1 %vm684_vm0, %v2140_v45 }
 0x1f6   : > { %v5948_v46 = vpop.f32.mrf.mxu0  ;;  %5966 = vmatmul.mubr.msk.f32.vlgmr.msra.gmra.mxu1 %vm684_vm0, %v5945_v44  ;;  %5993 = vmatprep.subr.mxu1 %v2061_v12 }
 0x1f7   : > { %5994 = vmatpush3.msra.mxu1 %v2061_v12 }
 0x1f8   : > { %v2150_v47 = vpop.f32.mrf.mxu0  ;;  %5995 = vmatprep.subr.mxu1 %v2060_v17 }
 0x1f9   : > { %5968 = vmatprep.mubr.msk.f32.mxu1 %vm684_vm0, %v2150_v47  ;;  %5996 = vmatpush3.msra.mxu1 %v2060_v17 }
 0x1fa   : > { %5969 = vmatmul.mubr.msk.f32.gmra.mxu1 %vm684_vm0, %v5948_v46  ;;  %5997 = vmatprep.subr.mxu1 %v2059_v22 }
 0x1fb   : > { %5998 = vmatpush3.msra.mxu1 %v2059_v22 }
 0x1fc   : > { %5999 = vmatprep.subr.mxu1 %v2058_v35 }
 0x1fd   : > { %6000 = vmatpush3.msra.mxu1 %v2058_v35 }
 0x1fe   : > { %6001 = vmatprep.subr.mxu1 %v2057_v37 }
 0x1ff   : > { %6002 = vmatpush3.msra.mxu1 %v2057_v37 }
 0x200   : > { %6003 = vmatprep.subr.mxu1 %v2056_v39 }
 0x201   : > { %6004 = vmatpush3.msra.mxu1 %v2056_v39 }
 0x202   : > { %v5989_v48 = vpop.f32.mrf.mxu0  ;;  %6005 = vmatprep.subr.mxu1 %v2055_v41 }
 0x203   : > { %6006 = vmatpush3.msra.mxu1 %v2055_v41 }
 0x204   : > { %v2322_v49 = vpop.f32.mrf.mxu0  ;;  %6007 = vmatprep.subr.mxu1 %v2054_v43 }
 0x205   : > { %6008 = vmatpush3.msra.mxu1 %v2054_v43  ;;  %6009 = vmatprep.mubr.msk.f32.mxu1 %vm684_vm0, %v2322_v49 }
 0x206   : > { %v5992_v50 = vpop.f32.mrf.mxu0  ;;  %6010 = vmatmul.mubr.msk.f32.vlgmr.msra.gmra.mxu1 %vm684_vm0, %v5989_v48  ;;  %6029 = vmatprep.subr.mxu1 %v7563_v3 }
 0x207   : > { %6030 = vmatpush3.msra.mxu1 %v7563_v3 }
 0x208   : > { %v2332_v51 = vpop.f32.mrf.mxu0  ;;  %6031 = vmatprep.subr.mxu1 %v7565_v4 }
 0x209   : > { %6012 = vmatprep.mubr.msk.f32.mxu1 %vm684_vm0, %v2332_v51  ;;  %6032 = vmatpush3.msra.mxu1 %v7565_v4 }
 0x20a   : > { %6013 = vmatmul.mubr.msk.f32.gmra.mxu1 %vm684_vm0, %v5992_v50  ;;  %vm4939_vm0 = vcmask 15360  }
 0x266   : > { %v5693_v53 = vpop.f32.mrf.mxu1 }
 0x267   : > { %v1178_v32 = vmul.f32 %v5693_v53, %v5693_v53 }
 0x268   : > { %v904_v54 = vpop.f32.mrf.mxu1 }
 0x269   : > { %v1177_v22 = vmul.f32 %v904_v54, %v904_v54 }
 0x26a   : > { %v5696_v55 = vpop.f32.mrf.mxu1 }
 0x26b   : > { %v1180_v36 = vmul.f32 %v5696_v55, %v5696_v55 }
 0x26c   : > { %v914_v56 = vpop.f32.mrf.mxu1 }
 0x26d   : > { %v1179_v39 = vmul.f32 %v914_v56, %v914_v56 }
 0x26e   : > { %v5699_v57 = vpop.f32.mrf.mxu1 }
 0x26f   : > { %v1182_v42 = vmul.f32 %v5699_v57, %v5699_v57 }
 0x270   : > { %v924_v58 = vpop.f32.mrf.mxu1 }
 0x271   : > { %v1181_v45 = vmul.f32 %v924_v58, %v924_v58 }
 0x272   : > { %v5702_v59 = vpop.f32.mrf.mxu1 }
 0x273   : > { %v1184_v48 = vmul.f32 %v5702_v59, %v5702_v59 }
 0x274   : > { %v934_v60 = vpop.f32.mrf.mxu1 }
 0x275   : > { %v1183_v51 = vmul.f32 %v934_v60, %v934_v60 }
 0x276   : > { %v5749_v61 = vpop.f32.mrf.mxu1 }
 0x277   : > { %v7557_v62 = vmul.f32 %v5749_v61, %v5693_v53 }
 0x278   : > { %v1138_v63 = vpop.f32.mrf.mxu1 }
 0x279   : > { %v7559_v0 = vmul.f32 %v1138_v63, %v904_v54 }
 0x27a   : > { %v5752_v1 = vpop.f32.mrf.mxu1 }
 0x27b   : > { %v7561_v2 = vmul.f32 %v5752_v1, %v5696_v55 }
 0x27c   : > { %v1148_v5 = vpop.f32.mrf.mxu1 }
 0x27d   : > { %v7568_v6 = vmul.f32 %v1148_v5, %v914_v56 }
 0x27e   : > { %v7571_v9 = vpop.f32.mrf.mxu1 }
 0x27f   : > { %v7575_v11 = vmul.f32 %v7571_v9, %v5699_v57 }
 0x280   : > { %v7578_v13 = vpop.f32.mrf.mxu1 }
 0x281   : > { %v7581_v14 = vmul.f32 %v7578_v13, %v924_v58 }
 0x282   : > { %v7583_v15 = vpop.f32.mrf.mxu1 }
 0x283   : > { %v7586_v16 = vmul.f32 %v7583_v15, %v5702_v59  ;;  %v1190_v59 = vmul.f32 %v7571_v9, %v7571_v9 }
 0x284   : > { %v7588_v18 = vpop.f32.mrf.mxu1 }
 0x285   : > { %v7591_v19 = vmul.f32 %v7588_v18, %v934_v60 }
 0x286   : > { %v7593_v20 = vpop.f32.mrf.mxu1 }
 0x287   : > { %v1444_v21 = vsub.f32 %v7593_v20, %v7557_v62 }
 0x288   : > { %v7597_v23 = vpop.f32.mrf.mxu1 }
 0x289   : > { %v1443_v24 = vsub.f32 %v7597_v23, %v7559_v0 }
 0x28a   : > { %v7601_v25 = vpop.f32.mrf.mxu1 }
 0x28b   : > { %v1446_v26 = vsub.f32 %v7601_v25, %v7561_v2 }
 0x28c   : > { %v7605_v27 = vpop.f32.mrf.mxu1 }
 0x28d   : > { %v1445_v28 = vsub.f32 %v7605_v27, %v7568_v6  ;;  %v7668_v6 = vld [vmem:[#allocation12 + $0x10] sm:$0xff] }
 0x28e   : > { %v7609_v29 = vpop.f32.mrf.mxu1 }
 0x28f   : > { %v1448_v30 = vsub.f32 %v7609_v29, %v7575_v11  ;;  %v1453_v0 = vmul.f32 2.0, %v1445_v28 }
 0x290   : > { %v7613_v31 = vpop.f32.mrf.mxu1 }
 0x291   : > { %v1447_v7 = vsub.f32 %v7613_v31, %v7581_v14 }
 0x292   : > { %v7617_v8 = vpop.f32.mrf.mxu1 }
 0x293   : > { %v1450_v10 = vsub.f32 %v7617_v8, %v7586_v16 }
 0x294   : > { %v7621_v12 = vpop.f32.mrf.mxu1 }
 0x295   : > { %v1449_v17 = vsub.f32 %v7621_v12, %v7591_v19  ;;  %v1458_v11 = vmul.f32 2.0, %v1450_v10 }
 0x296   : > { %v5861_v33 = vpop.f32.mrf.mxu1 }
 0x297   : > { %v1710_v34 = vsub.f32 %v5861_v33, %v1178_v32  ;;  %v1186_v32 = vmul.f32 %v5749_v61, %v5749_v61 }
 0x298   : > { %v1670_v35 = vpop.f32.mrf.mxu1 }
 0x299   : > { %v1709_v37 = vsub.f32 %v1670_v35, %v1177_v22  ;;  %v1185_v22 = vmul.f32 %v1138_v63, %v1138_v63  ;;  %v1189_v63 = vmul.f32 %v7578_v13, %v7578_v13 }
 0x29a   : > { %v5864_v38 = vpop.f32.mrf.mxu1 }
 0x29b   : > { %v1712_v40 = vsub.f32 %v5864_v38, %v1180_v36  ;;  %v1188_v36 = vmul.f32 %v5752_v1, %v5752_v1 }
 0x29c   : > { %v1680_v41 = vpop.f32.mrf.mxu1 }
 0x29d   : > { %v1711_v43 = vsub.f32 %v1680_v41, %v1179_v39  ;;  %v1187_v41 = vmul.f32 %v1148_v5, %v1148_v5  ;;  %v1192_v5 = vmul.f32 %v7583_v15, %v7583_v15 }
 0x29e   : > { %v5867_v44 = vpop.f32.mrf.mxu1 }
 0x29f   : > { %v1714_v46 = vsub.f32 %v5867_v44, %v1182_v42 }
 0x2a0   : > { %v1690_v47 = vpop.f32.mrf.mxu1 }
 0x2a1   : > { %v1713_v49 = vsub.f32 %v1690_v47, %v1181_v45 }
 0x2a2   : > { %v5870_v50 = vpop.f32.mrf.mxu1 }
 0x2a3   : > { %v1716_v53 = vsub.f32 %v5870_v50, %v1184_v48 }
 0x2a4   : > { %v1700_v54 = vpop.f32.mrf.mxu1 }
 0x2a5   : > { %v1715_v33 = vsub.f32 %v1700_v54, %v1183_v51 }
 0x2a6   : > { %v5917_v55 = vpop.f32.mrf.mxu1 }
 0x2a7   : > { %v1960_v35 = vsub.f32 %v5917_v55, %v1186_v32 }
 0x2a8   : > { %v1920_v56 = vpop.f32.mrf.mxu1 }
 0x2a9   : > { %v1968_v38 = vadd.f32 %v1960_v35, %v1710_v34  ;;  %v1959_v57 = vsub.f32 %v1920_v56, %v1185_v22 }
 0x2aa   : > { %v5920_v39 = vpop.f32.mrf.mxu1 }
 0x2ab   : > { %v1976_v58 = vadd.f32 58.5225, %v1968_v38  ;;  %v1967_v42 = vadd.f32 %v1959_v57, %v1709_v37  ;;  %v1962_v44 = vsub.f32 %v5920_v39, %v1188_v36 }
 0x2ac   : > { %v1930_v60 = vpop.f32.mrf.mxu1 }
 0x2ad   : > { %6388 = vrcp.f32 %v1976_v58  ;;  %v1975_v45 = vadd.f32 58.5225, %v1967_v42  ;;  %v1970_v61 = vadd.f32 %v1962_v44, %v1712_v40  ;;  %v1961_v47 = vsub.f32 %v1930_v60, %v1187_v41 }
 0x2ae   : > { %v5923_v48 = vpop.f32.mrf.mxu1  ;;  %v1191_v40 = vmul.f32 %v7588_v18, %v7588_v18 }
 0x2af   : > { %6390 = vrcp.f32 %v1975_v45  ;;  %v1978_v1 = vadd.f32 58.5225, %v1970_v61  ;;  %v1969_v34 = vadd.f32 %v1961_v47, %v1711_v43  ;;  %v1964_v50 = vsub.f32 %v5923_v48, %v1190_v59  ;;  %v7665_v47 = vld [vmem:[#allocation12 + $0x8] sm:$0xff] }
 0x2b0   : > { %v1940_v37 = vpop.f32.mrf.mxu1  ;;  %v1461_v48 = vadd.f32 58.5225, %v1453_v0 }
 0x2b1   : > { %6392 = vrcp.f32 %v1978_v1  ;;  %v1977_v51 = vadd.f32 58.5225, %v1969_v34  ;;  %v1972_v9 = vadd.f32 %v1964_v50, %v1714_v46  ;;  %v1963_v54 = vsub.f32 %v1940_v37, %v1189_v63 }
 0x2b2   : > { %v5926_v32 = vpop.f32.mrf.mxu1  ;;  %v1456_v37 = vmul.f32 2.0, %v1448_v30 }
 0x2b3   : > { %6394 = vrcp.f32 %v1977_v51  ;;  %v1980_v55 = vadd.f32 58.5225, %v1972_v9  ;;  %v1971_v13 = vadd.f32 %v1963_v54, %v1713_v49  ;;  %v1966_v22 = vsub.f32 %v5926_v32, %v1192_v5 }
 0x2b4   : > { %v1950_v35 = vpop.f32.mrf.mxu1  ;;  %v1452_v49 = vmul.f32 2.0, %v1444_v21  ;;  %v1454_v21 = vmul.f32 2.0, %v1446_v26 }
 0x2b5   : > { %6396 = vrcp.f32 %v1980_v55  ;;  %v1979_v43 = vadd.f32 58.5225, %v1971_v13  ;;  %v1974_v56 = vadd.f32 %v1966_v22, %v1716_v53  ;;  %v1965_v36 = vsub.f32 %v1950_v35, %v1191_v40  ;;  %v7682_v40 = vld [vmem:[#allocation12 + $0x18] sm:$0x3f] }
 0x2b6   : > { %v7633_v38 = vpop.f32.mrf.mxu1  ;;  %v1460_v20 = vadd.f32 58.5225, %v1452_v49  ;;  %v1462_v28 = vadd.f32 58.5225, %v1454_v21 }
 0x2b7   : > { %6398 = vrcp.f32 %v1979_v43  ;;  %v7635_v15 = vadd.f32 58.5225, %v1974_v56  ;;  %v1973_v46 = vadd.f32 %v1965_v36, %v1715_v33  ;;  %v1451_v33 = vmul.f32 2.0, %v1443_v24 }
 0x2b8   : > { %v7637_v57 = vpop.f32.mrf.mxu1 }
 0x2b9   : > { %6400 = vrcp.f32 %v7635_v15  ;;  %v7640_v18 = vadd.f32 58.5225, %v1973_v46  ;;  %v1459_v61 = vadd.f32 58.5225, %v1451_v33  ;;  %v1464_v46 = vadd.f32 58.5225, %v1456_v37 }
 0x2ba   : > { %v6389_v39 = vpop.eup %6388  ;;  %v7645_v41 = vpop.f32.mrf.mxu1  ;;  %v3034_v37 = vmul.f32 %v7633_v38, %v7633_v38 }
 0x2bb   : > { %v1992_v53 = vmul.f32 %v6389_v39, %v1976_v58  ;;  %6402 = vrcp.f32 %v7640_v18  ;;  %6015 = vmatprep.subr.mxu0 %v7645_v41 }
 0x2bc   : > { %v6391_v42 = vpop.eup %6390  ;;  %v7652_v44 = vpop.f32.mrf.mxu1  ;;  %6016 = vmatpush3.msra.mxu0 %v7645_v41 }
 0x2bd   : > { %v2000_v59 = vsub.f32 2.0, %v1992_v53  ;;  %v1991_v60 = vmul.f32 %v6391_v42, %v1975_v45  ;;  %6017 = vmatprep.subr.mxu0 %v7652_v44 }
 0x2be   : > { %v6393_v62 = vpop.eup %6392  ;;  %6018 = vmatpush3.msra.mxu0 %v7652_v44 }
 0x2bf   : > { %v2008_v23 = vmul.f32 %v6389_v39, %v2000_v59  ;;  %v1999_v24 = vsub.f32 2.0, %v1991_v60  ;;  %v1994_v58 = vmul.f32 %v6393_v62, %v1978_v1  ;;  %6019 = vmatprep.subr.mxu0 %v7633_v38 }
 0x2c0   : > { %v6395_v45 = vpop.eup %6394  ;;  %6020 = vmatpush3.msra.mxu0 %v7633_v38 }
 0x2c1   : > { %v2016_v2 = vmul.f32 %v2008_v23, %v1460_v20  ;;  %v2007_v25 = vmul.f32 %v6391_v42, %v1999_v24  ;;  %v2002_v26 = vsub.f32 2.0, %v1994_v58  ;;  %v1993_v63 = vmul.f32 %v6395_v45, %v1977_v51  ;;  %6021 = vmatprep.subr.mxu0 %v7637_v57 }
 0x2c2   : > { %v6397_v27 = vpop.eup %6396  ;;  %6022 = vmatpush3.msra.mxu0 %v7637_v57  ;;  %v1455_v51 = vmul.f32 2.0, %v1447_v7  ;;  %v1466_v42 = vadd.f32 58.5225, %v1458_v11 }
 0x2c3   : > { %v2015_v1 = vmul.f32 %v2007_v25, %v1459_v61  ;;  %v2010_v34 = vmul.f32 %v6393_v62, %v2002_v26  ;;  %v2001_v50 = vsub.f32 2.0, %v1993_v63  ;;  %6024 = vmatmul.mubr.msk.f32.vlgmr.msra.gmra.mxu0 %vm2446_vm1, %v7665_v47  ;;  %v2025_v9 = vsel %vm2023_vm2, %v2016_v2, 0.0 }
 0x2c4   : > { %v6399_v5 = vpop.eup %6398  ;;  %v1996_v54 = vmul.f32 %v6397_v27, %v1980_v55  ;;  %6026 = vmatprep.mubr.msk.f32.mxu0 %vm2446_vm1, %v7668_v6  ;;  %v1463_v39 = vadd.f32 58.5225, %v1455_v51  ;;  %v3033_v51 = vmul.f32 %v7637_v57, %v7637_v57 }
 0x2c5   : > { %v2024_v32 = vsel %vm2023_vm2, %v2015_v1, 0.0  ;;  %v2018_v13 = vmul.f32 %v2010_v34, %v1462_v28  ;;  %v2009_v22 = vmul.f32 %v6395_v45, %v2001_v50  ;;  %v1995_v35 = vmul.f32 %v6399_v5, %v1979_v43 }
 0x2c6   : > { %v6401_v56 = vpop.eup %6400  ;;  %v2026_v14 = vadd.f32 %v2025_v9, %v2024_v32  ;;  %v2004_v29 = vsub.f32 2.0, %v1996_v54  ;;  %v7688_v30 = vpop.f32.mrf.mxu1  ;;  %v1457_v43 = vmul.f32 2.0, %v1449_v17  ;;  %v3036_v50 = vmul.f32 %v7645_v41, %v7645_v41 }
 0x2c7   : > { %v2017_v31 = vmul.f32 %v2009_v22, %v1461_v48  ;;  %v2003_v7 = vsub.f32 2.0, %v1995_v35  ;;  %v1998_v55 = vmul.f32 %v6401_v56, %v7635_v15  ;;  %6027 = vmatmul.mubr.msk.f32.gmra.mxu0 %vm2446_vm1, %v7682_v40  ;;  %v2029_v19 = vsel %vm2023_vm2, %v2018_v13, 0.0  ;;  %v3460_v22 = vld [vmem:[#allocation15] sm:$0xff] }
 0x2c8   : > { %v6403_v36 = vpop.eup %6402  ;;  %v2012_v16 = vmul.f32 %v6397_v27, %v2004_v29  ;;  %v7696_v8 = vpop.f32.mrf.mxu1  ;;  %6051 = vmatprep.mubr.msk.f32.mxu0 %vm2446_vm1, %v7553_v52  ;;  %v1465_v0 = vadd.f32 58.5225, %v1457_v43  ;;  %v2836_v1 = vmul.f32 %v7688_v30, %v7633_v38  ;;  %v3224_v32 = vmul.f32 %v7688_v30, %v7688_v30  ;;  %v3465_v43 = vld [vmem:[#allocation16 + $0x18] sm:$0xff] }
 0x2c9   : > { %v2027_v10 = vsel %vm2023_vm2, %v2017_v31, 0.0  ;;  %v2011_v49 = vmul.f32 %v6399_v5, %v2003_v7  ;;  %v2006_v15 = vsub.f32 2.0, %v1998_v55  ;;  %v1997_v53 = vmul.f32 %v6403_v36, %v7640_v18 }
 0x2ca   : > { %v2028_v33 = vadd.f32 %v2027_v10, %v2026_v14  ;;  %v2020_v59 = vmul.f32 %v2012_v16, %v1464_v46  ;;  %v7702_v60 = vpop.f32.mrf.mxu1  ;;  %v2835_v34 = vmul.f32 %v7696_v8, %v7637_v57  ;;  %v3035_v5 = vmul.f32 %v7652_v44, %v7652_v44 }
 0x2cb   : > { %v2019_v12 = vmul.f32 %v2011_v49, %v1463_v39  ;;  %v2014_v17 = vmul.f32 %v6401_v56, %v2006_v15  ;;  %v2005_v62 = vsub.f32 2.0, %v1997_v53  ;;  %6043 = vmatprep.subr.mxu0 %v7702_v60  ;;  %v2838_v25 = vmul.f32 %v7702_v60, %v7645_v41  ;;  %v3462_v49 = vld [vmem:[#allocation16] sm:$0xff] }
 0x2cc   : > { %v2030_v20 = vadd.f32 %v2029_v19, %v2028_v33  ;;  %v7706_v21 = vpop.f32.mrf.mxu1  ;;  %6044 = vmatpush3.msra.mxu0 %v7702_v60  ;;  %v2033_v45 = vsel %vm2023_vm2, %v2020_v59, 0.0  ;;  %v3226_v9 = vmul.f32 %v7702_v60, %v7702_v60  ;;  %v3223_v13 = vmul.f32 %v7696_v8, %v7696_v8 }
 0x2cd   : > { %v2031_v18 = vsel %vm2023_vm2, %v2019_v12, 0.0  ;;  %v2022_v23 = vmul.f32 %v2014_v17, %v1466_v42  ;;  %v2013_v24 = vmul.f32 %v6403_v36, %v2005_v62  ;;  %6045 = vmatprep.subr.mxu0 %v7706_v21  ;;  %v2837_v27 = vmul.f32 %v7706_v21, %v7652_v44 }
 0x2ce   : > { %v2032_v58 = vadd.f32 %v2031_v18, %v2030_v20  ;;  %6046 = vmatpush3.msra.mxu0 %v7706_v21  ;;  %v3225_v54 = vmul.f32 %v7706_v21, %v7706_v21  ;;  %v6785_v59 = vmov 0.0  }
 0x2cf   : > { %v2021_v61 = vmul.f32 %v2013_v24, %v1465_v0  ;;  %6047 = vmatprep.subr.mxu0 %v7688_v30  ;;  %v2038_v28 = vsel %vm2037_vm3, %v2022_v23, 0.0 }
 0x2d0   : > { %6048 = vmatpush3.msra.mxu0 %v7688_v30  ;;  %v2034_v2 = vadd.f32 %v2033_v45, %v2032_v58 }
 0x2d1   : > { %6049 = vmatprep.subr.mxu0 %v7696_v8  ;;  %v2035_v26 = vsel %vm2023_vm2, %v2021_v61, 0.0 }
 0x2d2   : > { %6050 = vmatpush3.msra.mxu0 %v7696_v8  ;;  %v2036_v63 = vadd.f32 %v2035_v26, %v2034_v2 }
 0x2d3   : > { %6052 = vmatmul.mubr.msk.f32.vlgmr.msra.gmra.mxu0 %vm2446_vm1, %v7665_v47  ;;  %6071 = vmatprep.subr.mxu0 %v2838_v25 }
 0x2d4   : > { %6072 = vmatpush3.msra.mxu0 %v2838_v25  ;;  %6054 = vmatprep.mubr.msk.f32.mxu0 %vm2446_vm1, %v7668_v6  ;;  %v7726_v48 = vadd.f32 %v2038_v28, %v2036_v63 }
 0x2d5   : > { %6073 = vmatprep.subr.mxu0 %v2837_v27 }
 0x2d6   : > { %6074 = vmatpush3.msra.mxu0 %v2837_v27 }
 0x2d7   : > { %6055 = vmatmul.mubr.msk.f32.gmra.mxu0 %vm2446_vm1, %v7682_v40  ;;  %6075 = vmatprep.subr.mxu0 %v2836_v1 }
 0x2d8   : > { %6076 = vmatpush3.msra.mxu0 %v2836_v1  ;;  %6079 = vmatprep.mubr.msk.f32.mxu0 %vm2446_vm1, %v7553_v52 }
 0x2d9   : > { %6077 = vmatprep.subr.mxu0 %v2835_v34 }
 0x2da   : > { %6078 = vmatpush3.msra.mxu0 %v2835_v34 }
 0x2db   : > { %6080 = vmatmul.mubr.msk.f32.vlgmr.msra.gmra.mxu0 %vm2446_vm1, %v7665_v47  ;;  %6099 = vmatprep.subr.mxu0 %v3036_v50 }
 0x2dc   : > { %6100 = vmatpush3.msra.mxu0 %v3036_v50  ;;  %6082 = vmatprep.mubr.msk.f32.mxu0 %vm2446_vm1, %v7668_v6 }
 0x2dd   : > { %6101 = vmatprep.subr.mxu0 %v3035_v5 }
 0x2de   : > { %6102 = vmatpush3.msra.mxu0 %v3035_v5 }
 0x2df   : > { %6083 = vmatmul.mubr.msk.f32.gmra.mxu0 %vm2446_vm1, %v7682_v40  ;;  %6103 = vmatprep.subr.mxu0 %v3034_v37 }
 0x2e0   : > { %6104 = vmatpush3.msra.mxu0 %v3034_v37  ;;  %6107 = vmatprep.mubr.msk.f32.mxu0 %vm2446_vm1, %v7553_v52 }
 0x2e1   : > { %6105 = vmatprep.subr.mxu0 %v3033_v51 }
 0x2e2   : > { %6106 = vmatpush3.msra.mxu0 %v3033_v51 }
 0x2e3   : > { %6108 = vmatmul.mubr.msk.f32.vlgmr.msra.gmra.mxu0 %vm2446_vm1, %v7665_v47  ;;  %6127 = vmatprep.subr.mxu0 %v3226_v9 }
 0x2e4   : > { %6128 = vmatpush3.msra.mxu0 %v3226_v9  ;;  %6110 = vmatprep.mubr.msk.f32.mxu0 %vm2446_vm1, %v7668_v6 }
 0x2e5   : > { %6129 = vmatprep.subr.mxu0 %v3225_v54 }
 0x2e6   : > { %6130 = vmatpush3.msra.mxu0 %v3225_v54 }
 0x2e7   : > { %6111 = vmatmul.mubr.msk.f32.gmra.mxu0 %vm2446_vm1, %v7682_v40  ;;  %6131 = vmatprep.subr.mxu0 %v3224_v32 }
 0x2e8   : > { %6132 = vmatpush3.msra.mxu0 %v3224_v32  ;;  %6135 = vmatprep.mubr.msk.f32.mxu0 %vm2446_vm1, %v7553_v52  ;;  %v3461_v52 = vld [vmem:[#allocation15 + $0x8] sm:$0xff] }
 0x2e9   : > { %6133 = vmatprep.subr.mxu0 %v3223_v13 }
 0x2ea   : > { %6134 = vmatpush3.msra.mxu0 %v3223_v13 }
 0x2eb   : > { %6136 = vmatmul.mubr.msk.f32.vlgmr.msra.gmra.mxu0 %vm2446_vm1, %v7665_v47  ;;  %6155 = vmatprep.subr.mxu0 %v7645_v41 }
 0x2ec   : > { %6156 = vmatpush3.msra.mxu0 %v7645_v41  ;;  %6138 = vmatprep.mubr.msk.f32.mxu0 %vm2446_vm1, %v7668_v6 }
 0x2ed   : > { %6157 = vmatprep.subr.mxu0 %v7652_v44 }
 0x2ee   : > { %6158 = vmatpush3.msra.mxu0 %v7652_v44 }
 0x2ef   : > { %6139 = vmatmul.mubr.msk.f32.gmra.mxu0 %vm2446_vm1, %v7682_v40  ;;  %6159 = vmatprep.subr.mxu0 %v7633_v38 }
 0x2f0   : > { %6160 = vmatpush3.msra.mxu0 %v7633_v38  ;;  %6163 = vmatprep.mubr.msk.f32.mxu0 %vm2446_vm1, %v3460_v22  ;;  %v7794_v38 = vld [vmem:[#allocation13 + $0x8] sm:$0xff] }
 0x2f1   : > { %6161 = vmatprep.subr.mxu0 %v7637_v57  ;;  %6033 = vmatprep.subr.mxu1 %v7794_v38 }
 0x2f2   : > { %6162 = vmatpush3.msra.mxu0 %v7637_v57  ;;  %6034 = vmatpush3.msra.mxu1 %v7794_v38  ;;  %v7798_v57 = vld [vmem:[#allocation13] sm:$0xff] }
 0x2f3   : > { %6164 = vmatmul.mubr.msk.f32.vlgmr.msra.gmra.mxu0 %vm2446_vm1, %v3461_v52  ;;  %6177 = vmatprep.subr.mxu0 %v7702_v60 }
 0x2f4   : > { %6178 = vmatpush3.msra.mxu0 %v7702_v60  ;;  %6185 = vmatprep.mubr.msk.f32.mxu0 %vm2446_vm1, %v3460_v22 }
 0x2f5   : > { %6179 = vmatprep.subr.mxu0 %v7706_v21  ;;  %6035 = vmatprep.subr.mxu1 %v7798_v57 }
 0x2f6   : > { %6180 = vmatpush3.msra.mxu0 %v7706_v21  ;;  %6036 = vmatpush3.msra.mxu1 %v7798_v57 }
 0x2f7   : > { %6181 = vmatprep.subr.mxu0 %v7688_v30  ;;  %6057 = vmatprep.subr.mxu1 %v7563_v3 }
 0x2f8   : > { %6182 = vmatpush3.msra.mxu0 %v7688_v30 }
 0x2f9   : > { %6183 = vmatprep.subr.mxu0 %v7696_v8 }
 0x2fa   : > { %6184 = vmatpush3.msra.mxu0 %v7696_v8 }
 0x2fb   : > { %6186 = vmatmul.mubr.msk.f32.vlgmr.msra.gmra.mxu0 %vm2446_vm1, %v3461_v52  ;;  %6199 = vmatprep.subr.mxu0 %v6785_v59 }
 0x2fc   : > { %6203 = vmatprep.mubr.msk.f32.mxu0 %vm6786_vm4, %v6785_v59 }
 0x383   : > { %v6025_v41 = vpop.f32.mrf.mxu0 }
 0x385   : > { %v2525_v44 = vpop.f32.mrf.mxu0 }
 0x386   : > { %6037 = vmatprep.mubr.msk.f32.mxu1 %vm2446_vm1, %v2525_v44 }
 0x387   : > { %v6028_v47 = vpop.f32.mrf.mxu0  ;;  %6038 = vmatmul.mubr.msk.f32.vlgmr.msra.gmra.mxu1 %vm2446_vm1, %v6025_v41 }
 0x388   : > { %6058 = vmatpush3.msra.mxu1 %v7563_v3 }
 0x389   : > { %v2535_v6 = vpop.f32.mrf.mxu0  ;;  %6059 = vmatprep.subr.mxu1 %v7565_v4 }
 0x38a   : > { %6040 = vmatprep.mubr.msk.f32.mxu1 %vm2446_vm1, %v2535_v6  ;;  %6060 = vmatpush3.msra.mxu1 %v7565_v4 }
 0x38b   : > { %6041 = vmatmul.mubr.msk.f32.gmra.mxu1 %vm2446_vm1, %v6028_v47  ;;  %6061 = vmatprep.subr.mxu1 %v7794_v38 }
 0x38c   : > { %6062 = vmatpush3.msra.mxu1 %v7794_v38 }
 0x38d   : > { %6063 = vmatprep.subr.mxu1 %v7798_v57 }
 0x38e   : > { %6064 = vmatpush3.msra.mxu1 %v7798_v57 }
 0x38f   : > { %6085 = vmatprep.subr.mxu1 %v7563_v3 }
 0x393   : > { %v6053_v40 = vpop.f32.mrf.mxu0 }
 0x395   : > { %v2707_v35 = vpop.f32.mrf.mxu0 }
 0x396   : > { %6065 = vmatprep.mubr.msk.f32.mxu1 %vm2446_vm1, %v2707_v35 }
 0x397   : > { %v6056_v56 = vpop.f32.mrf.mxu0  ;;  %6066 = vmatmul.mubr.msk.f32.vlgmr.msra.gmra.mxu1 %vm2446_vm1, %v6053_v40 }
 0x398   : > { %6086 = vmatpush3.msra.mxu1 %v7563_v3 }
 0x399   : > { %v2717_v11 = vpop.f32.mrf.mxu0  ;;  %6087 = vmatprep.subr.mxu1 %v7565_v4 }
 0x39a   : > { %6068 = vmatprep.mubr.msk.f32.mxu1 %vm2446_vm1, %v2717_v11  ;;  %6088 = vmatpush3.msra.mxu1 %v7565_v4 }
 0x39b   : > { %6069 = vmatmul.mubr.msk.f32.gmra.mxu1 %vm2446_vm1, %v6056_v56  ;;  %v6081_v14 = vpop.f32.mrf.mxu0  ;;  %6089 = vmatprep.subr.mxu1 %v7794_v38 }
 0x39c   : > { %6090 = vmatpush3.msra.mxu1 %v7794_v38 }
 0x39d   : > { %v2905_v29 = vpop.f32.mrf.mxu0  ;;  %6091 = vmatprep.subr.mxu1 %v7798_v57 }
 0x39e   : > { %6092 = vmatpush3.msra.mxu1 %v7798_v57  ;;  %6093 = vmatprep.mubr.msk.f32.mxu1 %vm2446_vm1, %v2905_v29 }
 0x39f   : > { %v6084_v30 = vpop.f32.mrf.mxu0  ;;  %6094 = vmatmul.mubr.msk.f32.vlgmr.msra.gmra.mxu1 %vm2446_vm1, %v6081_v14  ;;  %6113 = vmatprep.subr.mxu1 %v7563_v3 }
 0x3a0   : > { %6114 = vmatpush3.msra.mxu1 %v7563_v3 }
 0x3a1   : > { %v2915_v31 = vpop.f32.mrf.mxu0  ;;  %6115 = vmatprep.subr.mxu1 %v7565_v4 }
 0x3a2   : > { %6096 = vmatprep.mubr.msk.f32.mxu1 %vm2446_vm1, %v2915_v31  ;;  %6116 = vmatpush3.msra.mxu1 %v7565_v4 }
 0x3a3   : > { %6097 = vmatmul.mubr.msk.f32.gmra.mxu1 %vm2446_vm1, %v6084_v30  ;;  %v6109_v7 = vpop.f32.mrf.mxu0  ;;  %6117 = vmatprep.subr.mxu1 %v7794_v38 }
 0x3a4   : > { %6118 = vmatpush3.msra.mxu1 %v7794_v38 }
 0x3a5   : > { %v3103_v55 = vpop.f32.mrf.mxu0  ;;  %6119 = vmatprep.subr.mxu1 %v7798_v57 }
 0x3a6   : > { %6120 = vmatpush3.msra.mxu1 %v7798_v57  ;;  %6121 = vmatprep.mubr.msk.f32.mxu1 %vm2446_vm1, %v3103_v55 }
 0x3a7   : > { %v6112_v36 = vpop.f32.mrf.mxu0  ;;  %6122 = vmatmul.mubr.msk.f32.vlgmr.msra.gmra.mxu1 %vm2446_vm1, %v6109_v7  ;;  %6141 = vmatprep.subr.mxu1 %v7563_v3 }
 0x3a8   : > { %6142 = vmatpush3.msra.mxu1 %v7563_v3  ;;  %v3464_v3 = vld [vmem:[#allocation16 + $0x10] sm:$0xff] }
 0x3a9   : > { %v3113_v46 = vpop.f32.mrf.mxu0  ;;  %6143 = vmatprep.subr.mxu1 %v7565_v4 }
 0x3aa   : > { %6124 = vmatprep.mubr.msk.f32.mxu1 %vm2446_vm1, %v3113_v46  ;;  %6144 = vmatpush3.msra.mxu1 %v7565_v4  ;;  %v3463_v4 = vld [vmem:[#allocation16 + $0x8] sm:$0xff] }
 0x3ab   : > { %6125 = vmatmul.mubr.msk.f32.gmra.mxu1 %vm2446_vm1, %v6112_v36  ;;  %v6137_v39 = vpop.f32.mrf.mxu0  ;;  %6145 = vmatprep.subr.mxu1 %v7794_v38 }
 0x3ac   : > { %6146 = vmatpush3.msra.mxu1 %v7794_v38 }
 0x3ad   : > { %v3293_v16 = vpop.f32.mrf.mxu0  ;;  %6147 = vmatprep.subr.mxu1 %v7798_v57 }
 0x3ae   : > { %6148 = vmatpush3.msra.mxu1 %v7798_v57  ;;  %6149 = vmatprep.mubr.msk.f32.mxu1 %vm2446_vm1, %v3293_v16 }
 0x3af   : > { %v6140_v8 = vpop.f32.mrf.mxu0  ;;  %6150 = vmatmul.mubr.msk.f32.vlgmr.msra.gmra.mxu1 %vm2446_vm1, %v6137_v39  ;;  %6166 = vmatprep.subr.mxu1 %v3465_v43 }
 0x3b0   : > { %6167 = vmatpush3.msra.mxu1 %v3465_v43 }
 0x3b1   : > { %v3303_v10 = vpop.f32.mrf.mxu0  ;;  %6168 = vmatprep.subr.mxu1 %v3464_v3 }
 0x3b2   : > { %6152 = vmatprep.mubr.msk.f32.mxu1 %vm2446_vm1, %v3303_v10  ;;  %6169 = vmatpush3.msra.mxu1 %v3464_v3  ;;  %v7874_v10 = vld [vmem:[#allocation18] sm:$0xff] }
 0x3b3   : > { %6153 = vmatmul.mubr.msk.f32.gmra.mxu1 %vm2446_vm1, %v6140_v8  ;;  %v6165_v15 = vpop.f32.mrf.mxu0  ;;  %6170 = vmatprep.subr.mxu1 %v3463_v4 }
 0x3b4   : > { %6171 = vmatpush3.msra.mxu1 %v3463_v4 }
 0x3b5   : > { %v3538_v53 = vpop.f32.mrf.mxu0  ;;  %6172 = vmatprep.subr.mxu1 %v3462_v49 }
 0x3b6   : > { %6173 = vmatpush3.msra.mxu1 %v3462_v49  ;;  %6174 = vmatprep.mubr.msk.f32.mxu1 %vm2446_vm1, %v3538_v53 }
 0x3b7   : > { %6175 = vmatmul.mubr.msk.f32.vlgmr.msra.gmra.mxu1 %vm2446_vm1, %v6165_v15  ;;  %6188 = vmatprep.subr.mxu1 %v3465_v43 }
 0x3b8   : > { %6189 = vmatpush3.msra.mxu1 %v3465_v43 }
 0x3b9   : > { %6190 = vmatprep.subr.mxu1 %v3464_v3 }
 0x3ba   : > { %6191 = vmatpush3.msra.mxu1 %v3464_v3 }
 0x3bb   : > { %v6187_v42 = vpop.f32.mrf.mxu0  ;;  %6192 = vmatprep.subr.mxu1 %v3463_v4 }
 0x3bc   : > { %6193 = vmatpush3.msra.mxu1 %v3463_v4 }
 0x3bd   : > { %v3694_v33 = vpop.f32.mrf.mxu0  ;;  %6194 = vmatprep.subr.mxu1 %v3462_v49 }
 0x3be   : > { %6195 = vmatpush3.msra.mxu1 %v3462_v49  ;;  %6196 = vmatprep.mubr.msk.f32.mxu1 %vm2446_vm1, %v3694_v33 }
 0x3bf   : > { %6197 = vmatmul.mubr.msk.f32.vlgmr.msra.gmra.mxu1 %vm2446_vm1, %v6187_v42  ;;  %6206 = vmatprep.subr.mxu1 %v6785_v59 }
 0x3c0   : > { %6210 = vmatprep.mubr.msk.f32.mxu1 %vm6786_vm4, %v6785_v59 }
 0x447   : > { %v6039_v60 = vpop.f32.mrf.mxu1 }
 0x448   : > { %v2824_v28 = vmul.f32 %v6039_v60, %v6039_v60 }
 0x449   : > { %v2622_v19 = vpop.f32.mrf.mxu1 }
 0x44a   : > { %v2823_v50 = vmul.f32 %v2622_v19, %v2622_v19 }
 0x44b   : > { %v6042_v12 = vpop.f32.mrf.mxu1 }
 0x44c   : > { %v2826_v51 = vmul.f32 %v6042_v12, %v6042_v12 }
 0x44d   : > { %v2632_v17 = vpop.f32.mrf.mxu1 }
 0x44e   : > { %v2825_v32 = vmul.f32 %v2632_v17, %v2632_v17 }
 0x457   : > { %v6067_v62 = vpop.f32.mrf.mxu1 }
 0x458   : > { %v2832_v20 = vmul.f32 %v6067_v62, %v6039_v60  ;;  %v2828_v52 = vmul.f32 %v6067_v62, %v6067_v62 }
 0x459   : > { %v2804_v21 = vpop.f32.mrf.mxu1 }
 0x45a   : > { %v2831_v0 = vmul.f32 %v2804_v21, %v2622_v19  ;;  %v2827_v41 = vmul.f32 %v2804_v21, %v2804_v21 }
 0x45b   : > { %v6070_v18 = vpop.f32.mrf.mxu1 }
 0x45c   : > { %v2834_v23 = vmul.f32 %v6070_v18, %v6042_v12  ;;  %v2830_v6 = vmul.f32 %v6070_v18, %v6070_v18 }
 0x45d   : > { %v2814_v24 = vpop.f32.mrf.mxu1 }
 0x45e   : > { %v2833_v58 = vmul.f32 %v2814_v24, %v2632_v17  ;;  %v2829_v14 = vmul.f32 %v2814_v24, %v2814_v24 }
 0x45f   : > { %v6095_v45 = vpop.f32.mrf.mxu1 }
 0x460   : > { %v3022_v61 = vsub.f32 %v6095_v45, %v2832_v20 }
 0x461   : > { %v3002_v2 = vpop.f32.mrf.mxu1 }
 0x462   : > { %v3021_v25 = vsub.f32 %v3002_v2, %v2831_v0  ;;  %v3026_v56 = vmul.f32 2.0, %v3022_v61 }
 0x463   : > { %v6098_v26 = vpop.f32.mrf.mxu1 }
 0x464   : > { %v3024_v63 = vsub.f32 %v6098_v26, %v2834_v23  ;;  %v7869_v39 = vadd.f32 58.5225, %v3026_v56  ;;  %v3025_v43 = vmul.f32 2.0, %v3021_v25 }
 0x465   : > { %v3012_v27 = vpop.f32.mrf.mxu1 }
 0x466   : > { %v3023_v1 = vsub.f32 %v3012_v27, %v2833_v58  ;;  %v3028_v49 = vmul.f32 2.0, %v3024_v63  ;;  %v7880_v17 = vadd.f32 58.5225, %v3025_v43 }
 0x467   : > { %v6123_v34 = vpop.f32.mrf.mxu1 }
 0x468   : > { %v3220_v5 = vsub.f32 %v6123_v34, %v2824_v28  ;;  %v3027_v15 = vmul.f32 2.0, %v3023_v1  ;;  %v7890_v2 = vadd.f32 58.5225, %v3028_v49 }
 0x469   : > { %v3200_v37 = vpop.f32.mrf.mxu1 }
 0x46a   : > { %v3219_v9 = vsub.f32 %v3200_v37, %v2823_v50  ;;  %v7892_v25 = vadd.f32 58.5225, %v3027_v15 }
 0x46b   : > { %v6126_v54 = vpop.f32.mrf.mxu1 }
 0x46c   : > { %v3222_v13 = vsub.f32 %v6126_v54, %v2826_v51 }
 0x46d   : > { %v3210_v22 = vpop.f32.mrf.mxu1 }
 0x46e   : > { %v3221_v38 = vsub.f32 %v3210_v22, %v2825_v32 }
 0x46f   : > { %v6151_v57 = vpop.f32.mrf.mxu1 }
 0x470   : > { %v3410_v44 = vsub.f32 %v6151_v57, %v2828_v52 }
 0x471   : > { %v3390_v47 = vpop.f32.mrf.mxu1 }
 0x472   : > { %v3414_v40 = vadd.f32 %v3410_v44, %v3220_v5  ;;  %v3409_v35 = vsub.f32 %v3390_v47, %v2827_v41 }
 0x473   : > { %v6154_v11 = vpop.f32.mrf.mxu1 }
 0x474   : > { %v7864_v29 = vadd.f32 58.5225, %v3414_v40  ;;  %v3413_v30 = vadd.f32 %v3409_v35, %v3219_v9  ;;  %v3412_v31 = vsub.f32 %v6154_v11, %v2830_v6 }
 0x475   : > { %v3400_v7 = vpop.f32.mrf.mxu1 }
 0x476   : > { %6404 = vrcp.f32 %v7864_v29  ;;  %v7867_v55 = vadd.f32 58.5225, %v3413_v30  ;;  %v3416_v36 = vadd.f32 %v3412_v31, %v3222_v13  ;;  %v3411_v46 = vsub.f32 %v3400_v7, %v2829_v14 }
 0x477   : > { %v6176_v16 = vpop.f32.mrf.mxu1 }
 0x478   : > { %6406 = vrcp.f32 %v7867_v55  ;;  %v7872_v3 = vadd.f32 58.5225, %v3416_v36  ;;  %v3415_v8 = vadd.f32 %v3411_v46, %v3221_v38  ;;  %v3939_v4 = vmul.f32 %v6176_v16, %v6176_v16  ;;  %6200 = vmatpush3.msra.mxu0 %v6176_v16 }
 0x479   : > { %v3619_v53 = vpop.f32.mrf.mxu1  ;;  %6201 = vmatprep.subr.mxu0 %v6785_v59  ;;  %v3785_v42 = vmul.f32 0.30780134, %v6176_v16  ;;  %v3787_v33 = vmul.f32 0.38439733, %v6176_v16 }
 0x47a   : > { %6408 = vrcp.f32 %v7872_v3  ;;  %v7878_v60 = vadd.f32 58.5225, %v3415_v8  ;;  %v3784_v19 = vmul.f32 0.30780134, %v3619_v53  ;;  %v3786_v12 = vmul.f32 0.38439733, %v3619_v53  ;;  %6202 = vmatpush3.msra.mxu0 %v3619_v53 }
 0x47b   : > { %v3938_v62 = vmul.f32 %v3619_v53, %v3619_v53  ;;  %6204 = vmatmul.mubr.msk.f32.vlgmr.msra.gmra.mxu0 %vm4070_vm5, %v7874_v10  ;;  %6213 = vmatprep.subr.mxu0 %v6785_v59  ;;  %v3792_v20 = vrot.slane %v3787_v33, 1  ;;  %v7885_v21 = vmul.f32 0.30780134, %v3939_v4  ;;  %v3943_v23 = vmul.f32 0.38439733, %v3939_v4 }
 0x47c   : > { %6410 = vrcp.f32 %v7878_v60  ;;  %v3791_v0 = vrot.slane %v3786_v12, 1  ;;  %v3801_v18 = vrot.slane %v3784_v19, 2  ;;  %6217 = vmatprep.mubr.msk.f32.mxu0 %vm6786_vm4, %v6785_v59  ;;  %v3802_v45 = vrot.slane %v3785_v42, 2 }
 0x47d   : > { %v3942_v24 = vmul.f32 0.38439733, %v3938_v62  ;;  %v3797_v58 = vadd.f32 %v3792_v20, %v3785_v42  ;;  %v3940_v61 = vmul.f32 0.30780134, %v3938_v62  ;;  %v3947_v26 = vrot.slane %v3943_v23, 1 }
 0x47e   : > { %v3793_v63 = vsel %vm3790_vm6, %v3791_v0, %v3792_v20  ;;  %v3956_v1 = vrot.slane %v7885_v21, 2  ;;  %v3803_v50 = vsel %vm3800_vm7, %v3801_v18, %v3802_v45 }
 0x47f   : > { %v6198_v27 = vpop.f32.mrf.mxu1  ;;  %v3807_v28 = vadd.f32 %v3802_v45, %v3797_v58  ;;  %v3796_v34 = vadd.f32 %v3793_v63, %v3784_v19  ;;  %v3946_v5 = vrot.slane %v3942_v24, 1  ;;  %v3955_v9 = vrot.slane %v3940_v61, 2 }
 0x480   : > { %v7897_v37 = vmul.f32 0.38439733, %v6198_v27  ;;  %v3885_v51 = vmul.f32 %v6198_v27, %v6176_v16  ;;  %6214 = vmatpush3.msra.mxu0 %v6198_v27  ;;  %v3952_v22 = vadd.f32 %v3947_v26, %v7885_v21  ;;  %v7903_v38 = vmul.f32 0.30780134, %v6198_v27 }
 0x481   : > { %v3775_v54 = vpop.f32.mrf.mxu1  ;;  %6215 = vmatprep.subr.mxu0 %v6785_v59  ;;  %v3811_v32 = vmul.f32 0.38439733, %v3807_v28  ;;  %v7900_v13 = vmul.f32 0.30780134, %v3807_v28  ;;  %v3806_v52 = vadd.f32 %v3803_v50, %v3796_v34  ;;  %v3989_v41 = vmul.f32 %v6198_v27, %v6198_v27 }
 0x482   : > { %v3839_v57 = vrot.slane %v7897_v37, 1  ;;  %v7906_v44 = vmul.f32 %v3775_v54, %v3619_v53  ;;  %6216 = vmatpush3.msra.mxu0 %v3775_v54  ;;  %v7908_v6 = vmul.f32 0.30780134, %v3775_v54  ;;  %v3834_v40 = vmul.f32 0.38439733, %v3775_v54 }
 0x483   : > { %v6405_v47 = vpop.eup %6404  ;;  %v7910_v35 = vmul.f32 %v3775_v54, %v3775_v54  ;;  %3816 = vrot.lane.b32.xlu0 %v3811_v32, %s6787_s20  ;;  %3826 = vrot.lane.b32.xlu1 %v7900_v13, %s6788_s24  ;;  %v3961_v56 = vadd.f32 %v3956_v1, %v3952_v22  ;;  %v7916_v14 = vmul.f32 0.30780134, %v3885_v51  ;;  %v3810_v31 = vmul.f32 0.38439733, %v3806_v52 }
 0x484   : > { %v3426_v11 = vmul.f32 %v6405_v47, %v7864_v29  ;;  %v7919_v30 = vmul.f32 0.38439733, %v7906_v44  ;;  %6218 = vmatmul.mubr.msk.f32.vlgmr.msra.gmra.mxu0 %vm4070_vm5, %v7874_v10  ;;  %6227 = vmatprep.subr.mxu0 %v6785_v59  ;;  %v7924_v36 = vmul.f32 0.38439733, %v3885_v51  ;;  %v3838_v46 = vrot.slane %v3834_v40, 1 }
 0x485   : > { %v6407_v7 = vpop.eup %6406  ;;  %v3847_v43 = vrot.slane %v7908_v6, 2  ;;  %v3965_v16 = vmul.f32 0.38439733, %v3961_v56  ;;  %6229 = vmatprep.mubr.msk.f32.mxu0 %vm6786_vm4, %v6785_v59  ;;  %v3992_v10 = vmul.f32 0.38439733, %v7910_v35  ;;  %v3948_v42 = vsel %vm3790_vm6, %v3946_v5, %v3947_v26 }
 0x486   : > { %v3430_v29 = vsub.f32 2.0, %v3426_v11  ;;  %v3425_v8 = vmul.f32 %v6407_v7, %v7867_v55  ;;  %v3892_v4 = vrot.slane %v7919_v30, 1  ;;  %v7934_v15 = vmul.f32 0.30780134, %v3961_v56 }
 0x487   : > { %v6409_v49 = vpop.eup %6408  ;;  %3970 = vrot.lane.b32.xlu1 %v3965_v16, %s6787_s20  ;;  %3814 = vrot.lane.b32.xlu0 %v3810_v31, %s6787_s20  ;;  %v7936_v53 = vmul.f32 0.30780134, %v3806_v52  ;;  %v3957_v33 = vsel %vm3800_vm7, %v3955_v9, %v3956_v1  ;;  %v3951_v62 = vadd.f32 %v3948_v42, %v3940_v61  ;;  %v3844_v21 = vadd.f32 %v3839_v57, %v7903_v38 }
 0x488   : > { %v3434_v19 = vmul.f32 %v6405_v47, %v3430_v29  ;;  %v3429_v12 = vsub.f32 2.0, %v3425_v8  ;;  %v3428_v55 = vmul.f32 %v6409_v49, %v7872_v3  ;;  %v3848_v0 = vrot.slane %v7903_v38, 2 }
 0x489   : > { %v6411_v20 = vpop.eup %6410  ;;  %v3991_v18 = vmul.f32 0.30780134, %v3989_v41  ;;  %v3993_v23 = vmul.f32 0.38439733, %v3989_v41  ;;  %v3996_v63 = vrot.slane %v3992_v10, 1  ;;  %v3960_v3 = vadd.f32 %v3957_v33, %v3951_v62 }
 0x48a   : > { %v3438_v24 = vmul.f32 %v3434_v19, %v7869_v39  ;;  %v3433_v58 = vmul.f32 %v6407_v7, %v3429_v12  ;;  %v3432_v45 = vsub.f32 2.0, %v3428_v55  ;;  %v3427_v26 = vmul.f32 %v6411_v20, %v7878_v60 }
 0x48b   : > { %3980 = vrot.lane.b32.xlu1 %v7934_v15, %s6788_s24  ;;  %3824 = vrot.lane.b32.xlu0 %v7936_v53, %s6788_s24  ;;  %v3853_v61 = vadd.f32 %v3848_v0, %v3844_v21  ;;  %v3997_v27 = vrot.slane %v3993_v23, 1  ;;  %v3840_v39 = vsel %vm3790_vm6, %v3838_v46, %v3839_v57  ;;  %v3964_v50 = vmul.f32 0.38439733, %v3960_v3  ;;  %v4068_v21 = vld [vmem:[%s8189_s11] sm:$0xff] }
 0x48c   : > { %v3437_v28 = vmul.f32 %v3433_v58, %v7880_v17  ;;  %v3436_v1 = vmul.f32 %v6409_v49, %v3432_v45  ;;  %v3431_v34 = vsub.f32 2.0, %v3427_v26  ;;  %v4006_v60 = vrot.slane %v3991_v18, 2  ;;  %v4501_v58 = vld [vmem:[%s8190_s12] sm:$0xf] }
 0x48d   : > { %v3857_v5 = vmul.f32 0.38439733, %v3853_v61  ;;  %v4002_v37 = vadd.f32 %v3997_v27, %v3991_v18  ;;  %v3893_v54 = vrot.slane %v7924_v36, 1  ;;  %v3843_v32 = vadd.f32 %v3840_v39, %v7908_v6 }
 0x48e   : > { %v3440_v51 = vmul.f32 %v3436_v1, %v7890_v2  ;;  %v3435_v9 = vmul.f32 %v6411_v20, %v3431_v34  ;;  %v7956_v17 = vmul.f32 0.30780134, %v3960_v3  ;;  %v3990_v52 = vmul.f32 0.30780134, %v7910_v35  ;;  %v4069_v20 = vld [vmem:[%s8189_s11 + $0x8] sm:$0xff] }
 0x48f   : > { %3968 = vrot.lane.b32.xlu0 %v3964_v50, %s6787_s20  ;;  %3862 = vrot.lane.b32.xlu1 %v3857_v5, %s6787_s20  ;;  %v4011_v22 = vadd.f32 %v4006_v60, %v4002_v37  ;;  %v3998_v38 = vsel %vm3790_vm6, %v3996_v63, %v3997_v27  ;;  %v3849_v2 = vsel %vm3800_vm7, %v3847_v43, %v3848_v0  ;;  %v3886_v41 = vmul.f32 0.30780134, %v7906_v44 }
 0x490   : > { %v3439_v57 = vmul.f32 %v3435_v9, %v7892_v25  ;;  %v3894_v47 = vsel %vm3790_vm6, %v3892_v4, %v3893_v54  ;;  %v7966_v6 = vmul.f32 0.30780134, %v3853_v61  ;;  %v3852_v40 = vadd.f32 %v3849_v2, %v3843_v32  ;;  %6207 = vmatpush3.msra.mxu1 %v4069_v20 }
 0x491   : > { %v4001_v56 = vadd.f32 %v3998_v38, %v3990_v52  ;;  %v4005_v11 = vrot.slane %v3990_v52, 2  ;;  %v3897_v30 = vadd.f32 %v3894_v47, %v3886_v41  ;;  %v3901_v31 = vrot.slane %v3886_v41, 2  ;;  %6208 = vmatprep.subr.mxu1 %v6785_v59 }
 0x492   : > { %v3902_v25 = vrot.slane %v7916_v14, 2  ;;  %v3442_v44 = vsel %vm3441_vm8, %v3437_v28, 0.0  ;;  %v4015_v35 = vmul.f32 0.38439733, %v4011_v22  ;;  %v3443_v46 = vsel %vm3441_vm8, %v3438_v24, 0.0  ;;  %6209 = vmatpush3.msra.mxu1 %v4068_v21 }
 0x493   : > { %3978 = vrot.lane.b32.xlu0 %v7956_v17, %s6788_s24  ;;  %3872 = vrot.lane.b32.xlu1 %v7966_v6, %s6788_s24  ;;  %v4007_v7 = vsel %vm3800_vm7, %v4005_v11, %v4006_v60  ;;  %v3445_v43 = vsel %vm3441_vm8, %v3439_v57, 0.0  ;;  %v7977_v16 = vmul.f32 0.30780134, %v3852_v40  ;;  %v3444_v4 = vadd.f32 %v3443_v46, %v3442_v44 }
 0x494   : > { %v4010_v29 = vadd.f32 %v4007_v7, %v4001_v56  ;;  %v3903_v8 = vsel %vm3800_vm7, %v3901_v31, %v3902_v25  ;;  %v3448_v42 = vsel %vm3447_vm9, %v3440_v51, 0.0  ;;  %v7987_v33 = vmul.f32 0.30780134, %v4011_v22  ;;  %6220 = vmatprep.subr.mxu1 %v6785_v59 }
 0x495   : > { %v7982_v10 = vadd.f32 %v3903_v8, %v3897_v30  ;;  %v3446_v49 = vadd.f32 %v3445_v43, %v3444_v4  ;;  %v3856_v55 = vmul.f32 0.38439733, %v3852_v40 }
 0x496   : > { %v4014_v19 = vmul.f32 0.38439733, %v4010_v29  ;;  %v7994_v62 = vmul.f32 0.30780134, %v4010_v29 }
 0x497   : > { %4020 = vrot.lane.b32.xlu1 %v4015_v35, %s6787_s20  ;;  %3870 = vrot.lane.b32.xlu0 %v7977_v16, %s6788_s24  ;;  %v7989_v12 = vadd.f32 %v3448_v42, %v3446_v49 }
 0x49b   : > { %4030 = vrot.lane.b32.xlu1 %v7987_v33, %s6788_s24  ;;  %4018 = vrot.lane.b32.xlu0 %v4014_v19, %s6787_s20  ;;  %v4502_v19 = vld [vmem:[%s8191_s13] sm:$0xff] }
 0x49f   : > { %3860 = vrot.lane.b32.xlu1 %v3856_v55, %s6787_s20  ;;  %4028 = vrot.lane.b32.xlu0 %v7994_v62, %s6788_s24 }
 0x53b   : > { %v4140_v0 = vpop.f32.mrf.mxu0 }
 0x53c   : > { %6211 = vmatmul.mubr.msk.f32.vlgmr.msra.gmra.mxu1 %vm4070_vm5, %v4140_v0 }
 0x53d   : > { %v6205_v18 = vpop.f32.mrf.mxu0  ;;  %6221 = vmatpush3.msra.mxu1 %v4069_v20  ;;  %6224 = vmatprep.mubr.msk.f32.mxu1 %vm6786_vm4, %v6785_v59 }
 0x53e   : > { %6222 = vmatprep.subr.mxu1 %v6785_v59 }
 0x53f   : > { %6223 = vmatpush3.msra.mxu1 %v4068_v21 }
 0x540   : > { %6232 = vmatprep.subr.mxu1 %v6785_v59 }
 0x544   : > { %v4283_v23 = vpop.f32.mrf.mxu0 }
 0x545   : > { %6225 = vmatmul.mubr.msk.f32.vlgmr.msra.gmra.mxu1 %vm4070_vm5, %v4283_v23 }
 0x546   : > { %v6219_v24 = vpop.f32.mrf.mxu0  ;;  %6234 = vmatprep.mubr.msk.f32.mxu1 %vm6786_vm4, %v6785_v59  ;;  %6233 = vmatpush3.msra.mxu1 %v4502_v19 }
 0x547   : > { %6242 = vmatprep.subr.mxu1 %v6785_v59 }
 0x5fc   : > { %v4213_v45 = vpop.f32.mrf.mxu1 }
 0x5fd   : > { %v4360_v26 = vmul.f32 0.30780134, %v4213_v45  ;;  %v4361_v63 = vmul.f32 0.38439733, %v4213_v45  ;;  %v4433_v3 = vmul.f32 %v4213_v45, %v4213_v45  ;;  %6228 = vmatpush3.msra.mxu0 %v4213_v45 }
 0x5fe   : > { %6230 = vmatmul.mubr.msk.f32.vlgmr.msra.gmra.mxu0 %vm4503_vm10, %v4501_v58  ;;  %v6212_v61 = vpop.f32.mrf.mxu1  ;;  %6237 = vmatprep.subr.mxu0 %v6785_v59 }
 0x5ff   : > { %v4363_v27 = vrot.slane %v4361_v63, 1  ;;  %6239 = vmatprep.mubr.msk.f32.mxu0 %vm6786_vm4, %v6785_v59  ;;  %v4367_v28 = vrot.slane %v4360_v26, 2  ;;  %v4435_v1 = vmul.f32 0.38439733, %v4433_v3  ;;  %v4434_v39 = vmul.f32 0.30780134, %v4433_v3 }
 0x601   : > { %v4365_v34 = vadd.f32 %v4363_v27, %v4360_v26  ;;  %v4437_v50 = vrot.slane %v4435_v1, 1  ;;  %v4441_v9 = vrot.slane %v4434_v39, 2 }
 0x603   : > { %v4369_v5 = vadd.f32 %v4367_v28, %v4365_v34  ;;  %v4439_v51 = vadd.f32 %v4437_v50, %v4434_v39 }
 0x605   : > { %v4356_v37 = vpop.f32.mrf.mxu1  ;;  %v4371_v60 = vmul.f32 0.38439733, %v4369_v5  ;;  %v8026_v47 = vmul.f32 0.30780134, %v4369_v5  ;;  %v4443_v40 = vadd.f32 %v4441_v9, %v4439_v51 }
 0x606   : > { %v4382_v32 = vmul.f32 0.30780134, %v4356_v37  ;;  %v4383_v22 = vmul.f32 0.38439733, %v4356_v37  ;;  %v8022_v52 = vmul.f32 %v4356_v37, %v4213_v45  ;;  %v4457_v38 = vmul.f32 %v4356_v37, %v4356_v37  ;;  %6238 = vmatpush3.msra.mxu0 %v4356_v37 }
 0x607   : > { %v6226_v57 = vpop.f32.mrf.mxu1  ;;  %6240 = vmatmul.mubr.msk.f32.vlgmr.msra.gmra.mxu0 %vm4503_vm10, %v4501_v58  ;;  %4373 = vrot.lane.b32.xlu0 %v4371_v60, %s6787_s20  ;;  %v4445_v35 = vmul.f32 0.38439733, %v4443_v40  ;;  %v8032_v29 = vmul.f32 0.30780134, %v4443_v40 }
 0x608   : > { %v4385_v2 = vrot.slane %v4383_v22, 1  ;;  %v4459_v41 = vmul.f32 0.38439733, %v4457_v38  ;;  %v4389_v11 = vrot.slane %v4382_v32, 2  ;;  %v4458_v44 = vmul.f32 0.30780134, %v4457_v38 }
 0x60a   : > { %v4387_v56 = vadd.f32 %v4385_v2, %v4382_v32  ;;  %v4461_v30 = vrot.slane %v4459_v41, 1  ;;  %v4465_v43 = vrot.slane %v4458_v44, 2 }
 0x60b   : > { %4378 = vrot.lane.b32.xlu0 %v8026_v47, %s6788_s24 }
 0x60c   : > { %v4391_v31 = vadd.f32 %v4389_v11, %v4387_v56  ;;  %v4463_v46 = vadd.f32 %v4461_v30, %v4458_v44  ;;  %v4409_v30 = vmul.f32 0.38439733, %v8022_v52 }
 0x60e   : > { %v4393_v7 = vmul.f32 0.38439733, %v4391_v31  ;;  %v8034_v8 = vmul.f32 0.30780134, %v4391_v31  ;;  %v4467_v4 = vadd.f32 %v4465_v43, %v4463_v46  ;;  %v4411_v46 = vrot.slane %v4409_v30, 1 }
 0x60f   : > { %4447 = vrot.lane.b32.xlu0 %v4445_v35, %s6787_s20 }
 0x610   : > { %4395 = vrot.lane.b32.xlu1 %v4393_v7, %s6787_s20  ;;  %v4469_v49 = vmul.f32 0.38439733, %v4467_v4  ;;  %v8041_v42 = vmul.f32 0.30780134, %v4467_v4 }
 0x613   : > { %4452 = vrot.lane.b32.xlu0 %v8032_v29, %s6788_s24 }
 0x614   : > { %4400 = vrot.lane.b32.xlu1 %v8034_v8, %s6788_s24 }
 0x618   : > { %4471 = vrot.lane.b32.xlu1 %v4469_v49, %s6787_s20 }
 0x61c   : > { %4476 = vrot.lane.b32.xlu1 %v8041_v42, %s6788_s24 }
 0x6be   : > { %v4573_v55 = vpop.f32.mrf.mxu0 }
 0x6bf   : > { %6235 = vmatmul.mubr.msk.f32.vlgmr.msra.gmra.mxu1 %vm4503_vm10, %v4573_v55  ;;  %v3910_v55 = vmul.f32 0.38439733, %v7982_v10 }
 0x6c0   : > { %v6231_v20 = vpop.f32.mrf.mxu0  ;;  %6243 = vmatpush3.msra.mxu1 %v4502_v19  ;;  %6244 = vmatprep.mubr.msk.f32.mxu1 %vm6786_vm4, %v6785_v59  ;;  %v4408_v19 = vmul.f32 0.30780134, %v8022_v52 }
 0x6c2   : > { %v4413_v20 = vadd.f32 %v4411_v46, %v4408_v19 }
 0x6c7   : > { %v4716_v21 = vpop.f32.mrf.mxu0 }
 0x6c8   : > { %6245 = vmatmul.mubr.msk.f32.vlgmr.msra.gmra.mxu1 %vm4503_vm10, %v4716_v21 }
 0x6c9   : > { %v6241_v0 = vpop.f32.mrf.mxu0 }
 0x77f   : > { %v4646_v18 = vpop.f32.mrf.mxu1 }
 0x780   : > { %v4793_v23 = vmul.f32 0.30780134, %v4646_v18  ;;  %v4794_v24 = vmul.f32 0.38439733, %v4646_v18  ;;  %v4866_v58 = vmul.f32 %v4646_v18, %v4646_v18 }
 0x781   : > { %v6236_v45 = vpop.f32.mrf.mxu1 }
 0x782   : > { %v4796_v26 = vrot.slane %v4794_v24, 1  ;;  %v4800_v63 = vrot.slane %v4793_v23, 2  ;;  %v4868_v3 = vmul.f32 0.38439733, %v4866_v58  ;;  %v4867_v27 = vmul.f32 0.30780134, %v4866_v58 }
 0x783   : > { %v8077_v24 = vmul.f32 0.30780134, %v7982_v10 }
 0x784   : > { %v4798_v61 = vadd.f32 %v4796_v26, %v4793_v23  ;;  %v4870_v28 = vrot.slane %v4868_v3, 1  ;;  %v4874_v59 = vrot.slane %v4867_v27, 2  ;;  %v4415_v23 = vrot.slane %v4408_v19, 2 }
 0x786   : > { %v4802_v1 = vadd.f32 %v4800_v63, %v4798_v61  ;;  %v4872_v50 = vadd.f32 %v4870_v28, %v4867_v27  ;;  %v4417_v52 = vadd.f32 %v4415_v23, %v4413_v20  ;;  %v2040_v28 = vrot.slane %v7726_v48, 4 }
 0x788   : > { %v4789_v34 = vpop.f32.mrf.mxu1  ;;  %v4804_v39 = vmul.f32 0.38439733, %v4802_v1  ;;  %v8054_v22 = vmul.f32 0.30780134, %v4802_v1  ;;  %v4876_v38 = vadd.f32 %v4874_v59, %v4872_v50  ;;  %v8089_v61 = vmul.f32 0.30780134, %v4417_v52  ;;  %v3817_v59 = vpop.permute.xlu0 %3816 }
 0x789   : > { %v4815_v5 = vmul.f32 0.30780134, %v4789_v34  ;;  %v4816_v37 = vmul.f32 0.38439733, %v4789_v34  ;;  %v4890_v60 = vmul.f32 %v4789_v34, %v4789_v34  ;;  %v4840_v43 = vmul.f32 %v4789_v34, %v4646_v18 }
 0x78a   : > { %v6246_v51 = vpop.f32.mrf.mxu1  ;;  %4806 = vrot.lane.b32.xlu0 %v4804_v39, %s6787_s20  ;;  %v4878_v11 = vmul.f32 0.38439733, %v4876_v38  ;;  %v8061_v7 = vmul.f32 0.30780134, %v4876_v38  ;;  %v3898_v18 = vadd.f32 %v3893_v54, %v7916_v14  ;;  %v4419_v54 = vmul.f32 0.38439733, %v4417_v52  ;;  %v3827_v39 = vpop.permute.xlu1 %3826 }
 0x78b   : > { %v4818_v9 = vrot.slane %v4816_v37, 1  ;;  %v4892_v32 = vmul.f32 0.38439733, %v4890_v60  ;;  %v4822_v2 = vrot.slane %v4815_v5, 2  ;;  %v4891_v40 = vmul.f32 0.30780134, %v4890_v60 }
 0x78c   : > { %v4842_v21 = vmul.f32 0.38439733, %v4840_v43  ;;  %v3907_v26 = vadd.f32 %v3902_v25, %v3898_v18  ;;  %v4841_v36 = vmul.f32 0.30780134, %v4840_v43  ;;  %v2041_v34 = vadd.f32 %v2040_v28, %v7726_v48  ;;  %v3815_v51 = vpop.permute.xlu0 %3814 }
 0x78d   : > { %v4820_v57 = vadd.f32 %v4818_v9, %v4815_v5  ;;  %v4894_v41 = vrot.slane %v4892_v32, 1  ;;  %v4898_v35 = vrot.slane %v4891_v40, 2  ;;  %v3450_v60 = vrot.slane %v7989_v12, 4 }
 0x78e   : > { %4811 = vrot.lane.b32.xlu0 %v8054_v22, %s6788_s24  ;;  %v4844_v58 = vrot.slane %v4842_v21, 1  ;;  %v3911_v63 = vmul.f32 0.38439733, %v3907_v26  ;;  %v4848_v10 = vrot.slane %v4841_v36, 2  ;;  %v8091_v27 = vmul.f32 0.30780134, %v3907_v26  ;;  %v3971_v37 = vpop.permute.xlu1 %3970 }
 0x78f   : > { %v4824_v56 = vadd.f32 %v4822_v2, %v4820_v57  ;;  %v4896_v44 = vadd.f32 %v4894_v41, %v4891_v40  ;;  %v2042_v50 = vrot.slane %v2041_v34, 2  ;;  %v3451_v32 = vadd.f32 %v3450_v60, %v7989_v12 }
 0x790   : > { %v4846_v3 = vadd.f32 %v4844_v58, %v4841_v36  ;;  %v3825_v2 = vpop.permute.xlu0 %3824  ;;  %v3821_v26 = vadd.f32 %v3817_v59, %v7900_v13 }
 0x791   : > { %v4826_v31 = vmul.f32 0.38439733, %v4824_v56  ;;  %v8063_v4 = vmul.f32 0.30780134, %v4824_v56  ;;  %v4900_v49 = vadd.f32 %v4898_v35, %v4896_v44  ;;  %v2043_v5 = vadd.f32 %v2042_v50, %v2041_v34 }
 0x792   : > { %4880 = vrot.lane.b32.xlu0 %v4878_v11, %s6787_s20  ;;  %v4850_v14 = vadd.f32 %v4848_v10, %v4846_v3  ;;  %v3981_v38 = vpop.permute.xlu1 %3980  ;;  %v3452_v41 = vrot.slane %v3451_v32, 2  ;;  %v8118_v28 = vadd.f32 %v3827_v39, %v3821_v26 }
 0x793   : > { %4828 = vrot.lane.b32.xlu1 %v4826_v31, %s6787_s20  ;;  %v4902_v0 = vmul.f32 0.38439733, %v4900_v49  ;;  %v8079_v45 = vmul.f32 0.30780134, %v4900_v49  ;;  %v2044_v9 = vrot.slane %v2043_v5, 1 }
 0x794   : > { %v4852_v25 = vmul.f32 0.38439733, %v4850_v14  ;;  %v8099_v1 = vmul.f32 0.30780134, %v4850_v14  ;;  %v3453_v48 = vadd.f32 %v3452_v41, %v3451_v32  ;;  %v3969_v11 = vpop.permute.xlu0 %3968 }
 0x795   : > { %v2045_v57 = vadd.f32 %v2044_v9, %v2043_v5 }
 0x796   : > { %4885 = vrot.lane.b32.xlu0 %v8061_v7, %s6788_s24  ;;  %v3863_v56 = vpop.permute.xlu1 %3862  ;;  %v3454_v30 = vrot.slane %v3453_v48, 1 }
 0x797   : > { %4833 = vrot.lane.b32.xlu1 %v8063_v4, %s6788_s24  ;;  %v2046_v40 = vsel %vm2023_vm2, %v2045_v57, 0.0 }
 0x798   : > { %v3979_v44 = vpop.permute.xlu0 %3978  ;;  %v3455_v35 = vadd.f32 %v3454_v30, %v3453_v48 }
 0x79a   : > { %3914 = vrot.lane.b32.xlu0 %v3910_v55, %s6787_s20  ;;  %v3873_v31 = vpop.permute.xlu1 %3872  ;;  %v3456_v43 = vsel %vm3441_vm8, %v3455_v35, 0.0 }
 0x79b   : > { %4904 = vrot.lane.b32.xlu1 %v4902_v0, %s6787_s20 }
 0x79c   : > { %v3871_v49 = vpop.permute.xlu0 %3870 }
 0x79e   : > { %3924 = vrot.lane.b32.xlu0 %v8077_v24, %s6788_s24  ;;  %v4021_v46 = vpop.permute.xlu1 %4020 }
 0x79f   : > { %4909 = vrot.lane.b32.xlu1 %v8079_v45, %s6788_s24  ;;  %v4025_v14 = vadd.f32 %v4021_v46, %v7987_v33 }
 0x7a0   : > { %v4019_v19 = vpop.permute.xlu0 %4018 }
 0x7a1   : > { %v4024_v33 = vadd.f32 %v4019_v19, %v7994_v62 }
 0x7a2   : > { %4421 = vrot.lane.b32.xlu0 %v4419_v54, %s6787_s20  ;;  %v4031_v12 = vpop.permute.xlu1 %4030  ;;  %v3867_v54 = vadd.f32 %v3863_v56, %v7966_v6 }
 0x7a3   : > { %3916 = vrot.lane.b32.xlu1 %v3911_v63, %s6787_s20  ;;  %v3975_v63 = vadd.f32 %v3971_v37, %v7934_v15  ;;  %v4035_v13 = vadd.f32 %v4031_v12, %v4025_v14  ;;  %v3974_v37 = vadd.f32 %v3969_v11, %v7956_v17 }
 0x7a4   : > { %v4029_v20 = vpop.permute.xlu0 %4028  ;;  %v8114_v10 = vadd.f32 %v3873_v31, %v3867_v54 }
 0x7a5   : > { %v3985_v34 = vadd.f32 %v3981_v38, %v3975_v63  ;;  %v3984_v9 = vadd.f32 %v3979_v44, %v3974_v37  ;;  %v4034_v32 = vadd.f32 %v4029_v20, %v4024_v33 }
 0x7a6   : > { %4426 = vrot.lane.b32.xlu0 %v8089_v61, %s6788_s24  ;;  %v3861_v55 = vpop.permute.xlu1 %3860 }
 0x7a7   : > { %3926 = vrot.lane.b32.xlu1 %v8091_v27, %s6788_s24  ;;  %v3866_v52 = vadd.f32 %v3861_v55, %v7977_v16  ;;  %v3820_v16 = vadd.f32 %v3815_v51, %v7936_v53  ;;  %v3881_v53 = vmul.f32 %v8114_v10, %v8114_v10 }
 0x7a8   : > { %v4374_v0 = vpop.permute.xlu0 %4373 }
 0x7a9   : > { %v8112_v3 = vadd.f32 %v3871_v49, %v3866_v52  ;;  %v4376_v59 = vadd.f32 %v4374_v0, %v8026_v47  ;;  %v3830_v5 = vadd.f32 %v3825_v2, %v3820_v16  ;;  %v4037_v17 = vsub.f32 %v4035_v13, %v3881_v53 }
 0x7aa   : > { %v4396_v21 = vpop.permute.xlu1 %4395 }
 0x7ab   : > { %4854 = vrot.lane.b32.xlu1 %v4852_v25, %s6787_s20  ;;  %v4398_v25 = vadd.f32 %v4396_v21, %v8034_v8  ;;  %v3880_v8 = vmul.f32 %v8112_v3, %v8112_v3  ;;  %v3878_v57 = vmul.f32 %v3830_v5, %v3830_v5 }
 0x7ac   : > { %v4379_v23 = vpop.permute.xlu0 %4378 }
 0x7ad   : > { %v8131_v60 = vadd.f32 %v4379_v23, %v4376_v59  ;;  %v4036_v2 = vsub.f32 %v4034_v32, %v3880_v8  ;;  %v3986_v48 = vsub.f32 %v3984_v9, %v3878_v57 }
 0x7ae   : > { %v4401_v18 = vpop.permute.xlu1 %4400 }
 0x7af   : > { %4859 = vrot.lane.b32.xlu1 %v8099_v1, %s6788_s24  ;;  %v8122_v6 = vadd.f32 %v4401_v18, %v4398_v25  ;;  %v4038_v31 = vadd.f32 %v4036_v2, %v3986_v48  ;;  %v3883_v2 = vmul.f32 %v8114_v10, %v8118_v28 }
 0x7b0   : > { %v4448_v36 = vpop.permute.xlu0 %4447 }
 0x7b1   : > { %v4450_v47 = vadd.f32 %v4448_v36, %v8032_v29  ;;  %v4405_v62 = vmul.f32 %v8122_v6, %v8122_v6 }
 0x7b2   : > { %v4472_v58 = vpop.permute.xlu1 %4471 }
 0x7b3   : > { %v4474_v15 = vadd.f32 %v4472_v58, %v8041_v42  ;;  %v3879_v42 = vmul.f32 %v8118_v28, %v8118_v28 }
 0x7b4   : > { %v4453_v39 = vpop.permute.xlu0 %4452 }
 0x7b5   : > { %v4455_v38 = vadd.f32 %v4453_v39, %v4450_v47  ;;  %v3987_v41 = vsub.f32 %v3985_v34, %v3879_v42 }
 0x7b6   : > { %v4477_v50 = vpop.permute.xlu1 %4476 }
 0x7b7   : > { %v4479_v51 = vadd.f32 %v4477_v50, %v4474_v15  ;;  %v4039_v11 = vadd.f32 %v4037_v17, %v3987_v41  ;;  %v3882_v15 = vmul.f32 %v8112_v3, %v3830_v5  ;;  %v4406_v3 = vmul.f32 %v8122_v6, %v8131_v60 }
 0x7b9   : > { %v4480_v56 = vsub.f32 %v4479_v51, %v4405_v62  ;;  %v4041_v46 = vadd.f32 58.5225, %v4039_v11 }
 0x7bb   : > { %6412 = vrcp.f32 %v4041_v46 }
 0x7c5   : > { %2047 = vadd.xlane.f32.xlu0 %v2046_v40  ;;  %v4404_v40 = vmul.f32 %v8131_v60, %v8131_v60 }
 0x7c7   : > { %v4456_v30 = vsub.f32 %v4455_v38, %v4404_v40 }
 0x7c8   : > { %v6413_v13 = vpop.eup %6412 }
 0x7c9   : > { %v4481_v44 = vadd.f32 %v4480_v56, %v4456_v30  ;;  %v4045_v9 = vmul.f32 %v6413_v13, %v4041_v46 }
 0x7cb   : > { %v4482_v49 = vadd.f32 58.5225, %v4481_v44  ;;  %v4047_v56 = vsub.f32 2.0, %v4045_v9 }
 0x7cd   : > { %v4049_v46 = vmul.f32 %v6413_v13, %v4047_v56 }
 0x7d3   : > { %3457 = vadd.xlane.f32.xlu1 %v3456_v43  ;;  %v4040_v43 = vadd.f32 58.5225, %v4038_v31 }
 0x7d5   : > { %6414 = vrcp.f32 %v4040_v43 }
 0x7d6   : > { %6416 = vrcp.f32 %v4482_v49 }
 0x7e2   : > { %v6415_v37 = vpop.eup %6414 }
 0x7e3   : > { %v6417_v33 = vpop.eup %6416 }
 0x7e4   : > { %v4484_v32 = vmul.f32 %v6417_v33, %v4482_v49 }
 0x7e6   : > { %v4485_v48 = vsub.f32 2.0, %v4484_v32 }
 0x7e8   : > { %v4486_v6 = vmul.f32 %v6417_v33, %v4485_v48 }
 0x7fc   : > { %v4807_v29 = vpop.permute.xlu0 %4806 }
 0x7fd   : > { %v4809_v55 = vadd.f32 %v4807_v29, %v8054_v22 }
 0x800   : > { %v4812_v35 = vpop.permute.xlu0 %4811 }
 0x801   : > { %v8141_v20 = vadd.f32 %v4812_v35, %v4809_v55 }
 0x803   : > { %v4837_v52 = vmul.f32 %v8141_v20, %v8141_v20 }
 0x804   : > { %v4881_v12 = vpop.permute.xlu0 %4880 }
 0x805   : > { %v4829_v19 = vpop.permute.xlu1 %4828  ;;  %v4883_v54 = vadd.f32 %v4881_v12, %v8061_v7 }
 0x806   : > { %v4831_v21 = vadd.f32 %v4829_v19, %v8063_v4 }
 0x808   : > { %v4886_v0 = vpop.permute.xlu0 %4885 }
 0x809   : > { %v4834_v18 = vpop.permute.xlu1 %4833  ;;  %v4888_v25 = vadd.f32 %v4886_v0, %v4883_v54 }
 0x80a   : > { %v4836_v23 = vadd.f32 %v4834_v18, %v4831_v21 }
 0x80b   : > { %v4889_v8 = vsub.f32 %v4888_v25, %v4837_v52 }
 0x80c   : > { %v4838_v58 = vmul.f32 %v4836_v23, %v4836_v23  ;;  %v3915_v26 = vpop.permute.xlu0 %3914  ;;  %v4839_v19 = vmul.f32 %v4836_v23, %v8141_v20 }
 0x80d   : > { %v4905_v36 = vpop.permute.xlu1 %4904  ;;  %v3920_v14 = vadd.f32 %v3915_v26, %v8077_v24  ;;  %v4044_v24 = vmul.f32 %v6415_v37, %v4040_v43 }
 0x80e   : > { %v4923_v63 = vadd.f32 %v4838_v58, %v4837_v52  ;;  %v4907_v16 = vadd.f32 %v4905_v36, %v8079_v45 }
 0x80f   : > { %v4046_v41 = vsub.f32 2.0, %v4044_v24 }
 0x810   : > { %v4924_v22 = vadd.f32 6.5025, %v4923_v63  ;;  %v3925_v34 = vpop.permute.xlu0 %3924 }
 0x811   : > { %v4910_v4 = vpop.permute.xlu1 %4909  ;;  %v3930_v50 = vadd.f32 %v3925_v34, %v3920_v14  ;;  %v4048_v44 = vmul.f32 %v6415_v37, %v4046_v41 }
 0x812   : > { %6418 = vrcp.f32 %v4924_v22  ;;  %v4912_v59 = vadd.f32 %v4910_v4, %v4907_v16  ;;  %v4921_v16 = vmul.f32 2.0, %v4839_v19 }
 0x813   : > { %v3932_v7 = vsub.f32 %v3930_v50, %v3882_v15 }
 0x814   : > { %v4913_v39 = vsub.f32 %v4912_v59, %v4838_v58  ;;  %v4422_v53 = vpop.permute.xlu0 %4421  ;;  %v4922_v15 = vadd.f32 6.5025, %v4921_v16 }
 0x815   : > { %v3917_v47 = vpop.permute.xlu1 %3916  ;;  %v4424_v45 = vadd.f32 %v4422_v53, %v8089_v61  ;;  %v3934_v17 = vmul.f32 2.0, %v3932_v7 }
 0x816   : > { %v4914_v51 = vadd.f32 %v4913_v39, %v4889_v8  ;;  %v3921_v62 = vadd.f32 %v3917_v47, %v8091_v27 }
 0x817   : > { %v3936_v61 = vadd.f32 58.5225, %v3934_v17 }
 0x818   : > { %v4915_v42 = vadd.f32 58.5225, %v4914_v51  ;;  %v4427_v38 = vpop.permute.xlu0 %4426 }
 0x819   : > { %v3927_v5 = vpop.permute.xlu1 %3926  ;;  %v4429_v57 = vadd.f32 %v4427_v38, %v4424_v45  ;;  %v4050_v10 = vmul.f32 %v4048_v44, %v3936_v61 }
 0x81a   : > { %6420 = vrcp.f32 %v4915_v42  ;;  %v3931_v40 = vadd.f32 %v3927_v5, %v3921_v62 }
 0x81b   : > { %v4430_v29 = vsub.f32 %v4429_v57, %v4406_v3  ;;  %v4053_v58 = vsel %vm4052_vm12, %v4050_v10, 0.0 }
 0x81c   : > { %v3933_v11 = vsub.f32 %v3931_v40, %v3883_v2  ;;  %v4944_v40 = vlaneseq }
 0x81d   : > { %v4431_v30 = vmul.f32 2.0, %v4430_v29  ;;  %v4855_v31 = vpop.permute.xlu1 %4854 }
 0x81e   : > { %v3935_v27 = vmul.f32 2.0, %v3933_v11  ;;  %v4857_v49 = vadd.f32 %v4855_v31, %v8099_v1  ;;  %v4945_v29 = vand.u32 127, %v4944_v40 }
 0x81f   : > { %v6419_v35 = vpop.eup %6418  ;;  %v4432_v60 = vadd.f32 58.5225, %v4431_v30 }
 0x820   : > { %v3937_v43 = vadd.f32 58.5225, %v3935_v27  ;;  %v4926_v55 = vmul.f32 %v6419_v35, %v4924_v22  ;;  %vm4949_vm1 = vcmp.eq.s32.totalorder %v4945_v29, 1  ;;  %vm4946_vm2 = vcmp.eq.s32.totalorder %v4945_v29, 0 }
 0x821   : > { %v4487_v28 = vmul.f32 %v4486_v6, %v4432_v60  ;;  %v4860_v12 = vpop.permute.xlu1 %4859  ;;  %vm4952_vm3 = vcmp.eq.s32.totalorder %v4945_v29, 2  ;;  %vm4955_vm4 = vcmp.eq.s32.totalorder %v4945_v29, 3  ;;  %vm4958_vm5 = vcmp.eq.s32.totalorder %v4945_v29, 4 }
 0x822   : > { %v4051_v21 = vmul.f32 %v4049_v46, %v3937_v43  ;;  %v4862_v0 = vadd.f32 %v4860_v12, %v4857_v49  ;;  %v4927_v63 = vsub.f32 2.0, %v4926_v55 }
 0x823   : > { %v4489_v18 = vsel %vm4488_vm11, %v4487_v28, 0.0 }
 0x824   : > { %v4863_v52 = vsub.f32 %v4862_v0, %v4839_v19  ;;  %v4055_v26 = vsel %vm4054_vm13, %v4051_v21, 0.0  ;;  %v4490_v36 = vrot.slane %v4489_v18, 4  ;;  %v4928_v20 = vmul.f32 %v6419_v35, %v4927_v63 }
 0x825   : > { %v4056_v54 = vadd.f32 %v4055_v26, %v4053_v58 }
 0x826   : > { %v4491_v1 = vadd.f32 %v4490_v36, %v4489_v18  ;;  %v4864_v4 = vmul.f32 2.0, %v4863_v52  ;;  %v4929_v39 = vmul.f32 %v4928_v20, %v4922_v15 }
 0x827   : > { %v6421_v14 = vpop.eup %6420  ;;  %v4057_v25 = vrot.slane %v4056_v54, 4 }
 0x828   : > { %v4917_v34 = vmul.f32 %v6421_v14, %v4915_v42  ;;  %v4492_v50 = vrot.slane %v4491_v1, 2  ;;  %v4865_v37 = vadd.f32 58.5225, %v4864_v4 }
 0x829   : > { %v4058_v13 = vadd.f32 %v4057_v25, %v4056_v54 }
 0x82a   : > { %v4918_v23 = vsub.f32 2.0, %v4917_v34  ;;  %v4493_v59 = vadd.f32 %v4492_v50, %v4491_v1 }
 0x82b   : > { %v4059_v22 = vrot.slane %v4058_v13, 2 }
 0x82c   : > { %v4919_v33 = vmul.f32 %v6421_v14, %v4918_v23  ;;  %v4494_v47 = vrot.slane %v4493_v59, 1 }
 0x82d   : > { %v4060_v8 = vadd.f32 %v4059_v22, %v4058_v13 }
 0x82e   : > { %v4920_v7 = vmul.f32 %v4919_v33, %v4865_v37  ;;  %v4495_v45 = vadd.f32 %v4494_v47, %v4493_v59 }
 0x82f   : > { %v4061_v53 = vrot.slane %v4060_v8, 1 }
 0x830   : > { %v4930_v24 = vmul.f32 %v4929_v39, %v4920_v7  ;;  %v4497_v62 = vsel %vm4496_vm15, %v4495_v45, 0.0 }
 0x831   : > { %v4062_v51 = vadd.f32 %v4061_v53, %v4060_v8 }
 0x832   : > { %v4932_v9 = vsel %vm4931_vm14, %v4930_v24, 0.0 }
 0x833   : > { %v4063_v32 = vsel %vm4052_vm12, %v4062_v51, 0.0  ;;  %v4933_v42 = vrot.slane %v4932_v9, 4 }
 0x834   : > { %4064 = vadd.xlane.f32.xlu0 %v4063_v32 }
 0x835   : > { %v4934_v17 = vadd.f32 %v4933_v42, %v4932_v9 }
 0x837   : > { %v4935_v38 = vrot.slane %v4934_v17, 2 }
 0x838   : > { %4498 = vadd.xlane.f32.xlu0 %v4497_v62 }
 0x839   : > { %v4936_v3 = vadd.f32 %v4935_v38, %v4934_v17 }
 0x83b   : > { %v4937_v5 = vrot.slane %v4936_v3, 1 }
 0x83d   : > { %v4938_v57 = vadd.f32 %v4937_v5, %v4936_v3 }
 0x83f   : > { %v4940_v2 = vsel %vm4939_vm0, %v4938_v57, 0.0 }
 0x840   : > { %4941 = vadd.xlane.f32.xlu1 %v4940_v2 }
 0x84e   : > { %v2048_v41 = vpop.xlane.xlu0 %2047 }
 0x84f   : > { %v2049_v30 = vmul.f32 0.0002601457, %v2048_v41 }
 0x851   : > { %v4947_v35 = vsel %vm4946_vm2, %v2049_v30, 0.0 }
 0x85c   : > { %v3458_v56 = vpop.xlane.xlu1 %3457 }
 0x85d   : > { %v3459_v61 = vmul.f32 0.0011111111, %v3458_v56 }
 0x85f   : > { %v4950_v27 = vsel %vm4949_vm1, %v3459_v61, 0.0 }
 0x860   : > { %v4951_v6 = vadd.f32 %v4950_v27, %v4947_v35 }
 0x8bd   : > { %v4065_v48 = vpop.xlane.xlu0 %4064 }
 0x8be   : > { %v4066_v31 = vmul.f32 0.0051020407, %v4065_v48 }
 0x8c0   : > { %v4953_v46 = vsel %vm4952_vm3, %v4066_v31, 0.0 }
 0x8c1   : > { %v4499_v11 = vpop.xlane.xlu0 %4498  ;;  %v4954_v43 = vadd.f32 %v4953_v46, %v4951_v6 }
 0x8c2   : > { %v4500_v44 = vmul.f32 0.027777778, %v4499_v11 }
 0x8c4   : > { %v4956_v60 = vsel %vm4955_vm4, %v4500_v44, 0.0 }
 0x8c5   : > { %v4957_v28 = vadd.f32 %v4956_v60, %v4954_v43 }
 0x8c9   : > { %v4942_v49 = vpop.xlane.xlu1 %4941 }
 0x8ca   : > { %v4943_v10 = vmul.f32 0.25, %v4942_v49 }
 0x8cc   : > { %v4959_v12 = vsel %vm4958_vm5, %v4943_v10, 0.0 }
 0x8cd   : > { %v4960_v19 = vadd.f32 %v4959_v12, %v4957_v28 }
 0x8cf   : > { %4961 = vst [vmem:[%s651_s28] sm:$0x1] %v4960_v19 }
 0x8d0 PF: > { %p31_p0 = scmp.ge.s32.totalorder %s7010_s26, 4   ;;  %s8233_s29 = smov %s6762_s30 }
 0x8d1   : > { %s8234_s30 = smov %s6766_s15  ;;  %s8235_s15 = smov %s7021_s25 }
 0x8d2   : > { %s8236_s16 = smov %s7010_s26  ;;  %33 = sbr.rel (!%p31_p0) target bundleno = 18 (0x12), region = 165 }
 0x8d7   :  { %4979 = vsyncpa [#allocation3], 1 }
 0x8d8   :  { %4981 = vsyncpa [#allocation3 + $0x1], 1 }
 0x8d9   :  { %4982 = vsyncpa [#allocation5], 1 }
 0x8da   :  { %4984 = vsyncpa [#allocation5 + $0x1], 1 }
 0x8db   :  { %4985 = vsyncpa [#allocation8], 1 }
 0x8dc   :  { %4986 = vsyncpa [#allocation11], 1 }
 0x8dd   :  { %4987 = vsyncpa [#allocation14], 1 }
 0x8de   :  { %4988 = vsyncpa [#allocation17], 1 }

</bundles_post_ra>
